<compile_context>
chip_gen: v7x
topology: tpu7x:2x2x1
jax: 0.10.0
libtpu: 0.0.40
codegen_flags: <defaults>
</compile_context>

<pallas_src>
import functools
import math

import jax
import jax.numpy as jnp
from jax.experimental import pallas as pl
from jax.experimental.pallas import tpu as pltpu


# ----------------------------- in-kernel helpers -----------------------------

def _layer_norm(x, g, b, eps=1e-5):
    mu = jnp.mean(x, axis=-1, keepdims=True)
    var = jnp.mean((x - mu) ** 2, axis=-1, keepdims=True)
    return (x - mu) * jax.lax.rsqrt(var + eps) * g + b


# ------------------------------- fused kernel --------------------------------

def fused_decoder_kernel(x_ref, mem_ref,
                         sa_qkv_w, sa_qkv_b, sa_ow, sa_ob,
                         ca_qw, ca_qb, ca_kvw, ca_kvb, ca_ow, ca_ob,
                         w1, b1, w2, b2,
                         g1, be1, g2, be2, g3, be3,
                         fn_g, fn_b,
                         out_ref, acc_ref,
                         *, nhead, use_final_norm):
    l = pl.program_id(0)
    last = pl.num_programs(0) - 1
    bf16 = jnp.bfloat16

    # Load the initial queries into the resident VMEM accumulator once.
    @pl.when(l == 0)
    def _():
        acc_ref[...] = x_ref[...].astype(jnp.float32)

    B, Sq, D = acc_ref.shape
    Skv = mem_ref.shape[1]
    Dh = D // nhead

    x2 = acc_ref[...].reshape(B * Sq, D)                       # (B*Sq, D) fp32
    mem2 = mem_ref[...].reshape(B * Skv, D).astype(bf16)       # (B*Skv, D) bf16

    def mha(q2, k2, v2, n_q, n_kv, ow_ref, ob_ref):
        """q2:(B*n_q,D) fp32 (scale pre-folded); k2,v2:(B*n_kv,D) fp32."""
        q3 = q2.reshape(B, n_q, D).astype(bf16)
        k3 = k2.reshape(B, n_kv, D).astype(bf16)
        v3 = v2.reshape(B, n_kv, D).astype(bf16)
        ow = ow_ref[0]                                         # (D, D) bf16
        out = ob_ref[0].astype(jnp.float32)                    # (1, D), broadcasts
        for h in range(nhead):                                 # static unroll (nhead small)
            sl = slice(h * Dh, (h + 1) * Dh)
            s = jnp.einsum('bqd,bkd->bqk', q3[:, :, sl], k3[:, :, sl],
                           preferred_element_type=jnp.float32)  # (B, n_q, n_kv)
            s = s - jnp.max(s, axis=-1, keepdims=True)
            p = jnp.exp(s)
            p = p * pl.reciprocal(jnp.sum(p, axis=-1, keepdims=True), approx=True)
            ctx = jnp.einsum('bqk,bkd->bqd', p.astype(bf16), v3[:, :, sl],
                             preferred_element_type=jnp.float32)
            # accumulate each head directly into the output projection (no concat)
            out = out + jnp.dot(ctx.reshape(B * n_q, Dh).astype(bf16), ow[sl, :],
                                preferred_element_type=jnp.float32)
        return out                                             # (B*n_q, D) fp32

    # ---- self-attention: packed QKV in one MXU pass (Q already scaled) ----
    qkv = jnp.dot(x2.astype(bf16), sa_qkv_w[0],
                  preferred_element_type=jnp.float32) + sa_qkv_b[0]   # (B*Sq, 3D)
    sa = mha(qkv[:, 0:D], qkv[:, D:2 * D], qkv[:, 2 * D:3 * D], Sq, Sq, sa_ow, sa_ob)
    x2 = _layer_norm(x2 + sa, g1[0], be1[0])

    # ---- cross-attention over visual memory: Q pass + packed KV pass ----
    q = jnp.dot(x2.astype(bf16), ca_qw[0],
                preferred_element_type=jnp.float32) + ca_qb[0]        # (B*Sq, D)
    kv = jnp.dot(mem2, ca_kvw[0],
                 preferred_element_type=jnp.float32) + ca_kvb[0]      # (B*Skv, 2D)
    ca = mha(q, kv[:, 0:D], kv[:, D:2 * D], Sq, Skv, ca_ow, ca_ob)
    x2 = _layer_norm(x2 + ca, g2[0], be2[0])

    # ---- feed-forward ----
    h = jnp.maximum(jnp.dot(x2.astype(bf16), w1[0],
                            preferred_element_type=jnp.float32) + b1[0], 0.0)
    ffn = jnp.dot(h.astype(bf16), w2[0],
                  preferred_element_type=jnp.float32) + b2[0]
    x2 = _layer_norm(x2 + ffn, g3[0], be3[0])

    # ---- carry + emit ----
    x_new = x2.reshape(B, Sq, D)
    acc_ref[...] = x_new
    out_ref[0] = x_new.astype(out_ref.dtype)
    if use_final_norm:
        @pl.when(l == last)
        def _():
            out_ref[0] = _layer_norm(x2, fn_g[...], fn_b[...]) \
                .reshape(B, Sq, D).astype(out_ref.dtype)


# -------------------------------- wrappers ------------------------------------

_PACKED_KEYS = ("sa_qkv_w", "sa_qkv_b", "sa_ow", "sa_ob",
                "ca_qw", "ca_qb", "ca_kvw", "ca_kvb", "ca_ow", "ca_ob",
                "w1", "b1", "w2", "b2",
                "g1", "be1", "g2", "be2", "g3", "be3")


def transformer_decoder_forward(dec_query_dict, dec_vis_dict, packed, *, nhead,
                                return_intermediate=False, use_final_norm=True):
    """Mirrors TransformerDecoder.forward with all layers fused in one pallas_call."""
    x = dec_query_dict["feat_action"]
    mem = dec_vis_dict["feat_vis"]
    B, Sq, D = x.shape
    _, Skv, _ = mem.shape
    L = packed["sa_qkv_w"].shape[0]

    weights = [packed[k] for k in _PACKED_KEYS]
    w_specs = [pl.BlockSpec((1,) + w.shape[1:], lambda l: (l, 0, 0)) for w in weights]

    n_out = L if return_intermediate else 1
    out_index = (lambda l: (l, 0, 0, 0)) if return_intermediate else (lambda l: (0, 0, 0, 0))

    # TODO(synk): for large B, add a leading "parallel" batch grid axis so both
    # v7x TensorCores are used; at toy sizes a single block is faster.
    grid_spec = pltpu.PrefetchScalarGridSpec(
        num_scalar_prefetch=0,
        grid=(L,),
        in_specs=[pl.BlockSpec((B, Sq, D), lambda l: (0, 0, 0)),
                  pl.BlockSpec((B, Skv, D), lambda l: (0, 0, 0))]
                 + w_specs
                 + [pl.BlockSpec((1, D), lambda l: (0, 0)),
                    pl.BlockSpec((1, D), lambda l: (0, 0))],
        out_specs=pl.BlockSpec((1, B, Sq, D), out_index),
        scratch_shapes=[pltpu.VMEM((B, Sq, D), jnp.float32)],
    )

    out = pl.pallas_call(
        functools.partial(fused_decoder_kernel, nhead=nhead,
                          use_final_norm=use_final_norm),
        out_shape=jax.ShapeDtypeStruct((n_out, B, Sq, D), x.dtype),
        grid_spec=grid_spec,
        compiler_params=pltpu.CompilerParams(
            dimension_semantics=("arbitrary",),          # carried VMEM accumulator
            vmem_limit_bytes=64 * 1024 * 1024),
    )(x, mem, *weights, packed["norm_g"], packed["norm_b"])

    if return_intermediate:
        return out            # (num_layers, B, Sq, D) == torch.stack(intermediate)
    return out                # (1, B, Sq, D)          == output.unsqueeze(0)


# --------------------------- params (PyTorch layout) ----------------------------

def init_params(key, num_layers, d_model, dim_ff):
    def w(k, shape, scale=0.02):
        return (scale * jax.random.normal(k, shape)).astype(jnp.float32)

    layers = []
    for lid in range(num_layers):
        k = jax.random.fold_in(key, lid)
        ks = jax.random.split(k, 6)
        lp = dict(
            sa_w=w(ks[0], (3 * d_model, d_model)), sa_b=jnp.zeros((1, 3 * d_model), jnp.float32),
            sa_ow=w(ks[1], (d_model, d_model)), sa_ob=jnp.zeros((1, d_model), jnp.float32),
            ca_w=w(ks[2], (3 * d_model, d_model)), ca_b=jnp.zeros((1, 3 * d_model), jnp.float32),
            ca_ow=w(ks[3], (d_model, d_model)), ca_ob=jnp.zeros((1, d_model), jnp.float32),
            w1=w(ks[4], (dim_ff, d_model)), b1=jnp.zeros((1, dim_ff), jnp.float32),
            w2=w(ks[5], (d_model, dim_ff)), b2=jnp.zeros((1, d_model), jnp.float32),
            g1=jnp.ones((1, d_model), jnp.float32), be1=jnp.zeros((1, d_model), jnp.float32),
            g2=jnp.ones((1, d_model), jnp.float32), be2=jnp.zeros((1, d_model), jnp.float32),
            g3=jnp.ones((1, d_model), jnp.float32), be3=jnp.zeros((1, d_model), jnp.float32),
        )
        layers.append(lp)
    return dict(layers=layers,
                norm_g=jnp.ones((1, d_model), jnp.float32),
                norm_b=jnp.zeros((1, d_model), jnp.float32))


def pack_params(params, nhead, compute_dtype=jnp.bfloat16):
    """Host-side, once: transpose to (in,out), fold 1/sqrt(Dh) into Q, split the
    cross-attn in_proj into Q / packed-KV, stack over layers, cast matmul weights
    to bf16 (biases / LayerNorm params stay fp32)."""
    D = params["layers"][0]["sa_ow"].shape[0]
    Dh = D // nhead
    scale = 1.0 / math.sqrt(Dh)

    def per_layer(lp):
        sa_w, sa_b = lp["sa_w"], lp["sa_b"][0]
        ca_w, ca_b = lp["ca_w"], lp["ca_b"][0]
        return dict(
            sa_qkv_w=jnp.concatenate([sa_w[:D] * scale, sa_w[D:]], 0).T.astype(compute_dtype),
            sa_qkv_b=jnp.concatenate([sa_b[:D] * scale, sa_b[D:]])[None, :],
            sa_ow=lp["sa_ow"].T.astype(compute_dtype),
            sa_ob=lp["sa_ob"],
            ca_qw=(ca_w[:D] * scale).T.astype(compute_dtype),
            ca_qb=(ca_b[:D] * scale)[None, :],
            ca_kvw=ca_w[D:].T.astype(compute_dtype),
            ca_kvb=ca_b[D:][None, :],
            ca_ow=lp["ca_ow"].T.astype(compute_dtype),
            ca_ob=lp["ca_ob"],
            w1=lp["w1"].T.astype(compute_dtype),
            b1=lp["b1"],
            w2=lp["w2"].T.astype(compute_dtype),
            b2=lp["b2"],
            g1=lp["g1"], be1=lp["be1"],
            g2=lp["g2"], be2=lp["be2"],
            g3=lp["g3"], be3=lp["be3"],
        )

    per = [per_layer(lp) for lp in params["layers"]]
    packed = {k: jnp.stack([p[k] for p in per]) for k in _PACKED_KEYS}
    packed["norm_g"] = params["norm_g"]
    packed["norm_b"] = params["norm_b"]
    return packed


# ------------------------------------ main -------------------------------------

if __name__ == "__main__":
    B, Sq, Skv, D, H, DFF, NLAYERS = 2, 8, 16, 32, 4, 64, 2

    key = jax.random.PRNGKey(0)
    kq, kv, kp = jax.random.split(key, 3)
    feat_action = jax.random.normal(kq, (B, Sq, D), jnp.float32)   # decoder queries
    feat_vis = jax.random.normal(kv, (B, Skv, D), jnp.float32)     # visual memory

    params = init_params(kp, NLAYERS, D, DFF)
    packed = pack_params(params, nhead=H)

    dec_query_dict = {"feat_action": feat_action}
    dec_vis_dict = {"feat_vis": feat_vis}

    out = transformer_decoder_forward(dec_query_dict, dec_vis_dict, packed,
                                      nhead=H, return_intermediate=False,
                                      use_final_norm=True)
    out = jax.block_until_ready(out)
    assert out.shape == (1, B, Sq, D)
    print("KERNEL_OK")
</pallas_src>

<mosaic_0001>
module attributes {stable_mosaic.version = 11 : i64} {
  func.func @fused_decoder_kernel(%arg0: i32, %arg1: memref<2x8x32xf32, #tpu.memory_space<vmem>>, %arg2: memref<2x16x32xf32, #tpu.memory_space<vmem>>, %arg3: memref<1x32x96xbf16, #tpu.memory_space<vmem>>, %arg4: memref<1x1x96xf32, #tpu.memory_space<vmem>>, %arg5: memref<1x32x32xbf16, #tpu.memory_space<vmem>>, %arg6: memref<1x1x32xf32, #tpu.memory_space<vmem>>, %arg7: memref<1x32x32xbf16, #tpu.memory_space<vmem>>, %arg8: memref<1x1x32xf32, #tpu.memory_space<vmem>>, %arg9: memref<1x32x64xbf16, #tpu.memory_space<vmem>>, %arg10: memref<1x1x64xf32, #tpu.memory_space<vmem>>, %arg11: memref<1x32x32xbf16, #tpu.memory_space<vmem>>, %arg12: memref<1x1x32xf32, #tpu.memory_space<vmem>>, %arg13: memref<1x32x64xbf16, #tpu.memory_space<vmem>>, %arg14: memref<1x1x64xf32, #tpu.memory_space<vmem>>, %arg15: memref<1x64x32xbf16, #tpu.memory_space<vmem>>, %arg16: memref<1x1x32xf32, #tpu.memory_space<vmem>>, %arg17: memref<1x1x32xf32, #tpu.memory_space<vmem>>, %arg18: memref<1x1x32xf32, #tpu.memory_space<vmem>>, %arg19: memref<1x1x32xf32, #tpu.memory_space<vmem>>, %arg20: memref<1x1x32xf32, #tpu.memory_space<vmem>>, %arg21: memref<1x1x32xf32, #tpu.memory_space<vmem>>, %arg22: memref<1x1x32xf32, #tpu.memory_space<vmem>>, %arg23: memref<1x32xf32, #tpu.memory_space<vmem>>, %arg24: memref<1x32xf32, #tpu.memory_space<vmem>>, %arg25: memref<1x2x8x32xf32, #tpu.memory_space<vmem>>, %arg26: memref<2x8x32xf32, #tpu.memory_space<vmem>>) attributes {dimension_semantics = [#tpu.dimension_semantics<arbitrary>], iteration_bounds = array<i64: 2>, scalar_prefetch = 0 : i64, scratch_operands = 1 : i64, tpu.core_type = #tpu.core_type<tc>, window_params = [{pipeline_mode = #tpu.pipeline_mode<synchronous>, transform_indices = @transform_0, window_bounds = array<i64: 2, 8, 32>}, {pipeline_mode = #tpu.pipeline_mode<synchronous>, transform_indices = @transform_1, window_bounds = array<i64: 2, 16, 32>}, {transform_indices = @transform_2, window_bounds = array<i64: 1, 32, 96>}, {transform_indices = @transform_3, window_bounds = array<i64: 1, 1, 96>}, {transform_indices = @transform_4, window_bounds = array<i64: 1, 32, 32>}, {transform_indices = @transform_5, window_bounds = array<i64: 1, 1, 32>}, {transform_indices = @transform_6, window_bounds = array<i64: 1, 32, 32>}, {transform_indices = @transform_7, window_bounds = array<i64: 1, 1, 32>}, {transform_indices = @transform_8, window_bounds = array<i64: 1, 32, 64>}, {transform_indices = @transform_9, window_bounds = array<i64: 1, 1, 64>}, {transform_indices = @transform_10, window_bounds = array<i64: 1, 32, 32>}, {transform_indices = @transform_11, window_bounds = array<i64: 1, 1, 32>}, {transform_indices = @transform_12, window_bounds = array<i64: 1, 32, 64>}, {transform_indices = @transform_13, window_bounds = array<i64: 1, 1, 64>}, {transform_indices = @transform_14, window_bounds = array<i64: 1, 64, 32>}, {transform_indices = @transform_15, window_bounds = array<i64: 1, 1, 32>}, {transform_indices = @transform_16, window_bounds = array<i64: 1, 1, 32>}, {transform_indices = @transform_17, window_bounds = array<i64: 1, 1, 32>}, {transform_indices = @transform_18, window_bounds = array<i64: 1, 1, 32>}, {transform_indices = @transform_19, window_bounds = array<i64: 1, 1, 32>}, {transform_indices = @transform_20, window_bounds = array<i64: 1, 1, 32>}, {transform_indices = @transform_21, window_bounds = array<i64: 1, 1, 32>}, {pipeline_mode = #tpu.pipeline_mode<synchronous>, transform_indices = @transform_22, window_bounds = array<i64: 1, 32>}, {pipeline_mode = #tpu.pipeline_mode<synchronous>, transform_indices = @transform_23, window_bounds = array<i64: 1, 32>}, {pipeline_mode = #tpu.pipeline_mode<synchronous>, transform_indices = @transform_24, window_bounds = array<i64: 1, 2, 8, 32>}]} {
    %c0_i32 = arith.constant 0 : i32
    %0 = arith.cmpi eq, %arg0, %c0_i32 : i32
    %1 = arith.extui %0 : i1 to i32
    %c0_i32_0 = arith.constant 0 : i32
    %2 = arith.cmpi ne, %1, %c0_i32_0 : i32
    scf.if %2 {
      %c0_134 = arith.constant 0 : index
      %c0_135 = arith.constant 0 : index
      %c0_136 = arith.constant 0 : index
      %333 = vector.load %arg1[%c0_134, %c0_135, %c0_136] : memref<2x8x32xf32, #tpu.memory_space<vmem>>, vector<2x8x32xf32>
      %c0_137 = arith.constant 0 : index
      %c0_138 = arith.constant 0 : index
      %c0_139 = arith.constant 0 : index
      %334 = vector.load %arg26[%c0_137, %c0_138, %c0_139] : memref<2x8x32xf32, #tpu.memory_space<vmem>>, vector<2x8x32xf32>
      tpu.vector_store %arg26[%c0_137, %c0_138, %c0_139], %333 {strides = array<i32>} : memref<2x8x32xf32, #tpu.memory_space<vmem>>, vector<2x8x32xf32>,
    } else {
    }
    %c0 = arith.constant 0 : index
    %c0_1 = arith.constant 0 : index
    %c0_2 = arith.constant 0 : index
    %3 = vector.load %arg26[%c0, %c0_1, %c0_2] : memref<2x8x32xf32, #tpu.memory_space<vmem>>, vector<2x8x32xf32>
    %4 = vector.shape_cast %3 : vector<2x8x32xf32> to vector<16x32xf32>
    %c0_3 = arith.constant 0 : index
    %c0_4 = arith.constant 0 : index
    %c0_5 = arith.constant 0 : index
    %5 = vector.load %arg2[%c0_3, %c0_4, %c0_5] : memref<2x16x32xf32, #tpu.memory_space<vmem>>, vector<2x16x32xf32>
    %6 = vector.shape_cast %5 : vector<2x16x32xf32> to vector<32x32xf32>
    %7 = arith.truncf %6 : vector<32x32xf32> to vector<32x32xbf16>
    %8 = arith.truncf %4 : vector<16x32xf32> to vector<16x32xbf16>
    %c0_6 = arith.constant 0 : index
    %c0_7 = arith.constant 0 : index
    %c0_8 = arith.constant 0 : index
    %9 = vector.load %arg3[%c0_6, %c0_7, %c0_8] : memref<1x32x96xbf16, #tpu.memory_space<vmem>>, vector<1x32x96xbf16>
    %10 = vector.shape_cast %9 : vector<1x32x96xbf16> to vector<32x96xbf16>
    %cst = arith.constant dense<0.000000e+00> : vector<16x96xf32>
    %11 = tpu.matmul %8, %10, %cst {dimension_numbers = #tpu.dot_dimension_numbers<[1], [0], [0], [1], [0, 0, 1, 1], [], []>} : vector<16x32xbf16>, vector<32x96xbf16>, vector<16x96xf32> -> vector<16x96xf32>
    %c0_9 = arith.constant 0 : index
    %c0_10 = arith.constant 0 : index
    %c0_11 = arith.constant 0 : index
    %12 = vector.load %arg4[%c0_9, %c0_10, %c0_11] : memref<1x1x96xf32, #tpu.memory_space<vmem>>, vector<1x1x96xf32>
    %13 = vector.shape_cast %12 : vector<1x1x96xf32> to vector<1x96xf32>
    %14 = vector.broadcast %13 : vector<1x96xf32> to vector<16x96xf32>
    %15 = arith.addf %11, %14 : vector<16x96xf32>
    %16 = vector.extract_strided_slice %15 {offsets = [0, 0], sizes = [16, 32], strides = [1, 1]} : vector<16x96xf32> to vector<16x32xf32>
    %17 = vector.extract_strided_slice %15 {offsets = [0, 32], sizes = [16, 32], strides = [1, 1]} : vector<16x96xf32> to vector<16x32xf32>
    %18 = vector.extract_strided_slice %15 {offsets = [0, 64], sizes = [16, 32], strides = [1, 1]} : vector<16x96xf32> to vector<16x32xf32>
    %19 = vector.shape_cast %16 : vector<16x32xf32> to vector<2x8x32xf32>
    %20 = arith.truncf %19 : vector<2x8x32xf32> to vector<2x8x32xbf16>
    %21 = vector.shape_cast %17 : vector<16x32xf32> to vector<2x8x32xf32>
    %22 = arith.truncf %21 : vector<2x8x32xf32> to vector<2x8x32xbf16>
    %23 = vector.shape_cast %18 : vector<16x32xf32> to vector<2x8x32xf32>
    %24 = arith.truncf %23 : vector<2x8x32xf32> to vector<2x8x32xbf16>
    %c0_12 = arith.constant 0 : index
    %c0_13 = arith.constant 0 : index
    %c0_14 = arith.constant 0 : index
    %25 = vector.load %arg5[%c0_12, %c0_13, %c0_14] : memref<1x32x32xbf16, #tpu.memory_space<vmem>>, vector<1x32x32xbf16>
    %26 = vector.shape_cast %25 : vector<1x32x32xbf16> to vector<32x32xbf16>
    %c0_15 = arith.constant 0 : index
    %c0_16 = arith.constant 0 : index
    %c0_17 = arith.constant 0 : index
    %27 = vector.load %arg6[%c0_15, %c0_16, %c0_17] : memref<1x1x32xf32, #tpu.memory_space<vmem>>, vector<1x1x32xf32>
    %28 = vector.shape_cast %27 : vector<1x1x32xf32> to vector<1x32xf32>
    %29 = vector.extract_strided_slice %20 {offsets = [0, 0, 0], sizes = [2, 8, 8], strides = [1, 1, 1]} : vector<2x8x32xbf16> to vector<2x8x8xbf16>
    %30 = vector.extract_strided_slice %22 {offsets = [0, 0, 0], sizes = [2, 8, 8], strides = [1, 1, 1]} : vector<2x8x32xbf16> to vector<2x8x8xbf16>
    "tpu.trace_start"() <{level = 10 : i32, message = "bqd,bkd->bqk"}> : () -> ()
    %cst_18 = arith.constant dense<0.000000e+00> : vector<2x8x8xf32>
    %31 = tpu.matmul %29, %30, %cst_18 {dimension_numbers = #tpu.dot_dimension_numbers<[2], [2], [1], [1], [0, 0, 0, 1, 1, 1], [0], [0]>} : vector<2x8x8xbf16>, vector<2x8x8xbf16>, vector<2x8x8xf32> -> vector<2x8x8xf32>
    "tpu.trace_stop"() : () -> ()
    %cst_19 = arith.constant dense<0xFF800000> : vector<2x8xf32>
    %32 = vector.multi_reduction <maximumf>, %31, %cst_19 [2] : vector<2x8x8xf32> to vector<2x8xf32>
    %33 = vector.shape_cast %32 : vector<2x8xf32> to vector<2x8x1xf32>
    %34 = vector.broadcast %33 : vector<2x8x1xf32> to vector<2x8x8xf32>
    %35 = arith.subf %31, %34 : vector<2x8x8xf32>
    %36 = math.exp %35 : vector<2x8x8xf32>
    %cst_20 = arith.constant dense<0.000000e+00> : vector<2x8xf32>
    %37 = vector.multi_reduction <add>, %36, %cst_20 [2] : vector<2x8x8xf32> to vector<2x8xf32>
    %38 = vector.shape_cast %37 : vector<2x8xf32> to vector<2x8x1xf32>
    %39 = tpu.reciprocal %38 {approx = true} : vector<2x8x1xf32> -> vector<2x8x1xf32>
    %40 = vector.broadcast %39 : vector<2x8x1xf32> to vector<2x8x8xf32>
    %41 = arith.mulf %36, %40 : vector<2x8x8xf32>
    %42 = arith.truncf %41 : vector<2x8x8xf32> to vector<2x8x8xbf16>
    %43 = vector.extract_strided_slice %24 {offsets = [0, 0, 0], sizes = [2, 8, 8], strides = [1, 1, 1]} : vector<2x8x32xbf16> to vector<2x8x8xbf16>
    "tpu.trace_start"() <{level = 10 : i32, message = "bqk,bkd->bqd"}> : () -> ()
    %cst_21 = arith.constant dense<0.000000e+00> : vector<2x8x8xf32>
    %44 = tpu.matmul %42, %43, %cst_21 {dimension_numbers = #tpu.dot_dimension_numbers<[2], [1], [1], [2], [0, 0, 0, 1, 1, 2], [0], [0]>} : vector<2x8x8xbf16>, vector<2x8x8xbf16>, vector<2x8x8xf32> -> vector<2x8x8xf32>
    "tpu.trace_stop"() : () -> ()
    %45 = vector.shape_cast %44 : vector<2x8x8xf32> to vector<16x8xf32>
    %46 = arith.truncf %45 : vector<16x8xf32> to vector<16x8xbf16>
    %47 = vector.extract_strided_slice %26 {offsets = [0, 0], sizes = [8, 32], strides = [1, 1]} : vector<32x32xbf16> to vector<8x32xbf16>
    %cst_22 = arith.constant dense<0.000000e+00> : vector<16x32xf32>
    %48 = tpu.matmul %46, %47, %cst_22 {dimension_numbers = #tpu.dot_dimension_numbers<[1], [0], [0], [1], [0, 0, 1, 1], [], []>} : vector<16x8xbf16>, vector<8x32xbf16>, vector<16x32xf32> -> vector<16x32xf32>
    %49 = vector.broadcast %28 : vector<1x32xf32> to vector<16x32xf32>
    %50 = arith.addf %49, %48 : vector<16x32xf32>
    %51 = vector.extract_strided_slice %20 {offsets = [0, 0, 8], sizes = [2, 8, 8], strides = [1, 1, 1]} : vector<2x8x32xbf16> to vector<2x8x8xbf16>
    %52 = vector.extract_strided_slice %22 {offsets = [0, 0, 8], sizes = [2, 8, 8], strides = [1, 1, 1]} : vector<2x8x32xbf16> to vector<2x8x8xbf16>
    "tpu.trace_start"() <{level = 10 : i32, message = "bqd,bkd->bqk"}> : () -> ()
    %cst_23 = arith.constant dense<0.000000e+00> : vector<2x8x8xf32>
    %53 = tpu.matmul %51, %52, %cst_23 {dimension_numbers = #tpu.dot_dimension_numbers<[2], [2], [1], [1], [0, 0, 0, 1, 1, 1], [0], [0]>} : vector<2x8x8xbf16>, vector<2x8x8xbf16>, vector<2x8x8xf32> -> vector<2x8x8xf32>
    "tpu.trace_stop"() : () -> ()
    %cst_24 = arith.constant dense<0xFF800000> : vector<2x8xf32>
    %54 = vector.multi_reduction <maximumf>, %53, %cst_24 [2] : vector<2x8x8xf32> to vector<2x8xf32>
    %55 = vector.shape_cast %54 : vector<2x8xf32> to vector<2x8x1xf32>
    %56 = vector.broadcast %55 : vector<2x8x1xf32> to vector<2x8x8xf32>
    %57 = arith.subf %53, %56 : vector<2x8x8xf32>
    %58 = math.exp %57 : vector<2x8x8xf32>
    %cst_25 = arith.constant dense<0.000000e+00> : vector<2x8xf32>
    %59 = vector.multi_reduction <add>, %58, %cst_25 [2] : vector<2x8x8xf32> to vector<2x8xf32>
    %60 = vector.shape_cast %59 : vector<2x8xf32> to vector<2x8x1xf32>
    %61 = tpu.reciprocal %60 {approx = true} : vector<2x8x1xf32> -> vector<2x8x1xf32>
    %62 = vector.broadcast %61 : vector<2x8x1xf32> to vector<2x8x8xf32>
    %63 = arith.mulf %58, %62 : vector<2x8x8xf32>
    %64 = arith.truncf %63 : vector<2x8x8xf32> to vector<2x8x8xbf16>
    %65 = vector.extract_strided_slice %24 {offsets = [0, 0, 8], sizes = [2, 8, 8], strides = [1, 1, 1]} : vector<2x8x32xbf16> to vector<2x8x8xbf16>
    "tpu.trace_start"() <{level = 10 : i32, message = "bqk,bkd->bqd"}> : () -> ()
    %cst_26 = arith.constant dense<0.000000e+00> : vector<2x8x8xf32>
    %66 = tpu.matmul %64, %65, %cst_26 {dimension_numbers = #tpu.dot_dimension_numbers<[2], [1], [1], [2], [0, 0, 0, 1, 1, 2], [0], [0]>} : vector<2x8x8xbf16>, vector<2x8x8xbf16>, vector<2x8x8xf32> -> vector<2x8x8xf32>
    "tpu.trace_stop"() : () -> ()
    %67 = vector.shape_cast %66 : vector<2x8x8xf32> to vector<16x8xf32>
    %68 = arith.truncf %67 : vector<16x8xf32> to vector<16x8xbf16>
    %69 = vector.extract_strided_slice %26 {offsets = [8, 0], sizes = [8, 32], strides = [1, 1]} : vector<32x32xbf16> to vector<8x32xbf16>
    %cst_27 = arith.constant dense<0.000000e+00> : vector<16x32xf32>
    %70 = tpu.matmul %68, %69, %cst_27 {dimension_numbers = #tpu.dot_dimension_numbers<[1], [0], [0], [1], [0, 0, 1, 1], [], []>} : vector<16x8xbf16>, vector<8x32xbf16>, vector<16x32xf32> -> vector<16x32xf32>
    %71 = arith.addf %50, %70 : vector<16x32xf32>
    %72 = vector.extract_strided_slice %20 {offsets = [0, 0, 16], sizes = [2, 8, 8], strides = [1, 1, 1]} : vector<2x8x32xbf16> to vector<2x8x8xbf16>
    %73 = vector.extract_strided_slice %22 {offsets = [0, 0, 16], sizes = [2, 8, 8], strides = [1, 1, 1]} : vector<2x8x32xbf16> to vector<2x8x8xbf16>
    "tpu.trace_start"() <{level = 10 : i32, message = "bqd,bkd->bqk"}> : () -> ()
    %cst_28 = arith.constant dense<0.000000e+00> : vector<2x8x8xf32>
    %74 = tpu.matmul %72, %73, %cst_28 {dimension_numbers = #tpu.dot_dimension_numbers<[2], [2], [1], [1], [0, 0, 0, 1, 1, 1], [0], [0]>} : vector<2x8x8xbf16>, vector<2x8x8xbf16>, vector<2x8x8xf32> -> vector<2x8x8xf32>
    "tpu.trace_stop"() : () -> ()
    %cst_29 = arith.constant dense<0xFF800000> : vector<2x8xf32>
    %75 = vector.multi_reduction <maximumf>, %74, %cst_29 [2] : vector<2x8x8xf32> to vector<2x8xf32>
    %76 = vector.shape_cast %75 : vector<2x8xf32> to vector<2x8x1xf32>
    %77 = vector.broadcast %76 : vector<2x8x1xf32> to vector<2x8x8xf32>
    %78 = arith.subf %74, %77 : vector<2x8x8xf32>
    %79 = math.exp %78 : vector<2x8x8xf32>
    %cst_30 = arith.constant dense<0.000000e+00> : vector<2x8xf32>
    %80 = vector.multi_reduction <add>, %79, %cst_30 [2] : vector<2x8x8xf32> to vector<2x8xf32>
    %81 = vector.shape_cast %80 : vector<2x8xf32> to vector<2x8x1xf32>
    %82 = tpu.reciprocal %81 {approx = true} : vector<2x8x1xf32> -> vector<2x8x1xf32>
    %83 = vector.broadcast %82 : vector<2x8x1xf32> to vector<2x8x8xf32>
    %84 = arith.mulf %79, %83 : vector<2x8x8xf32>
    %85 = arith.truncf %84 : vector<2x8x8xf32> to vector<2x8x8xbf16>
    %86 = vector.extract_strided_slice %24 {offsets = [0, 0, 16], sizes = [2, 8, 8], strides = [1, 1, 1]} : vector<2x8x32xbf16> to vector<2x8x8xbf16>
    "tpu.trace_start"() <{level = 10 : i32, message = "bqk,bkd->bqd"}> : () -> ()
    %cst_31 = arith.constant dense<0.000000e+00> : vector<2x8x8xf32>
    %87 = tpu.matmul %85, %86, %cst_31 {dimension_numbers = #tpu.dot_dimension_numbers<[2], [1], [1], [2], [0, 0, 0, 1, 1, 2], [0], [0]>} : vector<2x8x8xbf16>, vector<2x8x8xbf16>, vector<2x8x8xf32> -> vector<2x8x8xf32>
    "tpu.trace_stop"() : () -> ()
    %88 = vector.shape_cast %87 : vector<2x8x8xf32> to vector<16x8xf32>
    %89 = arith.truncf %88 : vector<16x8xf32> to vector<16x8xbf16>
    %90 = vector.extract_strided_slice %26 {offsets = [16, 0], sizes = [8, 32], strides = [1, 1]} : vector<32x32xbf16> to vector<8x32xbf16>
    %cst_32 = arith.constant dense<0.000000e+00> : vector<16x32xf32>
    %91 = tpu.matmul %89, %90, %cst_32 {dimension_numbers = #tpu.dot_dimension_numbers<[1], [0], [0], [1], [0, 0, 1, 1], [], []>} : vector<16x8xbf16>, vector<8x32xbf16>, vector<16x32xf32> -> vector<16x32xf32>
    %92 = arith.addf %71, %91 : vector<16x32xf32>
    %93 = vector.extract_strided_slice %20 {offsets = [0, 0, 24], sizes = [2, 8, 8], strides = [1, 1, 1]} : vector<2x8x32xbf16> to vector<2x8x8xbf16>
    %94 = vector.extract_strided_slice %22 {offsets = [0, 0, 24], sizes = [2, 8, 8], strides = [1, 1, 1]} : vector<2x8x32xbf16> to vector<2x8x8xbf16>
    "tpu.trace_start"() <{level = 10 : i32, message = "bqd,bkd->bqk"}> : () -> ()
    %cst_33 = arith.constant dense<0.000000e+00> : vector<2x8x8xf32>
    %95 = tpu.matmul %93, %94, %cst_33 {dimension_numbers = #tpu.dot_dimension_numbers<[2], [2], [1], [1], [0, 0, 0, 1, 1, 1], [0], [0]>} : vector<2x8x8xbf16>, vector<2x8x8xbf16>, vector<2x8x8xf32> -> vector<2x8x8xf32>
    "tpu.trace_stop"() : () -> ()
    %cst_34 = arith.constant dense<0xFF800000> : vector<2x8xf32>
    %96 = vector.multi_reduction <maximumf>, %95, %cst_34 [2] : vector<2x8x8xf32> to vector<2x8xf32>
    %97 = vector.shape_cast %96 : vector<2x8xf32> to vector<2x8x1xf32>
    %98 = vector.broadcast %97 : vector<2x8x1xf32> to vector<2x8x8xf32>
    %99 = arith.subf %95, %98 : vector<2x8x8xf32>
    %100 = math.exp %99 : vector<2x8x8xf32>
    %cst_35 = arith.constant dense<0.000000e+00> : vector<2x8xf32>
    %101 = vector.multi_reduction <add>, %100, %cst_35 [2] : vector<2x8x8xf32> to vector<2x8xf32>
    %102 = vector.shape_cast %101 : vector<2x8xf32> to vector<2x8x1xf32>
    %103 = tpu.reciprocal %102 {approx = true} : vector<2x8x1xf32> -> vector<2x8x1xf32>
    %104 = vector.broadcast %103 : vector<2x8x1xf32> to vector<2x8x8xf32>
    %105 = arith.mulf %100, %104 : vector<2x8x8xf32>
    %106 = arith.truncf %105 : vector<2x8x8xf32> to vector<2x8x8xbf16>
    %107 = vector.extract_strided_slice %24 {offsets = [0, 0, 24], sizes = [2, 8, 8], strides = [1, 1, 1]} : vector<2x8x32xbf16> to vector<2x8x8xbf16>
    "tpu.trace_start"() <{level = 10 : i32, message = "bqk,bkd->bqd"}> : () -> ()
    %cst_36 = arith.constant dense<0.000000e+00> : vector<2x8x8xf32>
    %108 = tpu.matmul %106, %107, %cst_36 {dimension_numbers = #tpu.dot_dimension_numbers<[2], [1], [1], [2], [0, 0, 0, 1, 1, 2], [0], [0]>} : vector<2x8x8xbf16>, vector<2x8x8xbf16>, vector<2x8x8xf32> -> vector<2x8x8xf32>
    "tpu.trace_stop"() : () -> ()
    %109 = vector.shape_cast %108 : vector<2x8x8xf32> to vector<16x8xf32>
    %110 = arith.truncf %109 : vector<16x8xf32> to vector<16x8xbf16>
    %111 = vector.extract_strided_slice %26 {offsets = [24, 0], sizes = [8, 32], strides = [1, 1]} : vector<32x32xbf16> to vector<8x32xbf16>
    %cst_37 = arith.constant dense<0.000000e+00> : vector<16x32xf32>
    %112 = tpu.matmul %110, %111, %cst_37 {dimension_numbers = #tpu.dot_dimension_numbers<[1], [0], [0], [1], [0, 0, 1, 1], [], []>} : vector<16x8xbf16>, vector<8x32xbf16>, vector<16x32xf32> -> vector<16x32xf32>
    %113 = arith.addf %92, %112 : vector<16x32xf32>
    %114 = arith.addf %4, %113 : vector<16x32xf32>
    %c0_38 = arith.constant 0 : index
    %c0_39 = arith.constant 0 : index
    %c0_40 = arith.constant 0 : index
    %115 = vector.load %arg17[%c0_38, %c0_39, %c0_40] : memref<1x1x32xf32, #tpu.memory_space<vmem>>, vector<1x1x32xf32>
    %116 = vector.shape_cast %115 : vector<1x1x32xf32> to vector<1x32xf32>
    %c0_41 = arith.constant 0 : index
    %c0_42 = arith.constant 0 : index
    %c0_43 = arith.constant 0 : index
    %117 = vector.load %arg18[%c0_41, %c0_42, %c0_43] : memref<1x1x32xf32, #tpu.memory_space<vmem>>, vector<1x1x32xf32>
    %118 = vector.shape_cast %117 : vector<1x1x32xf32> to vector<1x32xf32>
    %cst_44 = arith.constant dense<0.000000e+00> : vector<16xf32>
    %119 = vector.multi_reduction <add>, %114, %cst_44 [1] : vector<16x32xf32> to vector<16xf32>
    %120 = vector.shape_cast %119 : vector<16xf32> to vector<16x1xf32>
    %cst_45 = arith.constant 3.200000e+01 : f32
    %121 = vector.broadcast %cst_45 : f32 to vector<16x1xf32>
    %122 = arith.divf %120, %121 : vector<16x1xf32>
    %123 = vector.broadcast %122 : vector<16x1xf32> to vector<16x32xf32>
    %124 = arith.subf %114, %123 : vector<16x32xf32>
    %125 = arith.mulf %124, %124 : vector<16x32xf32>
    %cst_46 = arith.constant dense<0.000000e+00> : vector<16xf32>
    %126 = vector.multi_reduction <add>, %125, %cst_46 [1] : vector<16x32xf32> to vector<16xf32>
    %127 = vector.shape_cast %126 : vector<16xf32> to vector<16x1xf32>
    %cst_47 = arith.constant 3.200000e+01 : f32
    %128 = vector.broadcast %cst_47 : f32 to vector<16x1xf32>
    %129 = arith.divf %127, %128 : vector<16x1xf32>
    %130 = vector.broadcast %122 : vector<16x1xf32> to vector<16x32xf32>
    %131 = arith.subf %114, %130 : vector<16x32xf32>
    %cst_48 = arith.constant 9.99999974E-6 : f32
    %132 = vector.broadcast %cst_48 : f32 to vector<16x1xf32>
    %133 = arith.addf %129, %132 : vector<16x1xf32>
    %134 = math.rsqrt %133 : vector<16x1xf32>
    %135 = vector.broadcast %134 : vector<16x1xf32> to vector<16x32xf32>
    %136 = arith.mulf %131, %135 : vector<16x32xf32>
    %137 = vector.broadcast %116 : vector<1x32xf32> to vector<16x32xf32>
    %138 = arith.mulf %136, %137 : vector<16x32xf32>
    %139 = vector.broadcast %118 : vector<1x32xf32> to vector<16x32xf32>
    %140 = arith.addf %138, %139 : vector<16x32xf32>
    %141 = arith.truncf %140 : vector<16x32xf32> to vector<16x32xbf16>
    %c0_49 = arith.constant 0 : index
    %c0_50 = arith.constant 0 : index
    %c0_51 = arith.constant 0 : index
    %142 = vector.load %arg7[%c0_49, %c0_50, %c0_51] : memref<1x32x32xbf16, #tpu.memory_space<vmem>>, vector<1x32x32xbf16>
    %143 = vector.shape_cast %142 : vector<1x32x32xbf16> to vector<32x32xbf16>
    %cst_52 = arith.constant dense<0.000000e+00> : vector<16x32xf32>
    %144 = tpu.matmul %141, %143, %cst_52 {dimension_numbers = #tpu.dot_dimension_numbers<[1], [0], [0], [1], [0, 0, 1, 1], [], []>} : vector<16x32xbf16>, vector<32x32xbf16>, vector<16x32xf32> -> vector<16x32xf32>
    %c0_53 = arith.constant 0 : index
    %c0_54 = arith.constant 0 : index
    %c0_55 = arith.constant 0 : index
    %145 = vector.load %arg8[%c0_53, %c0_54, %c0_55] : memref<1x1x32xf32, #tpu.memory_space<vmem>>, vector<1x1x32xf32>
    %146 = vector.shape_cast %145 : vector<1x1x32xf32> to vector<1x32xf32>
    %147 = vector.broadcast %146 : vector<1x32xf32> to vector<16x32xf32>
    %148 = arith.addf %144, %147 : vector<16x32xf32>
    %c0_56 = arith.constant 0 : index
    %c0_57 = arith.constant 0 : index
    %c0_58 = arith.constant 0 : index
    %149 = vector.load %arg9[%c0_56, %c0_57, %c0_58] : memref<1x32x64xbf16, #tpu.memory_space<vmem>>, vector<1x32x64xbf16>
    %150 = vector.shape_cast %149 : vector<1x32x64xbf16> to vector<32x64xbf16>
    %cst_59 = arith.constant dense<0.000000e+00> : vector<32x64xf32>
    %151 = tpu.matmul %7, %150, %cst_59 {dimension_numbers = #tpu.dot_dimension_numbers<[1], [0], [0], [1], [0, 0, 1, 1], [], []>} : vector<32x32xbf16>, vector<32x64xbf16>, vector<32x64xf32> -> vector<32x64xf32>
    %c0_60 = arith.constant 0 : index
    %c0_61 = arith.constant 0 : index
    %c0_62 = arith.constant 0 : index
    %152 = vector.load %arg10[%c0_60, %c0_61, %c0_62] : memref<1x1x64xf32, #tpu.memory_space<vmem>>, vector<1x1x64xf32>
    %153 = vector.shape_cast %152 : vector<1x1x64xf32> to vector<1x64xf32>
    %154 = vector.broadcast %153 : vector<1x64xf32> to vector<32x64xf32>
    %155 = arith.addf %151, %154 : vector<32x64xf32>
    %156 = vector.extract_strided_slice %155 {offsets = [0, 0], sizes = [32, 32], strides = [1, 1]} : vector<32x64xf32> to vector<32x32xf32>
    %157 = vector.extract_strided_slice %155 {offsets = [0, 32], sizes = [32, 32], strides = [1, 1]} : vector<32x64xf32> to vector<32x32xf32>
    %158 = vector.shape_cast %148 : vector<16x32xf32> to vector<2x8x32xf32>
    %159 = arith.truncf %158 : vector<2x8x32xf32> to vector<2x8x32xbf16>
    %160 = vector.shape_cast %156 : vector<32x32xf32> to vector<2x16x32xf32>
    %161 = arith.truncf %160 : vector<2x16x32xf32> to vector<2x16x32xbf16>
    %162 = vector.shape_cast %157 : vector<32x32xf32> to vector<2x16x32xf32>
    %163 = arith.truncf %162 : vector<2x16x32xf32> to vector<2x16x32xbf16>
    %c0_63 = arith.constant 0 : index
    %c0_64 = arith.constant 0 : index
    %c0_65 = arith.constant 0 : index
    %164 = vector.load %arg11[%c0_63, %c0_64, %c0_65] : memref<1x32x32xbf16, #tpu.memory_space<vmem>>, vector<1x32x32xbf16>
    %165 = vector.shape_cast %164 : vector<1x32x32xbf16> to vector<32x32xbf16>
    %c0_66 = arith.constant 0 : index
    %c0_67 = arith.constant 0 : index
    %c0_68 = arith.constant 0 : index
    %166 = vector.load %arg12[%c0_66, %c0_67, %c0_68] : memref<1x1x32xf32, #tpu.memory_space<vmem>>, vector<1x1x32xf32>
    %167 = vector.shape_cast %166 : vector<1x1x32xf32> to vector<1x32xf32>
    %168 = vector.extract_strided_slice %159 {offsets = [0, 0, 0], sizes = [2, 8, 8], strides = [1, 1, 1]} : vector<2x8x32xbf16> to vector<2x8x8xbf16>
    %169 = vector.extract_strided_slice %161 {offsets = [0, 0, 0], sizes = [2, 16, 8], strides = [1, 1, 1]} : vector<2x16x32xbf16> to vector<2x16x8xbf16>
    "tpu.trace_start"() <{level = 10 : i32, message = "bqd,bkd->bqk"}> : () -> ()
    %cst_69 = arith.constant dense<0.000000e+00> : vector<2x8x16xf32>
    %170 = tpu.matmul %168, %169, %cst_69 {dimension_numbers = #tpu.dot_dimension_numbers<[2], [2], [1], [1], [0, 0, 0, 1, 1, 1], [0], [0]>} : vector<2x8x8xbf16>, vector<2x16x8xbf16>, vector<2x8x16xf32> -> vector<2x8x16xf32>
    "tpu.trace_stop"() : () -> ()
    %cst_70 = arith.constant dense<0xFF800000> : vector<2x8xf32>
    %171 = vector.multi_reduction <maximumf>, %170, %cst_70 [2] : vector<2x8x16xf32> to vector<2x8xf32>
    %172 = vector.shape_cast %171 : vector<2x8xf32> to vector<2x8x1xf32>
    %173 = vector.broadcast %172 : vector<2x8x1xf32> to vector<2x8x16xf32>
    %174 = arith.subf %170, %173 : vector<2x8x16xf32>
    %175 = math.exp %174 : vector<2x8x16xf32>
    %cst_71 = arith.constant dense<0.000000e+00> : vector<2x8xf32>
    %176 = vector.multi_reduction <add>, %175, %cst_71 [2] : vector<2x8x16xf32> to vector<2x8xf32>
    %177 = vector.shape_cast %176 : vector<2x8xf32> to vector<2x8x1xf32>
    %178 = tpu.reciprocal %177 {approx = true} : vector<2x8x1xf32> -> vector<2x8x1xf32>
    %179 = vector.broadcast %178 : vector<2x8x1xf32> to vector<2x8x16xf32>
    %180 = arith.mulf %175, %179 : vector<2x8x16xf32>
    %181 = arith.truncf %180 : vector<2x8x16xf32> to vector<2x8x16xbf16>
    %182 = vector.extract_strided_slice %163 {offsets = [0, 0, 0], sizes = [2, 16, 8], strides = [1, 1, 1]} : vector<2x16x32xbf16> to vector<2x16x8xbf16>
    "tpu.trace_start"() <{level = 10 : i32, message = "bqk,bkd->bqd"}> : () -> ()
    %cst_72 = arith.constant dense<0.000000e+00> : vector<2x8x8xf32>
    %183 = tpu.matmul %181, %182, %cst_72 {dimension_numbers = #tpu.dot_dimension_numbers<[2], [1], [1], [2], [0, 0, 0, 1, 1, 2], [0], [0]>} : vector<2x8x16xbf16>, vector<2x16x8xbf16>, vector<2x8x8xf32> -> vector<2x8x8xf32>
    "tpu.trace_stop"() : () -> ()
    %184 = vector.shape_cast %183 : vector<2x8x8xf32> to vector<16x8xf32>
    %185 = arith.truncf %184 : vector<16x8xf32> to vector<16x8xbf16>
    %186 = vector.extract_strided_slice %165 {offsets = [0, 0], sizes = [8, 32], strides = [1, 1]} : vector<32x32xbf16> to vector<8x32xbf16>
    %cst_73 = arith.constant dense<0.000000e+00> : vector<16x32xf32>
    %187 = tpu.matmul %185, %186, %cst_73 {dimension_numbers = #tpu.dot_dimension_numbers<[1], [0], [0], [1], [0, 0, 1, 1], [], []>} : vector<16x8xbf16>, vector<8x32xbf16>, vector<16x32xf32> -> vector<16x32xf32>
    %188 = vector.broadcast %167 : vector<1x32xf32> to vector<16x32xf32>
    %189 = arith.addf %188, %187 : vector<16x32xf32>
    %190 = vector.extract_strided_slice %159 {offsets = [0, 0, 8], sizes = [2, 8, 8], strides = [1, 1, 1]} : vector<2x8x32xbf16> to vector<2x8x8xbf16>
    %191 = vector.extract_strided_slice %161 {offsets = [0, 0, 8], sizes = [2, 16, 8], strides = [1, 1, 1]} : vector<2x16x32xbf16> to vector<2x16x8xbf16>
    "tpu.trace_start"() <{level = 10 : i32, message = "bqd,bkd->bqk"}> : () -> ()
    %cst_74 = arith.constant dense<0.000000e+00> : vector<2x8x16xf32>
    %192 = tpu.matmul %190, %191, %cst_74 {dimension_numbers = #tpu.dot_dimension_numbers<[2], [2], [1], [1], [0, 0, 0, 1, 1, 1], [0], [0]>} : vector<2x8x8xbf16>, vector<2x16x8xbf16>, vector<2x8x16xf32> -> vector<2x8x16xf32>
    "tpu.trace_stop"() : () -> ()
    %cst_75 = arith.constant dense<0xFF800000> : vector<2x8xf32>
    %193 = vector.multi_reduction <maximumf>, %192, %cst_75 [2] : vector<2x8x16xf32> to vector<2x8xf32>
    %194 = vector.shape_cast %193 : vector<2x8xf32> to vector<2x8x1xf32>
    %195 = vector.broadcast %194 : vector<2x8x1xf32> to vector<2x8x16xf32>
    %196 = arith.subf %192, %195 : vector<2x8x16xf32>
    %197 = math.exp %196 : vector<2x8x16xf32>
    %cst_76 = arith.constant dense<0.000000e+00> : vector<2x8xf32>
    %198 = vector.multi_reduction <add>, %197, %cst_76 [2] : vector<2x8x16xf32> to vector<2x8xf32>
    %199 = vector.shape_cast %198 : vector<2x8xf32> to vector<2x8x1xf32>
    %200 = tpu.reciprocal %199 {approx = true} : vector<2x8x1xf32> -> vector<2x8x1xf32>
    %201 = vector.broadcast %200 : vector<2x8x1xf32> to vector<2x8x16xf32>
    %202 = arith.mulf %197, %201 : vector<2x8x16xf32>
    %203 = arith.truncf %202 : vector<2x8x16xf32> to vector<2x8x16xbf16>
    %204 = vector.extract_strided_slice %163 {offsets = [0, 0, 8], sizes = [2, 16, 8], strides = [1, 1, 1]} : vector<2x16x32xbf16> to vector<2x16x8xbf16>
    "tpu.trace_start"() <{level = 10 : i32, message = "bqk,bkd->bqd"}> : () -> ()
    %cst_77 = arith.constant dense<0.000000e+00> : vector<2x8x8xf32>
    %205 = tpu.matmul %203, %204, %cst_77 {dimension_numbers = #tpu.dot_dimension_numbers<[2], [1], [1], [2], [0, 0, 0, 1, 1, 2], [0], [0]>} : vector<2x8x16xbf16>, vector<2x16x8xbf16>, vector<2x8x8xf32> -> vector<2x8x8xf32>
    "tpu.trace_stop"() : () -> ()
    %206 = vector.shape_cast %205 : vector<2x8x8xf32> to vector<16x8xf32>
    %207 = arith.truncf %206 : vector<16x8xf32> to vector<16x8xbf16>
    %208 = vector.extract_strided_slice %165 {offsets = [8, 0], sizes = [8, 32], strides = [1, 1]} : vector<32x32xbf16> to vector<8x32xbf16>
    %cst_78 = arith.constant dense<0.000000e+00> : vector<16x32xf32>
    %209 = tpu.matmul %207, %208, %cst_78 {dimension_numbers = #tpu.dot_dimension_numbers<[1], [0], [0], [1], [0, 0, 1, 1], [], []>} : vector<16x8xbf16>, vector<8x32xbf16>, vector<16x32xf32> -> vector<16x32xf32>
    %210 = arith.addf %189, %209 : vector<16x32xf32>
    %211 = vector.extract_strided_slice %159 {offsets = [0, 0, 16], sizes = [2, 8, 8], strides = [1, 1, 1]} : vector<2x8x32xbf16> to vector<2x8x8xbf16>
    %212 = vector.extract_strided_slice %161 {offsets = [0, 0, 16], sizes = [2, 16, 8], strides = [1, 1, 1]} : vector<2x16x32xbf16> to vector<2x16x8xbf16>
    "tpu.trace_start"() <{level = 10 : i32, message = "bqd,bkd->bqk"}> : () -> ()
    %cst_79 = arith.constant dense<0.000000e+00> : vector<2x8x16xf32>
    %213 = tpu.matmul %211, %212, %cst_79 {dimension_numbers = #tpu.dot_dimension_numbers<[2], [2], [1], [1], [0, 0, 0, 1, 1, 1], [0], [0]>} : vector<2x8x8xbf16>, vector<2x16x8xbf16>, vector<2x8x16xf32> -> vector<2x8x16xf32>
    "tpu.trace_stop"() : () -> ()
    %cst_80 = arith.constant dense<0xFF800000> : vector<2x8xf32>
    %214 = vector.multi_reduction <maximumf>, %213, %cst_80 [2] : vector<2x8x16xf32> to vector<2x8xf32>
    %215 = vector.shape_cast %214 : vector<2x8xf32> to vector<2x8x1xf32>
    %216 = vector.broadcast %215 : vector<2x8x1xf32> to vector<2x8x16xf32>
    %217 = arith.subf %213, %216 : vector<2x8x16xf32>
    %218 = math.exp %217 : vector<2x8x16xf32>
    %cst_81 = arith.constant dense<0.000000e+00> : vector<2x8xf32>
    %219 = vector.multi_reduction <add>, %218, %cst_81 [2] : vector<2x8x16xf32> to vector<2x8xf32>
    %220 = vector.shape_cast %219 : vector<2x8xf32> to vector<2x8x1xf32>
    %221 = tpu.reciprocal %220 {approx = true} : vector<2x8x1xf32> -> vector<2x8x1xf32>
    %222 = vector.broadcast %221 : vector<2x8x1xf32> to vector<2x8x16xf32>
    %223 = arith.mulf %218, %222 : vector<2x8x16xf32>
    %224 = arith.truncf %223 : vector<2x8x16xf32> to vector<2x8x16xbf16>
    %225 = vector.extract_strided_slice %163 {offsets = [0, 0, 16], sizes = [2, 16, 8], strides = [1, 1, 1]} : vector<2x16x32xbf16> to vector<2x16x8xbf16>
    "tpu.trace_start"() <{level = 10 : i32, message = "bqk,bkd->bqd"}> : () -> ()
    %cst_82 = arith.constant dense<0.000000e+00> : vector<2x8x8xf32>
    %226 = tpu.matmul %224, %225, %cst_82 {dimension_numbers = #tpu.dot_dimension_numbers<[2], [1], [1], [2], [0, 0, 0, 1, 1, 2], [0], [0]>} : vector<2x8x16xbf16>, vector<2x16x8xbf16>, vector<2x8x8xf32> -> vector<2x8x8xf32>
    "tpu.trace_stop"() : () -> ()
    %227 = vector.shape_cast %226 : vector<2x8x8xf32> to vector<16x8xf32>
    %228 = arith.truncf %227 : vector<16x8xf32> to vector<16x8xbf16>
    %229 = vector.extract_strided_slice %165 {offsets = [16, 0], sizes = [8, 32], strides = [1, 1]} : vector<32x32xbf16> to vector<8x32xbf16>
    %cst_83 = arith.constant dense<0.000000e+00> : vector<16x32xf32>
    %230 = tpu.matmul %228, %229, %cst_83 {dimension_numbers = #tpu.dot_dimension_numbers<[1], [0], [0], [1], [0, 0, 1, 1], [], []>} : vector<16x8xbf16>, vector<8x32xbf16>, vector<16x32xf32> -> vector<16x32xf32>
    %231 = arith.addf %210, %230 : vector<16x32xf32>
    %232 = vector.extract_strided_slice %159 {offsets = [0, 0, 24], sizes = [2, 8, 8], strides = [1, 1, 1]} : vector<2x8x32xbf16> to vector<2x8x8xbf16>
    %233 = vector.extract_strided_slice %161 {offsets = [0, 0, 24], sizes = [2, 16, 8], strides = [1, 1, 1]} : vector<2x16x32xbf16> to vector<2x16x8xbf16>
    "tpu.trace_start"() <{level = 10 : i32, message = "bqd,bkd->bqk"}> : () -> ()
    %cst_84 = arith.constant dense<0.000000e+00> : vector<2x8x16xf32>
    %234 = tpu.matmul %232, %233, %cst_84 {dimension_numbers = #tpu.dot_dimension_numbers<[2], [2], [1], [1], [0, 0, 0, 1, 1, 1], [0], [0]>} : vector<2x8x8xbf16>, vector<2x16x8xbf16>, vector<2x8x16xf32> -> vector<2x8x16xf32>
    "tpu.trace_stop"() : () -> ()
    %cst_85 = arith.constant dense<0xFF800000> : vector<2x8xf32>
    %235 = vector.multi_reduction <maximumf>, %234, %cst_85 [2] : vector<2x8x16xf32> to vector<2x8xf32>
    %236 = vector.shape_cast %235 : vector<2x8xf32> to vector<2x8x1xf32>
    %237 = vector.broadcast %236 : vector<2x8x1xf32> to vector<2x8x16xf32>
    %238 = arith.subf %234, %237 : vector<2x8x16xf32>
    %239 = math.exp %238 : vector<2x8x16xf32>
    %cst_86 = arith.constant dense<0.000000e+00> : vector<2x8xf32>
    %240 = vector.multi_reduction <add>, %239, %cst_86 [2] : vector<2x8x16xf32> to vector<2x8xf32>
    %241 = vector.shape_cast %240 : vector<2x8xf32> to vector<2x8x1xf32>
    %242 = tpu.reciprocal %241 {approx = true} : vector<2x8x1xf32> -> vector<2x8x1xf32>
    %243 = vector.broadcast %242 : vector<2x8x1xf32> to vector<2x8x16xf32>
    %244 = arith.mulf %239, %243 : vector<2x8x16xf32>
    %245 = arith.truncf %244 : vector<2x8x16xf32> to vector<2x8x16xbf16>
    %246 = vector.extract_strided_slice %163 {offsets = [0, 0, 24], sizes = [2, 16, 8], strides = [1, 1, 1]} : vector<2x16x32xbf16> to vector<2x16x8xbf16>
    "tpu.trace_start"() <{level = 10 : i32, message = "bqk,bkd->bqd"}> : () -> ()
    %cst_87 = arith.constant dense<0.000000e+00> : vector<2x8x8xf32>
    %247 = tpu.matmul %245, %246, %cst_87 {dimension_numbers = #tpu.dot_dimension_numbers<[2], [1], [1], [2], [0, 0, 0, 1, 1, 2], [0], [0]>} : vector<2x8x16xbf16>, vector<2x16x8xbf16>, vector<2x8x8xf32> -> vector<2x8x8xf32>
    "tpu.trace_stop"() : () -> ()
    %248 = vector.shape_cast %247 : vector<2x8x8xf32> to vector<16x8xf32>
    %249 = arith.truncf %248 : vector<16x8xf32> to vector<16x8xbf16>
    %250 = vector.extract_strided_slice %165 {offsets = [24, 0], sizes = [8, 32], strides = [1, 1]} : vector<32x32xbf16> to vector<8x32xbf16>
    %cst_88 = arith.constant dense<0.000000e+00> : vector<16x32xf32>
    %251 = tpu.matmul %249, %250, %cst_88 {dimension_numbers = #tpu.dot_dimension_numbers<[1], [0], [0], [1], [0, 0, 1, 1], [], []>} : vector<16x8xbf16>, vector<8x32xbf16>, vector<16x32xf32> -> vector<16x32xf32>
    %252 = arith.addf %231, %251 : vector<16x32xf32>
    %253 = arith.addf %140, %252 : vector<16x32xf32>
    %c0_89 = arith.constant 0 : index
    %c0_90 = arith.constant 0 : index
    %c0_91 = arith.constant 0 : index
    %254 = vector.load %arg19[%c0_89, %c0_90, %c0_91] : memref<1x1x32xf32, #tpu.memory_space<vmem>>, vector<1x1x32xf32>
    %255 = vector.shape_cast %254 : vector<1x1x32xf32> to vector<1x32xf32>
    %c0_92 = arith.constant 0 : index
    %c0_93 = arith.constant 0 : index
    %c0_94 = arith.constant 0 : index
    %256 = vector.load %arg20[%c0_92, %c0_93, %c0_94] : memref<1x1x32xf32, #tpu.memory_space<vmem>>, vector<1x1x32xf32>
    %257 = vector.shape_cast %256 : vector<1x1x32xf32> to vector<1x32xf32>
    %cst_95 = arith.constant dense<0.000000e+00> : vector<16xf32>
    %258 = vector.multi_reduction <add>, %253, %cst_95 [1] : vector<16x32xf32> to vector<16xf32>
    %259 = vector.shape_cast %258 : vector<16xf32> to vector<16x1xf32>
    %cst_96 = arith.constant 3.200000e+01 : f32
    %260 = vector.broadcast %cst_96 : f32 to vector<16x1xf32>
    %261 = arith.divf %259, %260 : vector<16x1xf32>
    %262 = vector.broadcast %261 : vector<16x1xf32> to vector<16x32xf32>
    %263 = arith.subf %253, %262 : vector<16x32xf32>
    %264 = arith.mulf %263, %263 : vector<16x32xf32>
    %cst_97 = arith.constant dense<0.000000e+00> : vector<16xf32>
    %265 = vector.multi_reduction <add>, %264, %cst_97 [1] : vector<16x32xf32> to vector<16xf32>
    %266 = vector.shape_cast %265 : vector<16xf32> to vector<16x1xf32>
    %cst_98 = arith.constant 3.200000e+01 : f32
    %267 = vector.broadcast %cst_98 : f32 to vector<16x1xf32>
    %268 = arith.divf %266, %267 : vector<16x1xf32>
    %269 = vector.broadcast %261 : vector<16x1xf32> to vector<16x32xf32>
    %270 = arith.subf %253, %269 : vector<16x32xf32>
    %cst_99 = arith.constant 9.99999974E-6 : f32
    %271 = vector.broadcast %cst_99 : f32 to vector<16x1xf32>
    %272 = arith.addf %268, %271 : vector<16x1xf32>
    %273 = math.rsqrt %272 : vector<16x1xf32>
    %274 = vector.broadcast %273 : vector<16x1xf32> to vector<16x32xf32>
    %275 = arith.mulf %270, %274 : vector<16x32xf32>
    %276 = vector.broadcast %255 : vector<1x32xf32> to vector<16x32xf32>
    %277 = arith.mulf %275, %276 : vector<16x32xf32>
    %278 = vector.broadcast %257 : vector<1x32xf32> to vector<16x32xf32>
    %279 = arith.addf %277, %278 : vector<16x32xf32>
    %280 = arith.truncf %279 : vector<16x32xf32> to vector<16x32xbf16>
    %c0_100 = arith.constant 0 : index
    %c0_101 = arith.constant 0 : index
    %c0_102 = arith.constant 0 : index
    %281 = vector.load %arg13[%c0_100, %c0_101, %c0_102] : memref<1x32x64xbf16, #tpu.memory_space<vmem>>, vector<1x32x64xbf16>
    %282 = vector.shape_cast %281 : vector<1x32x64xbf16> to vector<32x64xbf16>
    %cst_103 = arith.constant dense<0.000000e+00> : vector<16x64xf32>
    %283 = tpu.matmul %280, %282, %cst_103 {dimension_numbers = #tpu.dot_dimension_numbers<[1], [0], [0], [1], [0, 0, 1, 1], [], []>} : vector<16x32xbf16>, vector<32x64xbf16>, vector<16x64xf32> -> vector<16x64xf32>
    %c0_104 = arith.constant 0 : index
    %c0_105 = arith.constant 0 : index
    %c0_106 = arith.constant 0 : index
    %284 = vector.load %arg14[%c0_104, %c0_105, %c0_106] : memref<1x1x64xf32, #tpu.memory_space<vmem>>, vector<1x1x64xf32>
    %285 = vector.shape_cast %284 : vector<1x1x64xf32> to vector<1x64xf32>
    %286 = vector.broadcast %285 : vector<1x64xf32> to vector<16x64xf32>
    %287 = arith.addf %283, %286 : vector<16x64xf32>
    %cst_107 = arith.constant 0.000000e+00 : f32
    %288 = vector.broadcast %cst_107 : f32 to vector<16x64xf32>
    %289 = arith.maximumf %287, %288 : vector<16x64xf32>
    %290 = arith.truncf %289 : vector<16x64xf32> to vector<16x64xbf16>
    %c0_108 = arith.constant 0 : index
    %c0_109 = arith.constant 0 : index
    %c0_110 = arith.constant 0 : index
    %291 = vector.load %arg15[%c0_108, %c0_109, %c0_110] : memref<1x64x32xbf16, #tpu.memory_space<vmem>>, vector<1x64x32xbf16>
    %292 = vector.shape_cast %291 : vector<1x64x32xbf16> to vector<64x32xbf16>
    %cst_111 = arith.constant dense<0.000000e+00> : vector<16x32xf32>
    %293 = tpu.matmul %290, %292, %cst_111 {dimension_numbers = #tpu.dot_dimension_numbers<[1], [0], [0], [1], [0, 0, 1, 1], [], []>} : vector<16x64xbf16>, vector<64x32xbf16>, vector<16x32xf32> -> vector<16x32xf32>
    %c0_112 = arith.constant 0 : index
    %c0_113 = arith.constant 0 : index
    %c0_114 = arith.constant 0 : index
    %294 = vector.load %arg16[%c0_112, %c0_113, %c0_114] : memref<1x1x32xf32, #tpu.memory_space<vmem>>, vector<1x1x32xf32>
    %295 = vector.shape_cast %294 : vector<1x1x32xf32> to vector<1x32xf32>
    %296 = vector.broadcast %295 : vector<1x32xf32> to vector<16x32xf32>
    %297 = arith.addf %293, %296 : vector<16x32xf32>
    %298 = arith.addf %279, %297 : vector<16x32xf32>
    %c0_115 = arith.constant 0 : index
    %c0_116 = arith.constant 0 : index
    %c0_117 = arith.constant 0 : index
    %299 = vector.load %arg21[%c0_115, %c0_116, %c0_117] : memref<1x1x32xf32, #tpu.memory_space<vmem>>, vector<1x1x32xf32>
    %300 = vector.shape_cast %299 : vector<1x1x32xf32> to vector<1x32xf32>
    %c0_118 = arith.constant 0 : index
    %c0_119 = arith.constant 0 : index
    %c0_120 = arith.constant 0 : index
    %301 = vector.load %arg22[%c0_118, %c0_119, %c0_120] : memref<1x1x32xf32, #tpu.memory_space<vmem>>, vector<1x1x32xf32>
    %302 = vector.shape_cast %301 : vector<1x1x32xf32> to vector<1x32xf32>
    %cst_121 = arith.constant dense<0.000000e+00> : vector<16xf32>
    %303 = vector.multi_reduction <add>, %298, %cst_121 [1] : vector<16x32xf32> to vector<16xf32>
    %304 = vector.shape_cast %303 : vector<16xf32> to vector<16x1xf32>
    %cst_122 = arith.constant 3.200000e+01 : f32
    %305 = vector.broadcast %cst_122 : f32 to vector<16x1xf32>
    %306 = arith.divf %304, %305 : vector<16x1xf32>
    %307 = vector.broadcast %306 : vector<16x1xf32> to vector<16x32xf32>
    %308 = arith.subf %298, %307 : vector<16x32xf32>
    %309 = arith.mulf %308, %308 : vector<16x32xf32>
    %cst_123 = arith.constant dense<0.000000e+00> : vector<16xf32>
    %310 = vector.multi_reduction <add>, %309, %cst_123 [1] : vector<16x32xf32> to vector<16xf32>
    %311 = vector.shape_cast %310 : vector<16xf32> to vector<16x1xf32>
    %cst_124 = arith.constant 3.200000e+01 : f32
    %312 = vector.broadcast %cst_124 : f32 to vector<16x1xf32>
    %313 = arith.divf %311, %312 : vector<16x1xf32>
    %314 = vector.broadcast %306 : vector<16x1xf32> to vector<16x32xf32>
    %315 = arith.subf %298, %314 : vector<16x32xf32>
    %cst_125 = arith.constant 9.99999974E-6 : f32
    %316 = vector.broadcast %cst_125 : f32 to vector<16x1xf32>
    %317 = arith.addf %313, %316 : vector<16x1xf32>
    %318 = math.rsqrt %317 : vector<16x1xf32>
    %319 = vector.broadcast %318 : vector<16x1xf32> to vector<16x32xf32>
    %320 = arith.mulf %315, %319 : vector<16x32xf32>
    %321 = vector.broadcast %300 : vector<1x32xf32> to vector<16x32xf32>
    %322 = arith.mulf %320, %321 : vector<16x32xf32>
    %323 = vector.broadcast %302 : vector<1x32xf32> to vector<16x32xf32>
    %324 = arith.addf %322, %323 : vector<16x32xf32>
    %325 = vector.shape_cast %324 : vector<16x32xf32> to vector<2x8x32xf32>
    %c0_126 = arith.constant 0 : index
    %c0_127 = arith.constant 0 : index
    %c0_128 = arith.constant 0 : index
    %326 = vector.load %arg26[%c0_126, %c0_127, %c0_128] : memref<2x8x32xf32, #tpu.memory_space<vmem>>, vector<2x8x32xf32>
    tpu.vector_store %arg26[%c0_126, %c0_127, %c0_128], %325 {strides = array<i32>} : memref<2x8x32xf32, #tpu.memory_space<vmem>>, vector<2x8x32xf32>,
    %c0_129 = arith.constant 0 : index
    %c0_130 = arith.constant 0 : index
    %c0_131 = arith.constant 0 : index
    %c0_132 = arith.constant 0 : index
    %327 = vector.load %arg25[%c0_129, %c0_130, %c0_131, %c0_132] : memref<1x2x8x32xf32, #tpu.memory_space<vmem>>, vector<1x2x8x32xf32>
    %328 = vector.shape_cast %327 : vector<1x2x8x32xf32> to vector<2x8x32xf32>
    %329 = vector.shape_cast %325 : vector<2x8x32xf32> to vector<1x2x8x32xf32>
    tpu.vector_store %arg25[%c0_129, %c0_130, %c0_131, %c0_132], %329 {strides = array<i32>} : memref<1x2x8x32xf32, #tpu.memory_space<vmem>>, vector<1x2x8x32xf32>,
    %c1_i32 = arith.constant 1 : i32
    %330 = arith.cmpi eq, %arg0, %c1_i32 : i32
    %331 = arith.extui %330 : i1 to i32
    %c0_i32_133 = arith.constant 0 : i32
    %332 = arith.cmpi ne, %331, %c0_i32_133 : i32
    scf.if %332 {
      %c0_134 = arith.constant 0 : index
      %c0_135 = arith.constant 0 : index
      %333 = vector.load %arg23[%c0_134, %c0_135] : memref<1x32xf32, #tpu.memory_space<vmem>>, vector<1x32xf32>
      %c0_136 = arith.constant 0 : index
      %c0_137 = arith.constant 0 : index
      %334 = vector.load %arg24[%c0_136, %c0_137] : memref<1x32xf32, #tpu.memory_space<vmem>>, vector<1x32xf32>
      %cst_138 = arith.constant dense<0.000000e+00> : vector<16xf32>
      %335 = vector.multi_reduction <add>, %324, %cst_138 [1] : vector<16x32xf32> to vector<16xf32>
      %336 = vector.shape_cast %335 : vector<16xf32> to vector<16x1xf32>
      %cst_139 = arith.constant 3.200000e+01 : f32
      %337 = vector.broadcast %cst_139 : f32 to vector<16x1xf32>
      %338 = arith.divf %336, %337 : vector<16x1xf32>
      %339 = vector.broadcast %338 : vector<16x1xf32> to vector<16x32xf32>
      %340 = arith.subf %324, %339 : vector<16x32xf32>
      %341 = arith.mulf %340, %340 : vector<16x32xf32>
      %cst_140 = arith.constant dense<0.000000e+00> : vector<16xf32>
      %342 = vector.multi_reduction <add>, %341, %cst_140 [1] : vector<16x32xf32> to vector<16xf32>
      %343 = vector.shape_cast %342 : vector<16xf32> to vector<16x1xf32>
      %cst_141 = arith.constant 3.200000e+01 : f32
      %344 = vector.broadcast %cst_141 : f32 to vector<16x1xf32>
      %345 = arith.divf %343, %344 : vector<16x1xf32>
      %346 = vector.broadcast %338 : vector<16x1xf32> to vector<16x32xf32>
      %347 = arith.subf %324, %346 : vector<16x32xf32>
      %cst_142 = arith.constant 9.99999974E-6 : f32
      %348 = vector.broadcast %cst_142 : f32 to vector<16x1xf32>
      %349 = arith.addf %345, %348 : vector<16x1xf32>
      %350 = math.rsqrt %349 : vector<16x1xf32>
      %351 = vector.broadcast %350 : vector<16x1xf32> to vector<16x32xf32>
      %352 = arith.mulf %347, %351 : vector<16x32xf32>
      %353 = vector.broadcast %333 : vector<1x32xf32> to vector<16x32xf32>
      %354 = arith.mulf %352, %353 : vector<16x32xf32>
      %355 = vector.broadcast %334 : vector<1x32xf32> to vector<16x32xf32>
      %356 = arith.addf %354, %355 : vector<16x32xf32>
      %357 = vector.shape_cast %356 : vector<16x32xf32> to vector<2x8x32xf32>
      %c0_143 = arith.constant 0 : index
      %c0_144 = arith.constant 0 : index
      %c0_145 = arith.constant 0 : index
      %c0_146 = arith.constant 0 : index
      %358 = vector.load %arg25[%c0_143, %c0_144, %c0_145, %c0_146] : memref<1x2x8x32xf32, #tpu.memory_space<vmem>>, vector<1x2x8x32xf32>
      %359 = vector.shape_cast %358 : vector<1x2x8x32xf32> to vector<2x8x32xf32>
      %360 = vector.shape_cast %357 : vector<2x8x32xf32> to vector<1x2x8x32xf32>
      tpu.vector_store %arg25[%c0_143, %c0_144, %c0_145, %c0_146], %360 {strides = array<i32>} : memref<1x2x8x32xf32, #tpu.memory_space<vmem>>, vector<1x2x8x32xf32>,
    } else {
    }
    return
  }
  func.func @transform_0(%arg0: i32) -> (i32, i32, i32) {
    %c0_i32 = arith.constant 0 : i32
    %c0_i32_0 = arith.constant 0 : i32
    %c0_i32_1 = arith.constant 0 : i32
    %c0_i32_2 = arith.constant 0 : i32
    return %c0_i32, %c0_i32_0, %c0_i32_1 : i32, i32, i32
  }
  func.func @transform_1(%arg0: i32) -> (i32, i32, i32) {
    %c0_i32 = arith.constant 0 : i32
    %c0_i32_0 = arith.constant 0 : i32
    %c0_i32_1 = arith.constant 0 : i32
    %c0_i32_2 = arith.constant 0 : i32
    return %c0_i32, %c0_i32_0, %c0_i32_1 : i32, i32, i32
  }
  func.func @transform_2(%arg0: i32) -> (i32, i32, i32) {
    %c0_i32 = arith.constant 0 : i32
    %c0_i32_0 = arith.constant 0 : i32
    %c0_i32_1 = arith.constant 0 : i32
    return %arg0, %c0_i32, %c0_i32_0 : i32, i32, i32
  }
  func.func @transform_3(%arg0: i32) -> (i32, i32, i32) {
    %c0_i32 = arith.constant 0 : i32
    %c0_i32_0 = arith.constant 0 : i32
    %c0_i32_1 = arith.constant 0 : i32
    return %arg0, %c0_i32, %c0_i32_0 : i32, i32, i32
  }
  func.func @transform_4(%arg0: i32) -> (i32, i32, i32) {
    %c0_i32 = arith.constant 0 : i32
    %c0_i32_0 = arith.constant 0 : i32
    %c0_i32_1 = arith.constant 0 : i32
    return %arg0, %c0_i32, %c0_i32_0 : i32, i32, i32
  }
  func.func @transform_5(%arg0: i32) -> (i32, i32, i32) {
    %c0_i32 = arith.constant 0 : i32
    %c0_i32_0 = arith.constant 0 : i32
    %c0_i32_1 = arith.constant 0 : i32
    return %arg0, %c0_i32, %c0_i32_0 : i32, i32, i32
  }
  func.func @transform_6(%arg0: i32) -> (i32, i32, i32) {
    %c0_i32 = arith.constant 0 : i32
    %c0_i32_0 = arith.constant 0 : i32
    %c0_i32_1 = arith.constant 0 : i32
    return %arg0, %c0_i32, %c0_i32_0 : i32, i32, i32
  }
  func.func @transform_7(%arg0: i32) -> (i32, i32, i32) {
    %c0_i32 = arith.constant 0 : i32
    %c0_i32_0 = arith.constant 0 : i32
    %c0_i32_1 = arith.constant 0 : i32
    return %arg0, %c0_i32, %c0_i32_0 : i32, i32, i32
  }
  func.func @transform_8(%arg0: i32) -> (i32, i32, i32) {
    %c0_i32 = arith.constant 0 : i32
    %c0_i32_0 = arith.constant 0 : i32
    %c0_i32_1 = arith.constant 0 : i32
    return %arg0, %c0_i32, %c0_i32_0 : i32, i32, i32
  }
  func.func @transform_9(%arg0: i32) -> (i32, i32, i32) {
    %c0_i32 = arith.constant 0 : i32
    %c0_i32_0 = arith.constant 0 : i32
    %c0_i32_1 = arith.constant 0 : i32
    return %arg0, %c0_i32, %c0_i32_0 : i32, i32, i32
  }
  func.func @transform_10(%arg0: i32) -> (i32, i32, i32) {
    %c0_i32 = arith.constant 0 : i32
    %c0_i32_0 = arith.constant 0 : i32
    %c0_i32_1 = arith.constant 0 : i32
    return %arg0, %c0_i32, %c0_i32_0 : i32, i32, i32
  }
  func.func @transform_11(%arg0: i32) -> (i32, i32, i32) {
    %c0_i32 = arith.constant 0 : i32
    %c0_i32_0 = arith.constant 0 : i32
    %c0_i32_1 = arith.constant 0 : i32
    return %arg0, %c0_i32, %c0_i32_0 : i32, i32, i32
  }
  func.func @transform_12(%arg0: i32) -> (i32, i32, i32) {
    %c0_i32 = arith.constant 0 : i32
    %c0_i32_0 = arith.constant 0 : i32
    %c0_i32_1 = arith.constant 0 : i32
    return %arg0, %c0_i32, %c0_i32_0 : i32, i32, i32
  }
  func.func @transform_13(%arg0: i32) -> (i32, i32, i32) {
    %c0_i32 = arith.constant 0 : i32
    %c0_i32_0 = arith.constant 0 : i32
    %c0_i32_1 = arith.constant 0 : i32
    return %arg0, %c0_i32, %c0_i32_0 : i32, i32, i32
  }
  func.func @transform_14(%arg0: i32) -> (i32, i32, i32) {
    %c0_i32 = arith.constant 0 : i32
    %c0_i32_0 = arith.constant 0 : i32
    %c0_i32_1 = arith.constant 0 : i32
    return %arg0, %c0_i32, %c0_i32_0 : i32, i32, i32
  }
  func.func @transform_15(%arg0: i32) -> (i32, i32, i32) {
    %c0_i32 = arith.constant 0 : i32
    %c0_i32_0 = arith.constant 0 : i32
    %c0_i32_1 = arith.constant 0 : i32
    return %arg0, %c0_i32, %c0_i32_0 : i32, i32, i32
  }
  func.func @transform_16(%arg0: i32) -> (i32, i32, i32) {
    %c0_i32 = arith.constant 0 : i32
    %c0_i32_0 = arith.constant 0 : i32
    %c0_i32_1 = arith.constant 0 : i32
    return %arg0, %c0_i32, %c0_i32_0 : i32, i32, i32
  }
  func.func @transform_17(%arg0: i32) -> (i32, i32, i32) {
    %c0_i32 = arith.constant 0 : i32
    %c0_i32_0 = arith.constant 0 : i32
    %c0_i32_1 = arith.constant 0 : i32
    return %arg0, %c0_i32, %c0_i32_0 : i32, i32, i32
  }
  func.func @transform_18(%arg0: i32) -> (i32, i32, i32) {
    %c0_i32 = arith.constant 0 : i32
    %c0_i32_0 = arith.constant 0 : i32
    %c0_i32_1 = arith.constant 0 : i32
    return %arg0, %c0_i32, %c0_i32_0 : i32, i32, i32
  }
  func.func @transform_19(%arg0: i32) -> (i32, i32, i32) {
    %c0_i32 = arith.constant 0 : i32
    %c0_i32_0 = arith.constant 0 : i32
    %c0_i32_1 = arith.constant 0 : i32
    return %arg0, %c0_i32, %c0_i32_0 : i32, i32, i32
  }
  func.func @transform_20(%arg0: i32) -> (i32, i32, i32) {
    %c0_i32 = arith.constant 0 : i32
    %c0_i32_0 = arith.constant 0 : i32
    %c0_i32_1 = arith.constant 0 : i32
    return %arg0, %c0_i32, %c0_i32_0 : i32, i32, i32
  }
  func.func @transform_21(%arg0: i32) -> (i32, i32, i32) {
    %c0_i32 = arith.constant 0 : i32
    %c0_i32_0 = arith.constant 0 : i32
    %c0_i32_1 = arith.constant 0 : i32
    return %arg0, %c0_i32, %c0_i32_0 : i32, i32, i32
  }
  func.func @transform_22(%arg0: i32) -> (i32, i32) {
    %c0_i32 = arith.constant 0 : i32
    %c0_i32_0 = arith.constant 0 : i32
    %c0_i32_1 = arith.constant 0 : i32
    return %c0_i32, %c0_i32_0 : i32, i32
  }
  func.func @transform_23(%arg0: i32) -> (i32, i32) {
    %c0_i32 = arith.constant 0 : i32
    %c0_i32_0 = arith.constant 0 : i32
    %c0_i32_1 = arith.constant 0 : i32
    return %c0_i32, %c0_i32_0 : i32, i32
  }
  func.func @transform_24(%arg0: i32) -> (i32, i32, i32, i32) {
    %c0_i32 = arith.constant 0 : i32
    %c0_i32_0 = arith.constant 0 : i32
    %c0_i32_1 = arith.constant 0 : i32
    %c0_i32_2 = arith.constant 0 : i32
    %c0_i32_3 = arith.constant 0 : i32
    return %c0_i32, %c0_i32_0, %c0_i32_1, %c0_i32_2 : i32, i32, i32, i32
  }
}

</mosaic_0001>

<bundles_post_ra>
// kernel: tpu_custom_call.1
= control target key start
LH: loop header
LB: loop body
LE: loop exit
PB: predicated region body
PF: predicated region fallthrough
CT: control target
= control target key end

     0   :  { %s7564_s0 = inlined_call_operand.hbm [shape: f32[2,8,32], index: 0, kind: input, shape index: {}]   ;;  %s7565_s1 = inlined_call_operand.hbm [shape: f32[2,16,32], index: 1, kind: input, shape index: {}]   ;;  %s7566_s2 = inlined_call_operand.hbm [shape: bf16[2,32,96], index: 2, kind: input, shape index: {}]   ;;  %s7567_s3 = inlined_call_operand.hbm [shape: f32[2,1,96], index: 3, kind: input, shape index: {}]   ;;  %s7568_s4 = inlined_call_operand.hbm [shape: bf16[2,32,32], index: 4, kind: input, shape index: {}]   ;;  %s7569_s5 = inlined_call_operand.hbm [shape: f32[2,1,32], index: 5, kind: input, shape index: {}]   ;;  %s7570_s6 = inlined_call_operand.hbm [shape: bf16[2,32,32], index: 6, kind: input, shape index: {}]   ;;  %s7571_s7 = inlined_call_operand.hbm [shape: f32[2,1,32], index: 7, kind: input, shape index: {}]   ;;  %s7572_s8 = inlined_call_operand.hbm [shape: bf16[2,32,64], index: 8, kind: input, shape index: {}]   ;;  %s7573_s9 = inlined_call_operand.hbm [shape: f32[2,1,64], index: 9, kind: input, shape index: {}]   ;;  %s7574_s10 = inlined_call_operand.hbm [shape: bf16[2,32,32], index: 10, kind: input, shape index: {}]   ;;  %s7575_s11 = inlined_call_operand.hbm [shape: f32[2,1,32], index: 11, kind: input, shape index: {}]   ;;  %s7576_s12 = inlined_call_operand.hbm [shape: bf16[2,32,64], index: 12, kind: input, shape index: {}]   ;;  %s7577_s13 = inlined_call_operand.hbm [shape: f32[2,1,64], index: 13, kind: input, shape index: {}]   ;;  %s7578_s14 = inlined_call_operand.hbm [shape: bf16[2,64,32], index: 14, kind: input, shape index: {}]   ;;  %s7579_s15 = inlined_call_operand.hbm [shape: f32[2,1,32], index: 15, kind: input, shape index: {}]   ;;  %s7580_s16 = inlined_call_operand.hbm [shape: f32[2,1,32], index: 16, kind: input, shape index: {}]   ;;  %s7581_s17 = inlined_call_operand.hbm [shape: f32[2,1,32], index: 17, kind: input, shape index: {}]   ;;  %s7582_s18 = inlined_call_operand.hbm [shape: f32[2,1,32], index: 18, kind: input, shape index: {}]   ;;  %s7583_s19 = inlined_call_operand.hbm [shape: f32[2,1,32], index: 19, kind: input, shape index: {}]   ;;  %s7584_s20 = inlined_call_operand.hbm [shape: f32[2,1,32], index: 20, kind: input, shape index: {}]   ;;  %s7585_s21 = inlined_call_operand.hbm [shape: f32[2,1,32], index: 21, kind: input, shape index: {}]   ;;  %s7586_s22 = inlined_call_operand.hbm [shape: f32[1,32], index: 22, kind: input, shape index: {}]   ;;  %s7587_s23 = inlined_call_operand.hbm [shape: f32[1,32], index: 23, kind: input, shape index: {}]   ;;  %s7588_s24 = inlined_call_operand.hbm [shape: f32[1,2,8,32], index: 24, kind: output, shape index: {}]  }
   0x1   :  { %7634 = sst [smem:[#allocation45_spill]] %s7564_s0 }
   0x2   :  { %7635 = sst [smem:[#allocation46_spill]] %s7565_s1 }
   0x3   :  { %7636 = sst [smem:[#allocation47_spill]] %s7566_s2 }
   0x4   :  { %7637 = sst [smem:[#allocation48_spill]] %s7567_s3 }
   0x5   :  { %7638 = sst [smem:[#allocation49_spill]] %s7568_s4 }
   0x6   :  { %7639 = sst [smem:[#allocation50_spill]] %s7569_s5 }
   0x7   :  { %7640 = sst [smem:[#allocation51_spill]] %s7570_s6 }
   0x8   :  { %7641 = sst [smem:[#allocation52_spill]] %s7571_s7 }
   0x9   :  { %7642 = sst [smem:[#allocation53_spill]] %s7572_s8 }
   0xa   :  { %7643 = sst [smem:[#allocation54_spill]] %s7573_s9 }
   0xb   :  { %7644 = sst [smem:[#allocation55_spill]] %s7574_s10 }
   0xc   :  { %7645 = sst [smem:[#allocation56_spill]] %s7579_s15 }
   0xd   :  { %7646 = sst [smem:[#allocation57_spill]] %s7580_s16 }
   0xe   :  { %7647 = sst [smem:[#allocation58_spill]] %s7581_s17 }
   0xf   :  { %7648 = sst [smem:[#allocation59_spill]] %s7582_s18 }
  0x10   :  { %7649 = sst [smem:[#allocation60_spill]] %s7583_s19 }
  0x11   :  { %7650 = sst [smem:[#allocation61_spill]] %s7584_s20 }
  0x12   :  { %7651 = sst [smem:[#allocation62_spill]] %s7585_s21 }
  0x13   :  { %7652 = sst [smem:[#allocation63_spill]] %s7586_s22 }
  0x14   :  { %7653 = sst [smem:[#allocation64_spill]] %s7587_s23 }
  0x15   :  { %7654 = sst [smem:[#allocation65_spill]] %s7588_s24 }
  0x16   :  { %29 = vsyncpa [#allocation4], 0 }
  0x17   :  { %30 = vsyncpa [#allocation7], 0 }
  0x18   :  { %31 = vsyncpa [#allocation30], 0 }
  0x19   :  { %32 = vsyncpa [#allocation5], 0  ;;  %s6284_s5 = smov 0   ;;  %s6286_s26 = smov 0  }
  0x1a   :  { %s6288_s27 = smov 0   ;;  %s6290_s28 = smov 0  }
  0x1b LB: > { %7655 = sst [smem:[#allocation38_spill]] %s6105_s26  ;;  %s6303_s6 = sadd.s32 4294967295, %s6113_s28   ;;  %s6113_s28 = sphi %s6290_s28, %s7719_s28   ;;  %s6109_s27 = sphi %s6288_s27, %s7722_s27   ;;  %s6105_s26 = sphi %s6286_s26, %s7721_s26   ;;  %s6101_s5 = sphi %s6284_s5, %s7720_s5  }
  0x1c   : > { %7656 = sst [smem:[#allocation39_spill]] %s6109_s27  ;;  %s6306_s2 = sadd.s32 1, %s6113_s28  }
  0x1d   : > { %7657 = sst [smem:[#allocation40_spill]] %s6303_s6  ;;  %s84_s29 = ssub.s32 %s6113_s28, %s6306_s2 }
  0x1e   : > { %7658 = sst [smem:[#allocation41_spill]] %s6306_s2  ;;  %s87_s0 = sadd.s32 1, %s6109_s27 }
  0x1f   : > { %p85_p0 = scmp.eq.s32.totalorder %s84_s29, 0  ;;  %p94_p1 = scmp.ne.s32.totalorder %s6109_s27, %s6105_s26 }
  0x20   : > { %p95_p2 = scmp.eq.s32.totalorder %s6113_s28, 0  ;;  %p100_p3 = scmp.ne.s32.totalorder %s6105_s26, %s6101_s5 }
  0x21   : > { %s6316_s7 = scalar_select %p85_p0, %s6109_s27, %s87_s0  }
  0x22   : > { %p6318_p4 = por %p95_p2, %p94_p1  ;;  %p7608_p5 = scmp.eq.s32.totalorder %s6303_s6, 0 }
  0x23   : > { %7659 = sst [smem:[#allocation42_spill]] %s6316_s7  ;;  %p4610_p6 = scmp.ge.s32.totalorder %s6113_s28, 1 }
  0x24   : > { %s7660_s30 = scalar_select %p6318_p4, 1, 0 }
  0x25   : > { %p668_p7 = scmp.lt.s32.totalorder %s6113_s28, 3  ;;  %p6327_p8 = por %p7608_p5, %p100_p3 }
  0x26   : > { %s6115_s8 = smov [#allocation6]   ;;  %s6116_s5 = smov [#allocation3]  }
  0x27   : > { %s7661_s3 = scalar_select %p6327_p8, 1, 0 }
  0x28   : > { %p6332_p10 = pnand %p4610_p6, %p668_p7  ;;  %s693_s4 = sshll.u32 %s6115_s8, 4  ;;  %s6338_s4 = int_to_ptr.vmem [resolvable:$true] %s693_s4 }
  0x29   : > { %7662 = sst [smem:[#allocation43_spill]] %s7661_s3  ;;  %s680_s29 = sshll.u32 %s6116_s5, 4  ;;  %s6346_s29 = int_to_ptr.vmem [resolvable:$true] %s680_s29 }
  0x2a   : > { %s7663_s25 = scalar_select %p6332_p10, 1, 0 }
  0x2b   : > { %p5190_p11 = pneg %p6332_p10  ;;  %s6117_s0 = smov [#allocation28]  }
  0x2c   : > { %7664 = sst [smem:[#allocation44_spill]] %s7663_s25  ;;  %s6348_s7 = sshll.u32 %s6117_s0, 4  ;;  %s708_s7 = int_to_ptr.vmem [resolvable:$true] %s6348_s7 }
  0x2d   : > { %p6342_p12 = pnand %p5190_p11, %p7608_p5  ;;  %s7666_s3 = sld [smem:[#allocation46_spill]] }
  0x2f   : > { %p6358_p0 = pneg %p6342_p12 }
  0x33   : > { %s5361_s26 = scalar_lea.hbm %s7666_s3, 512 }
  0x34   : > { %p5362_p13 = scmp.ne.s32.totalorder %s7666_s3, %s5361_s26  ;;  %p5368_p3 = scmp.lt.u32.totalorder %s5361_s26, %s7666_s3 }
  0x36   : > { %p5364_p1 = pnand %p6358_p0, %p5362_p13 }
  0x38   : > { %p5365_p2 = pneg %p5364_p1 }
  0x3a   : > { %p5370_p6 = pnand %p5368_p3, %p5365_p2 }
  0x3c   : > { %5373 = shalt.err (!%p5370_p6)
}
  0x3d   : > { %s5374_s24 = scalar_lea.vmem %s6338_s4, 512  ;;  %p5382_p5 = scmp.lt.s32.totalorder %s6338_s4, %s6338_s4 }
  0x3e   : > { %p5375_p7 = scmp.ne.s32.totalorder %s6338_s4, %s5374_s24  ;;  %p5383_p8 = scmp.lt.s32.totalorder %s5374_s24, %s5374_s24 }
  0x40   : > { %p5377_p11 = pnand %p5375_p7, %p6358_p0  ;;  %p5384_p13 = por %p5383_p8, %p5382_p5 }
  0x42   : > { %p5378_p9 = pneg %p5377_p11 }
  0x44   : > { %p5385_p1 = pnand %p5384_p13, %p5378_p9 }
  0x46   : > { %5388 = shalt.err (!%p5385_p1)
}
  0x47   : > { %s6118_s2 = smov 128   ;;  %s6119_s26 = smov 8  }
  0x48   : > { %5196 = dma.hbm_to_vmem [thread:$0]  (!%p6342_p12), %s7666_s3, 512, %s6338_s4, [#allocation7], %s6118_s2, %s6118_s2, %s6119_s26  }
  0x49   : > { %s7668_s21 = sld [smem:[#allocation45_spill]] }
  0x4f   : > { %s5389_s20 = scalar_lea.hbm %s7668_s21, 256 }
  0x50   : > { %p5390_p5 = scmp.ne.s32.totalorder %s7668_s21, %s5389_s20  ;;  %p5396_p2 = scmp.lt.u32.totalorder %s5389_s20, %s7668_s21 }
  0x52   : > { %p5392_p8 = pnand %p5390_p5, %p6358_p0 }
  0x54   : > { %p5393_p9 = pneg %p5392_p8 }
  0x56   : > { %p5398_p3 = pnand %p5396_p2, %p5393_p9 }
  0x58   : > { %5401 = shalt.err (!%p5398_p3)
}
  0x59   : > { %s5402_s4 = scalar_lea.vmem %s6346_s29, 256  ;;  %p5410_p13 = scmp.lt.s32.totalorder %s6346_s29, %s6346_s29 }
  0x5a   : > { %p5403_p6 = scmp.ne.s32.totalorder %s6346_s29, %s5402_s4  ;;  %p5411_p1 = scmp.lt.s32.totalorder %s5402_s4, %s5402_s4 }
  0x5c   : > { %p5405_p7 = pnand %p5403_p6, %p6358_p0  ;;  %p5412_p5 = por %p5411_p1, %p5410_p13 }
  0x5e   : > { %p5406_p11 = pneg %p5405_p7 }
  0x60   : > { %p5413_p8 = pnand %p5412_p5, %p5406_p11 }
  0x62   : > { %5416 = shalt.err (!%p5413_p8)
}
  0x63   : > { %5193 = dma.hbm_to_vmem [thread:$0]  (!%p6342_p12), %s7668_s21, 256, %s6346_s29, [#allocation4], %s6118_s2, %s6118_s2, %s6119_s26  }
  0x64   : > { %s7669_s22 = sld [smem:[#allocation63_spill]] }
  0x6a   : > { %s5417_s25 = scalar_lea.hbm %s7669_s22, 16 }
  0x6b   : > { %p5418_p9 = scmp.ne.s32.totalorder %s7669_s22, %s5417_s25  ;;  %p5424_p6 = scmp.lt.u32.totalorder %s5417_s25, %s7669_s22 }
  0x6d   : > { %p5420_p2 = pnand %p5418_p9, %p6358_p0 }
  0x6f   : > { %p5421_p3 = pneg %p5420_p2 }
  0x71   : > { %p5426_p7 = pnand %p5424_p6, %p5421_p3 }
  0x73   : > { %5429 = shalt.err (!%p5426_p7)
}
  0x74   : > { %s5430_s4 = scalar_lea.vmem %s708_s7, 16  ;;  %s5437_s29 = scalar_lea.vmem %s708_s7, 32 }
  0x75   : > { %p5431_p11 = scmp.ne.s32.totalorder %s708_s7, %s5430_s4  ;;  %p5438_p5 = scmp.lt.s32.totalorder %s708_s7, %s708_s7 }
  0x76   : > { %p5439_p8 = scmp.lt.s32.totalorder %s5437_s29, %s5430_s4 }
  0x77   : > { %p5433_p13 = pnand %p5431_p11, %p6358_p0 }
  0x78   : > { %p5440_p10 = por %p5439_p8, %p5438_p5 }
  0x79   : > { %p5434_p1 = pneg %p5433_p13 }
  0x7b   : > { %p5441_p4 = pnand %p5440_p10, %p5434_p1 }
  0x7d   : > { %5444 = shalt.err (!%p5441_p4)
}
  0x7e   : > { %5199 = dma.hbm_to_vmem [thread:$0]  (!%p6342_p12), %s7669_s22, 16, %s708_s7, [#allocation7]  }
  0x7f   : > { %s6120_s17 = smov [#allocation29]   ;;  %s7670_s23 = sld [smem:[#allocation64_spill]] }
  0x80   : > { %s718_s18 = sshll.u32 %s6120_s17, 4  ;;  %s719_s18 = int_to_ptr.vmem [resolvable:$true] %s718_s18 }
  0x85   : > { %s5445_s25 = scalar_lea.hbm %s7670_s23, 16 }
  0x86   : > { %p5446_p9 = scmp.ne.s32.totalorder %s7670_s23, %s5445_s25  ;;  %p5452_p2 = scmp.lt.u32.totalorder %s5445_s25, %s7670_s23 }
  0x88   : > { %p5448_p4 = pnand %p5446_p9, %p6358_p0 }
  0x8a   : > { %p5449_p10 = pneg %p5448_p4 }
  0x8c   : > { %p5454_p3 = pnand %p5452_p2, %p5449_p10 }
  0x8e   : > { %5457 = shalt.err (!%p5454_p3)
}
  0x8f   : > { %s5458_s7 = scalar_lea.vmem %s719_s18, 16  ;;  %s5465_s4 = scalar_lea.vmem %s719_s18, 32 }
  0x90   : > { %p5459_p6 = scmp.ne.s32.totalorder %s719_s18, %s5458_s7  ;;  %p5466_p13 = scmp.lt.s32.totalorder %s719_s18, %s719_s18 }
  0x91   : > { %p5467_p1 = scmp.lt.s32.totalorder %s5465_s4, %s5458_s7 }
  0x92   : > { %p5461_p7 = pnand %p5459_p6, %p6358_p0 }
  0x93   : > { %p5468_p5 = por %p5467_p1, %p5466_p13 }
  0x94   : > { %p5462_p11 = pneg %p5461_p7 }
  0x96   : > { %p5469_p8 = pnand %p5468_p5, %p5462_p11 }
  0x98   : > { %5472 = shalt.err (!%p5469_p8)
}
  0x99   : > { %5202 = dma.hbm_to_vmem [thread:$0]  (!%p6342_p12), %s7670_s23, 16, %s719_s18, [#allocation30]  }
  0x9a   : > { %p4615_p9 = scmp.ge.s32.totalorder %s6113_s28, 2 }
  0x9b   : > { %s729_s6 = sand.u32 (!%p4615_p9), 1, %s6113_s28   ;;  %s6442_s26 = sand.u32 (!%p4615_p9), 1, %s6109_s27  }
  0x9c   : > { %725 = sbr.rel (%p4615_p9) target bundleno = 643 (0x283), region = 32  ;;  %s6445_s17 = sshll.u32 (!%p4615_p9), %s6442_s26, 4 }
  0x9d   : > { %s6448_s19 = sshll.u32 (!%p4615_p9), %s6113_s28, 8  ;;  %s7671_s18 = sld [smem:[#allocation47_spill]] (!%p4615_p9) }
  0x9e   : > { %s733_s8 = scalar_lea.vmem (!%p4615_p9), [#allocation8], %s6445_s17  ;;  %s6459_s0 = scalar_lea.sflag (!%p4615_p9), [#allocation4], %s729_s6 }
  0x9f   : > { %s740_s5 = sshll.u32 (!%p4615_p9), %s733_s8, 4  ;;  %p7672_p0 = scmp.ne.s32.totalorder (!%p4615_p9), %s7660_s30, 0  ;;  %s6457_s5 = int_to_ptr.vmem [resolvable:$true] %s740_s5 }
  0xa3   : > { %s6454_s25 = scalar_lea.hbm %s7671_s18, %s6448_s19  ;;  %s5477_s29 = scalar_lea.hbm %s7671_s18, 512 }
  0xa4   : > { %s5473_s24 = scalar_lea.hbm %s6454_s25, 256  ;;  %p5478_p2 = scmp.lt.u32.totalorder %s6454_s25, %s7671_s18 }
  0xa5   : > { %p5474_p12 = scmp.ne.s32.totalorder %s6454_s25, %s5473_s24  ;;  %p5479_p3 = scmp.lt.u32.totalorder %s5477_s29, %s5473_s24 }
  0xa6   : > { %p5481_p7 = scmp.lt.u32.totalorder %s5473_s24, %s6454_s25 }
  0xa7   : > { %p5475_p4 = pnand %p5474_p12, %p7672_p0  ;;  %p5480_p6 = por %p5479_p3, %p5478_p2 }
  0xa9   : > { %p5476_p10 = pneg %p5475_p4  ;;  %p5482_p11 = por %p5481_p7, %p5480_p6 }
  0xab   : > { %p5483_p13 = pnand %p5482_p11, %p5476_p10 }
  0xad   : > { %5486 = shalt.err (!%p5483_p13)
}
  0xae   : > { %s5487_s6 = scalar_lea.vmem %s6457_s5, 256  ;;  %s6121_s20 = smov [#allocation8]  }
  0xaf   : > { %p5488_p1 = scmp.ne.s32.totalorder %s6457_s5, %s5487_s6  ;;  %s5491_s8 = sshll.u32 %s6121_s20, 4  ;;  %s5492_s8 = int_to_ptr.vmem [resolvable:$false] %s5491_s8 }
  0xb0   : > { %s5493_s7 = scalar_lea.vmem %s5492_s8, 512  ;;  %p5494_p9 = scmp.lt.s32.totalorder %s6457_s5, %s5492_s8 }
  0xb1   : > { %p5489_p5 = pnand %p5488_p1, %p7672_p0  ;;  %p5495_p12 = scmp.lt.s32.totalorder %s5493_s7, %s5487_s6 }
  0xb3   : > { %p5490_p8 = pneg %p5489_p5  ;;  %p5496_p4 = por %p5495_p12, %p5494_p9 }
  0xb5   : > { %p5497_p2 = pnand %p5496_p4, %p5490_p8 }
  0xb7   : > { %5500 = shalt.err (!%p5497_p2)
}
  0xb8   : > { %s7620_s24 = smov 64   ;;  %s7622_s4 = smov 4  }
  0xb9   : > { %5138 = dma.hbm_to_vmem [thread:$0]  (%p7672_p0), %s6454_s25, 256, %s6457_s5, %s6459_s0, %s7620_s24, %s7620_s24, %s7622_s4  }
  0xba   : > { %s6487_s29 = sshll.u32 %s6113_s28, 4  ;;  %s753_s2 = scalar_lea.vmem [#allocation9], %s6442_s26 }
  0xbb   : > { %s760_s1 = sshll.u32 %s753_s2, 4  ;;  %s7673_s8 = sld [smem:[#allocation48_spill]]  ;;  %s761_s1 = int_to_ptr.vmem [resolvable:$true] %s760_s1 }
  0xc1   : > { %s758_s7 = scalar_lea.hbm %s7673_s8, %s6487_s29  ;;  %s5505_s22 = scalar_lea.hbm %s7673_s8, 32 }
  0xc2   : > { %s5501_s3 = scalar_lea.hbm %s758_s7, 16  ;;  %p5506_p7 = scmp.lt.u32.totalorder %s758_s7, %s7673_s8 }
  0xc3   : > { %p5502_p10 = scmp.ne.s32.totalorder %s758_s7, %s5501_s3  ;;  %p5507_p11 = scmp.lt.u32.totalorder %s5505_s22, %s5501_s3 }
  0xc4   : > { %p5509_p1 = scmp.lt.u32.totalorder %s5501_s3, %s758_s7 }
  0xc5   : > { %p5503_p3 = pnand %p5502_p10, %p7672_p0  ;;  %p5508_p13 = por %p5507_p11, %p5506_p7 }
  0xc7   : > { %p5504_p6 = pneg %p5503_p3  ;;  %p5510_p5 = por %p5509_p1, %p5508_p13 }
  0xc9   : > { %p5511_p8 = pnand %p5510_p5, %p5504_p6 }
  0xcb   : > { %5514 = shalt.err (!%p5511_p8)
}
  0xcc   : > { %s5515_s2 = scalar_lea.vmem %s761_s1, 16  ;;  %s6124_s6 = smov [#allocation9]  }
  0xcd   : > { %p5516_p9 = scmp.ne.s32.totalorder %s761_s1, %s5515_s2  ;;  %s5519_s20 = sshll.u32 %s6124_s6, 4  ;;  %s5520_s20 = int_to_ptr.vmem [resolvable:$false] %s5519_s20 }
  0xce   : > { %s5521_s21 = scalar_lea.vmem %s5520_s20, 32  ;;  %p5522_p2 = scmp.lt.s32.totalorder %s761_s1, %s5520_s20 }
  0xcf   : > { %p5517_p12 = pnand %p5516_p9, %p7672_p0  ;;  %p5523_p10 = scmp.lt.s32.totalorder %s5521_s21, %s5515_s2 }
  0xd1   : > { %p5518_p4 = pneg %p5517_p12  ;;  %p5524_p3 = por %p5523_p10, %p5522_p2 }
  0xd3   : > { %p5525_p7 = pnand %p5524_p3, %p5518_p4 }
  0xd5   : > { %5528 = shalt.err (!%p5525_p7)
}
  0xd6   : > { %5139 = dma.hbm_to_vmem [thread:$0]  (%p7672_p0), %s758_s7, 16, %s761_s1, %s6459_s0  }
  0xd7   : > { %s7674_s18 = sld [smem:[#allocation49_spill]]  ;;  %s771_s5 = scalar_lea.vmem [#allocation10], %s6445_s17 }
  0xd8   : > { %s778_s2 = sshll.u32 %s771_s5, 4  ;;  %s7675_s21 = sld [smem:[#allocation50_spill]]  ;;  %s6514_s2 = int_to_ptr.vmem [resolvable:$true] %s778_s2 }
  0xdd   : > { %s6511_s25 = scalar_lea.hbm %s7674_s18, %s6448_s19  ;;  %s5533_s22 = scalar_lea.hbm %s7674_s18, 512 }
  0xde   : > { %s6520_s24 = scalar_lea.hbm %s7675_s21, %s6487_s29  ;;  %s5529_s4 = scalar_lea.hbm %s6511_s25, 256 }
  0xdf   : > { %p5530_p6 = scmp.ne.s32.totalorder %s6511_s25, %s5529_s4  ;;  %p5534_p1 = scmp.lt.u32.totalorder %s6511_s25, %s7674_s18 }
  0xe0   : > { %p5535_p5 = scmp.lt.u32.totalorder %s5533_s22, %s5529_s4  ;;  %p5537_p9 = scmp.lt.u32.totalorder %s5529_s4, %s6511_s25 }
  0xe1   : > { %p5531_p11 = pnand %p5530_p6, %p7672_p0 }
  0xe2   : > { %p5536_p8 = por %p5535_p5, %p5534_p1 }
  0xe3   : > { %p5532_p13 = pneg %p5531_p11 }
  0xe4   : > { %p5538_p12 = por %p5537_p9, %p5536_p8 }
  0xe6   : > { %p5539_p4 = pnand %p5538_p12, %p5532_p13 }
  0xe8   : > { %5542 = shalt.err (!%p5539_p4)
}
  0xe9   : > { %s5543_s5 = scalar_lea.vmem %s6514_s2, 256  ;;  %s6125_s6 = smov [#allocation10]  }
  0xea   : > { %p5544_p2 = scmp.ne.s32.totalorder %s6514_s2, %s5543_s5  ;;  %s5547_s20 = sshll.u32 %s6125_s6, 4  ;;  %s5548_s20 = int_to_ptr.vmem [resolvable:$false] %s5547_s20 }
  0xeb   : > { %s5549_s8 = scalar_lea.vmem %s5548_s20, 512  ;;  %p5550_p7 = scmp.lt.s32.totalorder %s6514_s2, %s5548_s20 }
  0xec   : > { %p5545_p10 = pnand %p5544_p2, %p7672_p0  ;;  %p5551_p6 = scmp.lt.s32.totalorder %s5549_s8, %s5543_s5 }
  0xee   : > { %p5546_p3 = pneg %p5545_p10  ;;  %p5552_p11 = por %p5551_p6, %p5550_p7 }
  0xf0   : > { %p5553_p1 = pnand %p5552_p11, %p5546_p3 }
  0xf2   : > { %5556 = shalt.err (!%p5553_p1)
}
  0xf3   : > { %s7676_s4 = smov 4   ;;  %s7677_s1 = smov 64  }
  0xf4   : > { %5140 = dma.hbm_to_vmem [thread:$0]  (%p7672_p0), %s6511_s25, 256, %s6514_s2, %s6459_s0, %s7677_s1, %s7677_s1, %s7676_s4  }
  0xf5   : > { %s791_s7 = scalar_lea.vmem [#allocation11], %s6442_s26  ;;  %s7678_s6 = sld [smem:[#allocation51_spill]] }
  0xf6   : > { %s798_s22 = sshll.u32 %s791_s7, 4  ;;  %s5557_s8 = scalar_lea.hbm %s6520_s24, 16  ;;  %s799_s22 = int_to_ptr.vmem [resolvable:$true] %s798_s22 }
  0xf7   : > { %p5558_p13 = scmp.ne.s32.totalorder %s6520_s24, %s5557_s8  ;;  %s5561_s27 = scalar_lea.hbm %s7675_s21, 32 }
  0xf8   : > { %p5562_p9 = scmp.lt.u32.totalorder %s6520_s24, %s7675_s21  ;;  %p5563_p12 = scmp.lt.u32.totalorder %s5561_s27, %s5557_s8 }
  0xf9   : > { %p5559_p5 = pnand %p5558_p13, %p7672_p0  ;;  %p5565_p2 = scmp.lt.u32.totalorder %s5557_s8, %s6520_s24 }
  0xfa   : > { %p5564_p4 = por %p5563_p12, %p5562_p9 }
  0xfb   : > { %s6552_s20 = scalar_lea.hbm %s7678_s6, %s6448_s19  ;;  %p5560_p8 = pneg %p5559_p5 }
  0xfc   : > { %p5566_p10 = por %p5565_p2, %p5564_p4 }
  0xfe   : > { %p5567_p3 = pnand %p5566_p10, %p5560_p8 }
 0x100   : > { %5570 = shalt.err (!%p5567_p3)
}
 0x101   : > { %s5571_s25 = scalar_lea.vmem %s799_s22, 16  ;;  %s6126_s2 = smov [#allocation11]  }
 0x102   : > { %p5572_p7 = scmp.ne.s32.totalorder %s799_s22, %s5571_s25  ;;  %s5575_s7 = sshll.u32 %s6126_s2, 4  ;;  %s5576_s7 = int_to_ptr.vmem [resolvable:$false] %s5575_s7 }
 0x103   : > { %s5577_s23 = scalar_lea.vmem %s5576_s7, 32  ;;  %p5578_p1 = scmp.lt.s32.totalorder %s799_s22, %s5576_s7 }
 0x104   : > { %p5573_p6 = pnand %p5572_p7, %p7672_p0  ;;  %p5579_p13 = scmp.lt.s32.totalorder %s5577_s23, %s5571_s25 }
 0x106   : > { %p5574_p11 = pneg %p5573_p6  ;;  %p5580_p5 = por %p5579_p13, %p5578_p1 }
 0x108   : > { %p5581_p9 = pnand %p5580_p5, %p5574_p11 }
 0x10a   : > { %5584 = shalt.err (!%p5581_p9)
}
 0x10b   : > { %5141 = dma.hbm_to_vmem [thread:$0]  (%p7672_p0), %s6520_s24, 16, %s799_s22, %s6459_s0  }
 0x10c   : > { %s809_s15 = scalar_lea.vmem [#allocation12], %s6445_s17  ;;  %s7679_s3 = sld [smem:[#allocation52_spill]] }
 0x10d   : > { %s816_s16 = sshll.u32 %s809_s15, 4  ;;  %s5585_s8 = scalar_lea.hbm %s6552_s20, 256  ;;  %s6573_s16 = int_to_ptr.vmem [resolvable:$true] %s816_s16 }
 0x10e   : > { %p5586_p8 = scmp.ne.s32.totalorder %s6552_s20, %s5585_s8  ;;  %s5589_s7 = scalar_lea.hbm %s7678_s6, 512 }
 0x10f   : > { %p5590_p2 = scmp.lt.u32.totalorder %s6552_s20, %s7678_s6  ;;  %p5591_p10 = scmp.lt.u32.totalorder %s5589_s7, %s5585_s8 }
 0x110   : > { %p5587_p12 = pnand %p5586_p8, %p7672_p0  ;;  %p5593_p7 = scmp.lt.u32.totalorder %s5585_s8, %s6552_s20 }
 0x111   : > { %p5592_p3 = por %p5591_p10, %p5590_p2 }
 0x112   : > { %s6579_s5 = scalar_lea.hbm %s7679_s3, %s6487_s29  ;;  %p5588_p4 = pneg %p5587_p12 }
 0x113   : > { %p5594_p6 = por %p5593_p7, %p5592_p3 }
 0x115   : > { %p5595_p11 = pnand %p5594_p6, %p5588_p4 }
 0x117   : > { %5598 = shalt.err (!%p5595_p11)
}
 0x118   : > { %s5599_s22 = scalar_lea.vmem %s6573_s16, 256  ;;  %s6127_s15 = smov [#allocation12]  }
 0x119   : > { %p5600_p1 = scmp.ne.s32.totalorder %s6573_s16, %s5599_s22  ;;  %s5603_s27 = sshll.u32 %s6127_s15, 4  ;;  %s5604_s27 = int_to_ptr.vmem [resolvable:$false] %s5603_s27 }
 0x11a   : > { %s5605_s18 = scalar_lea.vmem %s5604_s27, 512  ;;  %p5606_p9 = scmp.lt.s32.totalorder %s6573_s16, %s5604_s27 }
 0x11b   : > { %p5601_p13 = pnand %p5600_p1, %p7672_p0  ;;  %p5607_p8 = scmp.lt.s32.totalorder %s5605_s18, %s5599_s22 }
 0x11d   : > { %p5602_p5 = pneg %p5601_p13  ;;  %p5608_p12 = por %p5607_p8, %p5606_p9 }
 0x11f   : > { %p5609_p2 = pnand %p5608_p12, %p5602_p5 }
 0x121   : > { %5612 = shalt.err (!%p5609_p2)
}
 0x122   : > { %5142 = dma.hbm_to_vmem [thread:$0]  (%p7672_p0), %s6552_s20, 256, %s6573_s16, %s6459_s0, %s7677_s1, %s7677_s1, %s7676_s4  }
 0x123   : > { %s829_s8 = scalar_lea.vmem [#allocation13], %s6442_s26  ;;  %s7680_s23 = sld [smem:[#allocation53_spill]] }
 0x124   : > { %s836_s25 = sshll.u32 %s829_s8, 4  ;;  %s5613_s22 = scalar_lea.hbm %s6579_s5, 16  ;;  %s837_s25 = int_to_ptr.vmem [resolvable:$true] %s836_s25 }
 0x125   : > { %p5614_p4 = scmp.ne.s32.totalorder %s6579_s5, %s5613_s22  ;;  %s5617_s18 = scalar_lea.hbm %s7679_s3, 32 }
 0x126   : > { %p5618_p7 = scmp.lt.u32.totalorder %s6579_s5, %s7679_s3  ;;  %p5619_p6 = scmp.lt.u32.totalorder %s5617_s18, %s5613_s22 }
 0x127   : > { %p5615_p10 = pnand %p5614_p4, %p7672_p0  ;;  %p5621_p1 = scmp.lt.u32.totalorder %s5613_s22, %s6579_s5 }
 0x128   : > { %p5620_p11 = por %p5619_p6, %p5618_p7 }
 0x129   : > { %s6611_s24 = scalar_lea.hbm %s7680_s23, %s6448_s19  ;;  %p5616_p3 = pneg %p5615_p10 }
 0x12a   : > { %p5622_p13 = por %p5621_p1, %p5620_p11 }
 0x12c   : > { %p5623_p5 = pnand %p5622_p13, %p5616_p3 }
 0x12e   : > { %5626 = shalt.err (!%p5623_p5)
}
 0x12f   : > { %s5627_s20 = scalar_lea.vmem %s837_s25, 16  ;;  %s6128_s16 = smov [#allocation13]  }
 0x130   : > { %p5628_p9 = scmp.ne.s32.totalorder %s837_s25, %s5627_s20  ;;  %s5631_s8 = sshll.u32 %s6128_s16, 4  ;;  %s5632_s8 = int_to_ptr.vmem [resolvable:$false] %s5631_s8 }
 0x131   : > { %s5633_s2 = scalar_lea.vmem %s5632_s8, 32  ;;  %p5634_p2 = scmp.lt.s32.totalorder %s837_s25, %s5632_s8 }
 0x132   : > { %p5629_p8 = pnand %p5628_p9, %p7672_p0  ;;  %p5635_p4 = scmp.lt.s32.totalorder %s5633_s2, %s5627_s20 }
 0x134   : > { %p5630_p12 = pneg %p5629_p8  ;;  %p5636_p10 = por %p5635_p4, %p5634_p2 }
 0x136   : > { %p5637_p6 = pnand %p5636_p10, %p5630_p12 }
 0x138   : > { %5640 = shalt.err (!%p5637_p6)
}
 0x139   : > { %5143 = dma.hbm_to_vmem [thread:$0]  (%p7672_p0), %s6579_s5, 16, %s837_s25, %s6459_s0  }
 0x13a   : > { %s847_s21 = scalar_lea.vmem [#allocation14], %s6445_s17  ;;  %s7681_s9 = sld [smem:[#allocation54_spill]] }
 0x13b   : > { %s854_s6 = sshll.u32 %s847_s21, 4  ;;  %s5641_s27 = scalar_lea.hbm %s6611_s24, 256  ;;  %s6632_s6 = int_to_ptr.vmem [resolvable:$true] %s854_s6 }
 0x13c   : > { %p5642_p3 = scmp.ne.s32.totalorder %s6611_s24, %s5641_s27  ;;  %s5645_s16 = scalar_lea.hbm %s7680_s23, 512 }
 0x13d   : > { %p5646_p1 = scmp.lt.u32.totalorder %s6611_s24, %s7680_s23  ;;  %p5647_p13 = scmp.lt.u32.totalorder %s5645_s16, %s5641_s27 }
 0x13e   : > { %p5643_p7 = pnand %p5642_p3, %p7672_p0  ;;  %p5649_p9 = scmp.lt.u32.totalorder %s5641_s27, %s6611_s24 }
 0x13f   : > { %p5648_p5 = por %p5647_p13, %p5646_p1 }
 0x140   : > { %s6638_s15 = scalar_lea.hbm %s7681_s9, %s6487_s29  ;;  %p5644_p11 = pneg %p5643_p7 }
 0x141   : > { %p5650_p8 = por %p5649_p9, %p5648_p5 }
 0x143   : > { %p5651_p12 = pnand %p5650_p8, %p5644_p11 }
 0x145   : > { %5654 = shalt.err (!%p5651_p12)
}
 0x146   : > { %s5655_s25 = scalar_lea.vmem %s6632_s6, 256  ;;  %s6129_s2 = smov [#allocation14]  }
 0x147   : > { %p5656_p2 = scmp.ne.s32.totalorder %s6632_s6, %s5655_s25  ;;  %s5659_s21 = sshll.u32 %s6129_s2, 4  ;;  %s5660_s21 = int_to_ptr.vmem [resolvable:$false] %s5659_s21 }
 0x148   : > { %s5661_s7 = scalar_lea.vmem %s5660_s21, 512  ;;  %p5662_p6 = scmp.lt.s32.totalorder %s6632_s6, %s5660_s21 }
 0x149   : > { %p5657_p4 = pnand %p5656_p2, %p7672_p0  ;;  %p5663_p3 = scmp.lt.s32.totalorder %s5661_s7, %s5655_s25 }
 0x14b   : > { %p5658_p10 = pneg %p5657_p4  ;;  %p5664_p7 = por %p5663_p3, %p5662_p6 }
 0x14d   : > { %p5665_p1 = pnand %p5664_p7, %p5658_p10 }
 0x14f   : > { %5668 = shalt.err (!%p5665_p1)
}
 0x150   : > { %5144 = dma.hbm_to_vmem [thread:$0]  (%p7672_p0), %s6611_s24, 256, %s6632_s6, %s6459_s0, %s7677_s1, %s7677_s1, %s7676_s4  }
 0x151   : > { %s867_s22 = scalar_lea.vmem [#allocation15], %s6442_s26  ;;  %s7682_s10 = sld [smem:[#allocation55_spill]] }
 0x152   : > { %s874_s27 = sshll.u32 %s867_s22, 4  ;;  %s5669_s8 = scalar_lea.hbm %s6638_s15, 16  ;;  %s875_s27 = int_to_ptr.vmem [resolvable:$true] %s874_s27 }
 0x153   : > { %p5670_p11 = scmp.ne.s32.totalorder %s6638_s15, %s5669_s8  ;;  %s5673_s2 = scalar_lea.hbm %s7681_s9, 32 }
 0x154   : > { %p5674_p9 = scmp.lt.u32.totalorder %s6638_s15, %s7681_s9  ;;  %p5675_p8 = scmp.lt.u32.totalorder %s5673_s2, %s5669_s8 }
 0x155   : > { %p5671_p13 = pnand %p5670_p11, %p7672_p0  ;;  %p5677_p2 = scmp.lt.u32.totalorder %s5669_s8, %s6638_s15 }
 0x156   : > { %p5676_p12 = por %p5675_p8, %p5674_p9 }
 0x157   : > { %s6670_s16 = scalar_lea.hbm %s7682_s10, %s6448_s19  ;;  %p5672_p5 = pneg %p5671_p13 }
 0x158   : > { %p5678_p4 = por %p5677_p2, %p5676_p12 }
 0x15a   : > { %p5679_p10 = pnand %p5678_p4, %p5672_p5 }
 0x15c   : > { %5682 = shalt.err (!%p5679_p10)
}
 0x15d   : > { %s5683_s24 = scalar_lea.vmem %s875_s27, 16  ;;  %s6130_s6 = smov [#allocation15]  }
 0x15e   : > { %p5684_p6 = scmp.ne.s32.totalorder %s875_s27, %s5683_s24  ;;  %s5687_s22 = sshll.u32 %s6130_s6, 4  ;;  %s5688_s22 = int_to_ptr.vmem [resolvable:$false] %s5687_s22 }
 0x15f   : > { %s5689_s18 = scalar_lea.vmem %s5688_s22, 32  ;;  %p5690_p1 = scmp.lt.s32.totalorder %s875_s27, %s5688_s22 }
 0x160   : > { %p5685_p3 = pnand %p5684_p6, %p7672_p0  ;;  %p5691_p11 = scmp.lt.s32.totalorder %s5689_s18, %s5683_s24 }
 0x162   : > { %p5686_p7 = pneg %p5685_p3  ;;  %p5692_p13 = por %p5691_p11, %p5690_p1 }
 0x164   : > { %p5693_p8 = pnand %p5692_p13, %p5686_p7 }
 0x166   : > { %5696 = shalt.err (!%p5693_p8)
}
 0x167   : > { %5145 = dma.hbm_to_vmem [thread:$0]  (%p7672_p0), %s6638_s15, 16, %s875_s27, %s6459_s0  }
 0x168   : > { %s885_s20 = scalar_lea.vmem [#allocation16], %s6445_s17  ;;  %s6697_s2 = scalar_lea.hbm %s7575_s11, %s6487_s29 }
 0x169   : > { %s892_s8 = sshll.u32 %s885_s20, 4  ;;  %s5697_s21 = scalar_lea.hbm %s6670_s16, 256  ;;  %s6691_s8 = int_to_ptr.vmem [resolvable:$true] %s892_s8 }
 0x16a   : > { %p5698_p5 = scmp.ne.s32.totalorder %s6670_s16, %s5697_s21  ;;  %s5701_s6 = scalar_lea.hbm %s7682_s10, 512 }
 0x16b   : > { %p5702_p2 = scmp.lt.u32.totalorder %s6670_s16, %s7682_s10  ;;  %p5703_p4 = scmp.lt.u32.totalorder %s5701_s6, %s5697_s21 }
 0x16c   : > { %p5699_p9 = pnand %p5698_p5, %p7672_p0  ;;  %p5705_p6 = scmp.lt.u32.totalorder %s5697_s21, %s6670_s16 }
 0x16d   : > { %p5704_p10 = por %p5703_p4, %p5702_p2 }
 0x16e   : > { %p5700_p12 = pneg %p5699_p9 }
 0x16f   : > { %p5706_p3 = por %p5705_p6, %p5704_p10 }
 0x171   : > { %p5707_p7 = pnand %p5706_p3, %p5700_p12 }
 0x173   : > { %5710 = shalt.err (!%p5707_p7)
}
 0x174   : > { %s5711_s27 = scalar_lea.vmem %s6691_s8, 256  ;;  %s6131_s18 = smov [#allocation16]  }
 0x175   : > { %p5712_p1 = scmp.ne.s32.totalorder %s6691_s8, %s5711_s27  ;;  %s5715_s20 = sshll.u32 %s6131_s18, 4  ;;  %s5716_s20 = int_to_ptr.vmem [resolvable:$false] %s5715_s20 }
 0x176   : > { %s5717_s5 = scalar_lea.vmem %s5716_s20, 512  ;;  %p5718_p8 = scmp.lt.s32.totalorder %s6691_s8, %s5716_s20 }
 0x177   : > { %p5713_p11 = pnand %p5712_p1, %p7672_p0  ;;  %p5719_p5 = scmp.lt.s32.totalorder %s5717_s5, %s5711_s27 }
 0x179   : > { %p5714_p13 = pneg %p5713_p11  ;;  %p5720_p9 = por %p5719_p5, %p5718_p8 }
 0x17b   : > { %p5721_p2 = pnand %p5720_p9, %p5714_p13 }
 0x17d   : > { %5724 = shalt.err (!%p5721_p2)
}
 0x17e   : > { %5146 = dma.hbm_to_vmem [thread:$0]  (%p7672_p0), %s6670_s16, 256, %s6691_s8, %s6459_s0, %s7677_s1, %s7677_s1, %s7676_s4  }
 0x17f   : > { %s905_s25 = scalar_lea.vmem [#allocation17], %s6442_s26  ;;  %s6729_s6 = scalar_lea.hbm %s7576_s12, %s6448_s19 }
 0x180   : > { %s912_s21 = sshll.u32 %s905_s25, 4  ;;  %s5725_s22 = scalar_lea.hbm %s6697_s2, 16  ;;  %s913_s21 = int_to_ptr.vmem [resolvable:$true] %s912_s21 }
 0x181   : > { %p5726_p12 = scmp.ne.s32.totalorder %s6697_s2, %s5725_s22  ;;  %s5729_s18 = scalar_lea.hbm %s7575_s11, 32 }
 0x182   : > { %p5730_p6 = scmp.lt.u32.totalorder %s6697_s2, %s7575_s11  ;;  %p5731_p3 = scmp.lt.u32.totalorder %s5729_s18, %s5725_s22 }
 0x183   : > { %p5727_p4 = pnand %p5726_p12, %p7672_p0  ;;  %p5733_p1 = scmp.lt.u32.totalorder %s5725_s22, %s6697_s2 }
 0x184   : > { %p5732_p7 = por %p5731_p3, %p5730_p6 }
 0x185   : > { %p5728_p10 = pneg %p5727_p4 }
 0x186   : > { %p5734_p11 = por %p5733_p1, %p5732_p7 }
 0x188   : > { %p5735_p13 = pnand %p5734_p11, %p5728_p10 }
 0x18a   : > { %5738 = shalt.err (!%p5735_p13)
}
 0x18b   : > { %s5739_s19 = scalar_lea.vmem %s913_s21, 16  ;;  %s6132_s16 = smov [#allocation17]  }
 0x18c   : > { %p5740_p8 = scmp.ne.s32.totalorder %s913_s21, %s5739_s19  ;;  %s5743_s8 = sshll.u32 %s6132_s16, 4  ;;  %s5744_s8 = int_to_ptr.vmem [resolvable:$false] %s5743_s8 }
 0x18d   : > { %s5745_s25 = scalar_lea.vmem %s5744_s8, 32  ;;  %p5746_p2 = scmp.lt.s32.totalorder %s913_s21, %s5744_s8 }
 0x18e   : > { %p5741_p5 = pnand %p5740_p8, %p7672_p0  ;;  %p5747_p12 = scmp.lt.s32.totalorder %s5745_s25, %s5739_s19 }
 0x190   : > { %p5742_p9 = pneg %p5741_p5  ;;  %p5748_p4 = por %p5747_p12, %p5746_p2 }
 0x192   : > { %p5749_p3 = pnand %p5748_p4, %p5742_p9 }
 0x194   : > { %5752 = shalt.err (!%p5749_p3)
}
 0x195   : > { %5147 = dma.hbm_to_vmem [thread:$0]  (%p7672_p0), %s6697_s2, 16, %s913_s21, %s6459_s0  }
 0x196   : > { %s923_s7 = scalar_lea.vmem [#allocation18], %s6445_s17  ;;  %s6756_s27 = scalar_lea.hbm %s7577_s13, %s6487_s29 }
 0x197   : > { %s930_s24 = sshll.u32 %s923_s7, 4  ;;  %s5753_s18 = scalar_lea.hbm %s6729_s6, 256  ;;  %s6750_s24 = int_to_ptr.vmem [resolvable:$true] %s930_s24 }
 0x198   : > { %p5754_p10 = scmp.ne.s32.totalorder %s6729_s6, %s5753_s18  ;;  %s5757_s19 = scalar_lea.hbm %s7576_s12, 512 }
 0x199   : > { %p5758_p1 = scmp.lt.u32.totalorder %s6729_s6, %s7576_s12  ;;  %p5759_p11 = scmp.lt.u32.totalorder %s5757_s19, %s5753_s18 }
 0x19a   : > { %p5755_p6 = pnand %p5754_p10, %p7672_p0  ;;  %p5761_p8 = scmp.lt.u32.totalorder %s5753_s18, %s6729_s6 }
 0x19b   : > { %p5760_p13 = por %p5759_p11, %p5758_p1 }
 0x19c   : > { %p5756_p7 = pneg %p5755_p6 }
 0x19d   : > { %p5762_p5 = por %p5761_p8, %p5760_p13 }
 0x19f   : > { %p5763_p9 = pnand %p5762_p5, %p5756_p7 }
 0x1a1   : > { %5766 = shalt.err (!%p5763_p9)
}
 0x1a2   : > { %s5767_s17 = scalar_lea.vmem %s6750_s24, 256  ;;  %s6133_s21 = smov [#allocation18]  }
 0x1a3   : > { %p5768_p2 = scmp.ne.s32.totalorder %s6750_s24, %s5767_s17  ;;  %s5771_s8 = sshll.u32 %s6133_s21, 4  ;;  %s5772_s8 = int_to_ptr.vmem [resolvable:$false] %s5771_s8 }
 0x1a4   : > { %s5773_s25 = scalar_lea.vmem %s5772_s8, 512  ;;  %p5774_p3 = scmp.lt.s32.totalorder %s6750_s24, %s5772_s8 }
 0x1a5   : > { %p5769_p12 = pnand %p5768_p2, %p7672_p0  ;;  %p5775_p10 = scmp.lt.s32.totalorder %s5773_s25, %s5767_s17 }
 0x1a7   : > { %p5770_p4 = pneg %p5769_p12  ;;  %p5776_p6 = por %p5775_p10, %p5774_p3 }
 0x1a9   : > { %p5777_p1 = pnand %p5776_p6, %p5770_p4 }
 0x1ab   : > { %5780 = shalt.err (!%p5777_p1)
}
 0x1ac   : > { %5148 = dma.hbm_to_vmem [thread:$0]  (%p7672_p0), %s6729_s6, 256, %s6750_s24, %s6459_s0, %s7677_s1, %s7677_s1, %s7676_s4  }
 0x1ad   : > { %s943_s7 = scalar_lea.vmem [#allocation19], %s6442_s26  ;;  %s4640_s15 = sshll.u32 %s6442_s26, 5 }
 0x1ae   : > { %s950_s22 = sshll.u32 %s943_s7, 4  ;;  %s5781_s18 = scalar_lea.hbm %s6756_s27, 16  ;;  %s951_s22 = int_to_ptr.vmem [resolvable:$true] %s950_s22 }
 0x1af   : > { %p5782_p7 = scmp.ne.s32.totalorder %s6756_s27, %s5781_s18  ;;  %s5785_s19 = scalar_lea.hbm %s7577_s13, 32 }
 0x1b0   : > { %p5786_p8 = scmp.lt.u32.totalorder %s6756_s27, %s7577_s13  ;;  %p5787_p5 = scmp.lt.u32.totalorder %s5785_s19, %s5781_s18 }
 0x1b1   : > { %p5783_p11 = pnand %p5782_p7, %p7672_p0  ;;  %p5789_p2 = scmp.lt.u32.totalorder %s5781_s18, %s6756_s27 }
 0x1b2   : > { %p5788_p9 = por %p5787_p5, %p5786_p8 }
 0x1b3   : > { %p5784_p13 = pneg %p5783_p11 }
 0x1b4   : > { %p5790_p12 = por %p5789_p2, %p5788_p9 }
 0x1b6   : > { %p5791_p4 = pnand %p5790_p12, %p5784_p13 }
 0x1b8   : > { %5794 = shalt.err (!%p5791_p4)
}
 0x1b9   : > { %s5795_s6 = scalar_lea.vmem %s951_s22, 16  ;;  %s6134_s24 = smov [#allocation19]  }
 0x1ba   : > { %p5796_p3 = scmp.ne.s32.totalorder %s951_s22, %s5795_s6  ;;  %s5799_s17 = sshll.u32 %s6134_s24, 4  ;;  %s5800_s17 = int_to_ptr.vmem [resolvable:$false] %s5799_s17 }
 0x1bb   : > { %s5801_s21 = scalar_lea.vmem %s5800_s17, 32  ;;  %p5802_p1 = scmp.lt.s32.totalorder %s951_s22, %s5800_s17 }
 0x1bc   : > { %p5797_p10 = pnand %p5796_p3, %p7672_p0  ;;  %p5803_p7 = scmp.lt.s32.totalorder %s5801_s21, %s5795_s6 }
 0x1be   : > { %p5798_p6 = pneg %p5797_p10  ;;  %p5804_p11 = por %p5803_p7, %p5802_p1 }
 0x1c0   : > { %p5805_p5 = pnand %p5804_p11, %p5798_p6 }
 0x1c2   : > { %5808 = shalt.err (!%p5805_p5)
}
 0x1c3   : > { %5149 = dma.hbm_to_vmem [thread:$0]  (%p7672_p0), %s6756_s27, 16, %s951_s22, %s6459_s0  }
 0x1c4   : > { %s4747_s8 = sshll.u32 %s6113_s28, 9  ;;  %s961_s25 = scalar_lea.vmem [#allocation20], %s4640_s15 }
 0x1c5   : > { %s968_s7 = sshll.u32 %s961_s25, 4  ;;  %s6809_s5 = scalar_lea.hbm %s7578_s14, %s4747_s8  ;;  %s6811_s7 = int_to_ptr.vmem [resolvable:$true] %s968_s7 }
 0x1c6   : > { %s5809_s19 = scalar_lea.hbm %s6809_s5, 512  ;;  %s5813_s22 = scalar_lea.hbm %s7578_s14, 1024 }
 0x1c7   : > { %p5810_p13 = scmp.ne.s32.totalorder %s6809_s5, %s5809_s19  ;;  %p5814_p2 = scmp.lt.u32.totalorder %s6809_s5, %s7578_s14 }
 0x1c8   : > { %p5815_p12 = scmp.lt.u32.totalorder %s5813_s22, %s5809_s19  ;;  %p5817_p3 = scmp.lt.u32.totalorder %s5809_s19, %s6809_s5 }
 0x1c9   : > { %p5811_p8 = pnand %p5810_p13, %p7672_p0 }
 0x1ca   : > { %p5816_p4 = por %p5815_p12, %p5814_p2 }
 0x1cb   : > { %p5812_p9 = pneg %p5811_p8 }
 0x1cc   : > { %p5818_p10 = por %p5817_p3, %p5816_p4 }
 0x1ce   : > { %p5819_p6 = pnand %p5818_p10, %p5812_p9 }
 0x1d0   : > { %5822 = shalt.err (!%p5819_p6)
}
 0x1d1   : > { %s5823_s2 = scalar_lea.vmem %s6811_s7, 512  ;;  %s6135_s6 = smov [#allocation20]  }
 0x1d2   : > { %p5824_p1 = scmp.ne.s32.totalorder %s6811_s7, %s5823_s2  ;;  %s5827_s24 = sshll.u32 %s6135_s6, 4  ;;  %s5828_s24 = int_to_ptr.vmem [resolvable:$false] %s5827_s24 }
 0x1d3   : > { %s5829_s17 = scalar_lea.vmem %s5828_s24, 1024  ;;  %p5830_p5 = scmp.lt.s32.totalorder %s6811_s7, %s5828_s24 }
 0x1d4   : > { %p5825_p7 = pnand %p5824_p1, %p7672_p0  ;;  %p5831_p13 = scmp.lt.s32.totalorder %s5829_s17, %s5823_s2 }
 0x1d6   : > { %p5826_p11 = pneg %p5825_p7  ;;  %p5832_p8 = por %p5831_p13, %p5830_p5 }
 0x1d8   : > { %p5833_p2 = pnand %p5832_p8, %p5826_p11 }
 0x1da   : > { %5836 = shalt.err (!%p5833_p2)
}
 0x1db   : > { %5150 = dma.hbm_to_vmem [thread:$0]  (%p7672_p0), %s6809_s5, 512, %s6811_s7, %s6459_s0, %s7677_s1, %s7677_s1, %s7676_s4  }
 0x1dc   : > { %s7683_s25 = sld [smem:[#allocation56_spill]]  ;;  %s981_s20 = scalar_lea.vmem [#allocation21], %s6442_s26 }
 0x1dd   : > { %s988_s19 = sshll.u32 %s981_s20, 4  ;;  %s7684_s22 = sld [smem:[#allocation57_spill]]  ;;  %s989_s19 = int_to_ptr.vmem [resolvable:$true] %s988_s19 }
 0x1e2   : > { %s6842_s18 = scalar_lea.hbm %s7683_s25, %s6487_s29  ;;  %s5841_s7 = scalar_lea.hbm %s7683_s25, 32 }
 0x1e3   : > { %s6849_s15 = scalar_lea.hbm %s7684_s22, %s6487_s29  ;;  %s5837_s16 = scalar_lea.hbm %s6842_s18, 16 }
 0x1e4   : > { %p5838_p9 = scmp.ne.s32.totalorder %s6842_s18, %s5837_s16  ;;  %p5842_p3 = scmp.lt.u32.totalorder %s6842_s18, %s7683_s25 }
 0x1e5   : > { %p5843_p10 = scmp.lt.u32.totalorder %s5841_s7, %s5837_s16  ;;  %p5845_p1 = scmp.lt.u32.totalorder %s5837_s16, %s6842_s18 }
 0x1e6   : > { %p5839_p12 = pnand %p5838_p9, %p7672_p0 }
 0x1e7   : > { %p5844_p6 = por %p5843_p10, %p5842_p3 }
 0x1e8   : > { %p5840_p4 = pneg %p5839_p12 }
 0x1e9   : > { %p5846_p7 = por %p5845_p1, %p5844_p6 }
 0x1eb   : > { %p5847_p11 = pnand %p5846_p7, %p5840_p4 }
 0x1ed   : > { %5850 = shalt.err (!%p5847_p11)
}
 0x1ee   : > { %s5851_s6 = scalar_lea.vmem %s989_s19, 16  ;;  %s6136_s24 = smov [#allocation21]  }
 0x1ef   : > { %p5852_p5 = scmp.ne.s32.totalorder %s989_s19, %s5851_s6  ;;  %s5855_s17 = sshll.u32 %s6136_s24, 4  ;;  %s5856_s17 = int_to_ptr.vmem [resolvable:$false] %s5855_s17 }
 0x1f0   : > { %s5857_s21 = scalar_lea.vmem %s5856_s17, 32  ;;  %p5858_p2 = scmp.lt.s32.totalorder %s989_s19, %s5856_s17 }
 0x1f1   : > { %p5853_p13 = pnand %p5852_p5, %p7672_p0  ;;  %p5859_p9 = scmp.lt.s32.totalorder %s5857_s21, %s5851_s6 }
 0x1f3   : > { %p5854_p8 = pneg %p5853_p13  ;;  %p5860_p12 = por %p5859_p9, %p5858_p2 }
 0x1f5   : > { %p5861_p3 = pnand %p5860_p12, %p5854_p8 }
 0x1f7   : > { %5864 = shalt.err (!%p5861_p3)
}
 0x1f8   : > { %5151 = dma.hbm_to_vmem [thread:$0]  (%p7672_p0), %s6842_s18, 16, %s989_s19, %s6459_s0  }
 0x1f9   : > { %s998_s8 = scalar_lea.vmem [#allocation22], %s6442_s26  ;;  %s7685_s16 = sld [smem:[#allocation58_spill]] }
 0x1fa   : > { %s1005_s20 = sshll.u32 %s998_s8, 4  ;;  %s5865_s1 = scalar_lea.hbm %s6849_s15, 16  ;;  %s1006_s20 = int_to_ptr.vmem [resolvable:$true] %s1005_s20 }
 0x1fb   : > { %p5866_p4 = scmp.ne.s32.totalorder %s6849_s15, %s5865_s1  ;;  %s5869_s2 = scalar_lea.hbm %s7684_s22, 32 }
 0x1fc   : > { %p5870_p1 = scmp.lt.u32.totalorder %s6849_s15, %s7684_s22  ;;  %p5871_p7 = scmp.lt.u32.totalorder %s5869_s2, %s5865_s1 }
 0x1fd   : > { %p5867_p10 = pnand %p5866_p4, %p7672_p0  ;;  %p5873_p5 = scmp.lt.u32.totalorder %s5865_s1, %s6849_s15 }
 0x1fe   : > { %p5872_p11 = por %p5871_p7, %p5870_p1 }
 0x1ff   : > { %s6874_s4 = scalar_lea.hbm %s7685_s16, %s6487_s29  ;;  %p5868_p6 = pneg %p5867_p10 }
 0x200   : > { %p5874_p13 = por %p5873_p5, %p5872_p11 }
 0x202   : > { %p5875_p8 = pnand %p5874_p13, %p5868_p6 }
 0x204   : > { %5878 = shalt.err (!%p5875_p8)
}
 0x205   : > { %s5879_s18 = scalar_lea.vmem %s1006_s20, 16  ;;  %s6137_s19 = smov [#allocation22]  }
 0x206   : > { %p5880_p2 = scmp.ne.s32.totalorder %s1006_s20, %s5879_s18  ;;  %s5883_s17 = sshll.u32 %s6137_s19, 4  ;;  %s5884_s17 = int_to_ptr.vmem [resolvable:$false] %s5883_s17 }
 0x207   : > { %s5885_s21 = scalar_lea.vmem %s5884_s17, 32  ;;  %p5886_p3 = scmp.lt.s32.totalorder %s1006_s20, %s5884_s17 }
 0x208   : > { %p5881_p9 = pnand %p5880_p2, %p7672_p0  ;;  %p5887_p4 = scmp.lt.s32.totalorder %s5885_s21, %s5879_s18 }
 0x20a   : > { %p5882_p12 = pneg %p5881_p9  ;;  %p5888_p10 = por %p5887_p4, %p5886_p3 }
 0x20c   : > { %p5889_p1 = pnand %p5888_p10, %p5882_p12 }
 0x20e   : > { %5892 = shalt.err (!%p5889_p1)
}
 0x20f   : > { %5152 = dma.hbm_to_vmem [thread:$0]  (%p7672_p0), %s6849_s15, 16, %s1006_s20, %s6459_s0  }
 0x210   : > { %s1015_s8 = scalar_lea.vmem [#allocation23], %s6442_s26  ;;  %s7686_s7 = sld [smem:[#allocation59_spill]] }
 0x211   : > { %s1022_s28 = sshll.u32 %s1015_s8, 4  ;;  %s5893_s2 = scalar_lea.hbm %s6874_s4, 16  ;;  %s1023_s28 = int_to_ptr.vmem [resolvable:$true] %s1022_s28 }
 0x212   : > { %p5894_p6 = scmp.ne.s32.totalorder %s6874_s4, %s5893_s2  ;;  %s5897_s18 = scalar_lea.hbm %s7685_s16, 32 }
 0x213   : > { %p5898_p5 = scmp.lt.u32.totalorder %s6874_s4, %s7685_s16  ;;  %p5899_p13 = scmp.lt.u32.totalorder %s5897_s18, %s5893_s2 }
 0x214   : > { %p5895_p7 = pnand %p5894_p6, %p7672_p0  ;;  %p5901_p2 = scmp.lt.u32.totalorder %s5893_s2, %s6874_s4 }
 0x215   : > { %p5900_p8 = por %p5899_p13, %p5898_p5 }
 0x216   : > { %s6899_s5 = scalar_lea.hbm %s7686_s7, %s6487_s29  ;;  %p5896_p11 = pneg %p5895_p7 }
 0x217   : > { %p5902_p9 = por %p5901_p2, %p5900_p8 }
 0x219   : > { %p5903_p12 = pnand %p5902_p9, %p5896_p11 }
 0x21b   : > { %5906 = shalt.err (!%p5903_p12)
}
 0x21c   : > { %s5907_s15 = scalar_lea.vmem %s1023_s28, 16  ;;  %s6138_s20 = smov [#allocation23]  }
 0x21d   : > { %p5908_p3 = scmp.ne.s32.totalorder %s1023_s28, %s5907_s15  ;;  %s5911_s21 = sshll.u32 %s6138_s20, 4  ;;  %s5912_s21 = int_to_ptr.vmem [resolvable:$false] %s5911_s21 }
 0x21e   : > { %s5913_s8 = scalar_lea.vmem %s5912_s21, 32  ;;  %p5914_p1 = scmp.lt.s32.totalorder %s1023_s28, %s5912_s21 }
 0x21f   : > { %p5909_p4 = pnand %p5908_p3, %p7672_p0  ;;  %p5915_p6 = scmp.lt.s32.totalorder %s5913_s8, %s5907_s15 }
 0x221   : > { %p5910_p10 = pneg %p5909_p4  ;;  %p5916_p7 = por %p5915_p6, %p5914_p1 }
 0x223   : > { %p5917_p5 = pnand %p5916_p7, %p5910_p10 }
 0x225   : > { %5920 = shalt.err (!%p5917_p5)
}
 0x226   : > { %5153 = dma.hbm_to_vmem [thread:$0]  (%p7672_p0), %s6874_s4, 16, %s1023_s28, %s6459_s0  }
 0x227   : > { %s1032_s27 = scalar_lea.vmem [#allocation24], %s6442_s26  ;;  %s7687_s24 = sld [smem:[#allocation60_spill]] }
 0x228   : > { %s1039_s1 = sshll.u32 %s1032_s27, 4  ;;  %s5921_s19 = scalar_lea.hbm %s6899_s5, 16  ;;  %s1040_s1 = int_to_ptr.vmem [resolvable:$true] %s1039_s1 }
 0x229   : > { %p5922_p11 = scmp.ne.s32.totalorder %s6899_s5, %s5921_s19  ;;  %s5925_s20 = scalar_lea.hbm %s7686_s7, 32 }
 0x22a   : > { %p5926_p2 = scmp.lt.u32.totalorder %s6899_s5, %s7686_s7  ;;  %p5927_p9 = scmp.lt.u32.totalorder %s5925_s20, %s5921_s19 }
 0x22b   : > { %p5923_p13 = pnand %p5922_p11, %p7672_p0  ;;  %p5929_p3 = scmp.lt.u32.totalorder %s5921_s19, %s6899_s5 }
 0x22c   : > { %p5928_p12 = por %p5927_p9, %p5926_p2 }
 0x22d   : > { %s6924_s18 = scalar_lea.hbm %s7687_s24, %s6487_s29  ;;  %p5924_p8 = pneg %p5923_p13 }
 0x22e   : > { %p5930_p4 = por %p5929_p3, %p5928_p12 }
 0x230   : > { %p5931_p10 = pnand %p5930_p4, %p5924_p8 }
 0x232   : > { %5934 = shalt.err (!%p5931_p10)
}
 0x233   : > { %s5935_s4 = scalar_lea.vmem %s1040_s1, 16  ;;  %s6139_s28 = smov [#allocation24]  }
 0x234   : > { %p5936_p1 = scmp.ne.s32.totalorder %s1040_s1, %s5935_s4  ;;  %s5939_s27 = sshll.u32 %s6139_s28, 4  ;;  %s5940_s27 = int_to_ptr.vmem [resolvable:$false] %s5939_s27 }
 0x235   : > { %s5941_s2 = scalar_lea.vmem %s5940_s27, 32  ;;  %p5942_p5 = scmp.lt.s32.totalorder %s1040_s1, %s5940_s27 }
 0x236   : > { %p5937_p6 = pnand %p5936_p1, %p7672_p0  ;;  %p5943_p11 = scmp.lt.s32.totalorder %s5941_s2, %s5935_s4 }
 0x238   : > { %p5938_p7 = pneg %p5937_p6  ;;  %p5944_p13 = por %p5943_p11, %p5942_p5 }
 0x23a   : > { %p5945_p2 = pnand %p5944_p13, %p5938_p7 }
 0x23c   : > { %5948 = shalt.err (!%p5945_p2)
}
 0x23d   : > { %5154 = dma.hbm_to_vmem [thread:$0]  (%p7672_p0), %s6899_s5, 16, %s1040_s1, %s6459_s0  }
 0x23e   : > { %s1049_s6 = scalar_lea.vmem [#allocation25], %s6442_s26  ;;  %s7688_s20 = sld [smem:[#allocation61_spill]] }
 0x23f   : > { %s1056_s19 = sshll.u32 %s1049_s6, 4  ;;  %s5949_s8 = scalar_lea.hbm %s6924_s18, 16  ;;  %s1057_s19 = int_to_ptr.vmem [resolvable:$true] %s1056_s19 }
 0x240   : > { %p5950_p8 = scmp.ne.s32.totalorder %s6924_s18, %s5949_s8  ;;  %s5953_s27 = scalar_lea.hbm %s7687_s24, 32 }
 0x241   : > { %p5954_p3 = scmp.lt.u32.totalorder %s6924_s18, %s7687_s24  ;;  %p5955_p4 = scmp.lt.u32.totalorder %s5953_s27, %s5949_s8 }
 0x242   : > { %p5951_p9 = pnand %p5950_p8, %p7672_p0  ;;  %p5957_p1 = scmp.lt.u32.totalorder %s5949_s8, %s6924_s18 }
 0x243   : > { %p5956_p10 = por %p5955_p4, %p5954_p3 }
 0x244   : > { %s6949_s21 = scalar_lea.hbm %s7688_s20, %s6487_s29  ;;  %p5952_p12 = pneg %p5951_p9 }
 0x245   : > { %p5958_p6 = por %p5957_p1, %p5956_p10 }
 0x247   : > { %p5959_p7 = pnand %p5958_p6, %p5952_p12 }
 0x249   : > { %5962 = shalt.err (!%p5959_p7)
}
 0x24a   : > { %s5963_s5 = scalar_lea.vmem %s1057_s19, 16  ;;  %s6140_s1 = smov [#allocation25]  }
 0x24b   : > { %p5964_p5 = scmp.ne.s32.totalorder %s1057_s19, %s5963_s5  ;;  %s5967_s6 = sshll.u32 %s6140_s1, 4  ;;  %s5968_s6 = int_to_ptr.vmem [resolvable:$false] %s5967_s6 }
 0x24c   : > { %s5969_s17 = scalar_lea.vmem %s5968_s6, 32  ;;  %p5970_p2 = scmp.lt.s32.totalorder %s1057_s19, %s5968_s6 }
 0x24d   : > { %p5965_p11 = pnand %p5964_p5, %p7672_p0  ;;  %p5971_p8 = scmp.lt.s32.totalorder %s5969_s17, %s5963_s5 }
 0x24f   : > { %p5966_p13 = pneg %p5965_p11  ;;  %p5972_p9 = por %p5971_p8, %p5970_p2 }
 0x251   : > { %p5973_p3 = pnand %p5972_p9, %p5966_p13 }
 0x253   : > { %5976 = shalt.err (!%p5973_p3)
}
 0x254   : > { %5155 = dma.hbm_to_vmem [thread:$0]  (%p7672_p0), %s6924_s18, 16, %s1057_s19, %s6459_s0  }
 0x255   : > { %s1066_s3 = scalar_lea.vmem [#allocation26], %s6442_s26  ;;  %s7689_s28 = sld [smem:[#allocation62_spill]] }
 0x256   : > { %s1073_s15 = sshll.u32 %s1066_s3, 4  ;;  %s5977_s5 = scalar_lea.hbm %s6949_s21, 16  ;;  %s1074_s15 = int_to_ptr.vmem [resolvable:$true] %s1073_s15 }
 0x257   : > { %p5978_p12 = scmp.ne.s32.totalorder %s6949_s21, %s5977_s5  ;;  %s5981_s17 = scalar_lea.hbm %s7688_s20, 32 }
 0x258   : > { %p5982_p1 = scmp.lt.u32.totalorder %s6949_s21, %s7688_s20  ;;  %p5983_p6 = scmp.lt.u32.totalorder %s5981_s17, %s5977_s5 }
 0x259   : > { %p5979_p4 = pnand %p5978_p12, %p7672_p0  ;;  %p5985_p5 = scmp.lt.u32.totalorder %s5977_s5, %s6949_s21 }
 0x25a   : > { %p5984_p7 = por %p5983_p6, %p5982_p1 }
 0x25b   : > { %s7690_s2 = smov %s7689_s28  ;;  %s6974_s27 = scalar_lea.hbm %s7689_s28, %s6487_s29 }
 0x25c   : > { %p5980_p10 = pneg %p5979_p4  ;;  %p5986_p11 = por %p5985_p5, %p5984_p7 }
 0x25e   : > { %p5987_p13 = pnand %p5986_p11, %p5980_p10 }
 0x260   : > { %5990 = shalt.err (!%p5987_p13)
}
 0x261   : > { %s5991_s29 = scalar_lea.vmem %s1074_s15, 16  ;;  %s6141_s18 = smov [#allocation26]  }
 0x262   : > { %p5992_p2 = scmp.ne.s32.totalorder %s1074_s15, %s5991_s29  ;;  %s5995_s19 = sshll.u32 %s6141_s18, 4  ;;  %s5996_s19 = int_to_ptr.vmem [resolvable:$false] %s5995_s19 }
 0x263   : > { %s5997_s3 = scalar_lea.vmem %s5996_s19, 32  ;;  %p5998_p3 = scmp.lt.s32.totalorder %s1074_s15, %s5996_s19 }
 0x264   : > { %p5993_p8 = pnand %p5992_p2, %p7672_p0  ;;  %p5999_p12 = scmp.lt.s32.totalorder %s5997_s3, %s5991_s29 }
 0x266   : > { %p5994_p9 = pneg %p5993_p8  ;;  %p6000_p4 = por %p5999_p12, %p5998_p3 }
 0x268   : > { %p6001_p1 = pnand %p6000_p4, %p5994_p9 }
 0x26a   : > { %6004 = shalt.err (!%p6001_p1)
}
 0x26b   : > { %5156 = dma.hbm_to_vmem [thread:$0]  (%p7672_p0), %s6949_s21, 16, %s1074_s15, %s6459_s0  }
 0x26c   : > { %s1083_s9 = scalar_lea.vmem [#allocation27], %s6442_s26  ;;  %s6005_s8 = scalar_lea.hbm %s6974_s27, 16 }
 0x26d   : > { %s1090_s7 = sshll.u32 %s1083_s9, 4  ;;  %p6006_p10 = scmp.ne.s32.totalorder %s6974_s27, %s6005_s8  ;;  %s1091_s7 = int_to_ptr.vmem [resolvable:$true] %s1090_s7 }
 0x26e   : > { %s6009_s5 = scalar_lea.hbm %s7690_s2, 32  ;;  %p6010_p5 = scmp.lt.u32.totalorder %s6974_s27, %s7690_s2 }
 0x26f   : > { %p6007_p6 = pnand %p6006_p10, %p7672_p0  ;;  %p6011_p11 = scmp.lt.u32.totalorder %s6009_s5, %s6005_s8 }
 0x270   : > { %p6013_p2 = scmp.lt.u32.totalorder %s6005_s8, %s6974_s27 }
 0x271   : > { %p6008_p7 = pneg %p6007_p6  ;;  %p6012_p13 = por %p6011_p11, %p6010_p5 }
 0x273   : > { %p6014_p8 = por %p6013_p2, %p6012_p13 }
 0x275   : > { %p6015_p9 = pnand %p6014_p8, %p6008_p7 }
 0x277   : > { %6018 = shalt.err (!%p6015_p9)
}
 0x278   : > { %s6019_s26 = scalar_lea.vmem %s1091_s7, 16  ;;  %s6142_s21 = smov [#allocation27]  }
 0x279   : > { %p6020_p3 = scmp.ne.s32.totalorder %s1091_s7, %s6019_s26  ;;  %s6023_s15 = sshll.u32 %s6142_s21, 4  ;;  %s6024_s15 = int_to_ptr.vmem [resolvable:$false] %s6023_s15 }
 0x27a   : > { %s6025_s17 = scalar_lea.vmem %s6024_s15, 32  ;;  %p6026_p1 = scmp.lt.s32.totalorder %s1091_s7, %s6024_s15 }
 0x27b   : > { %p6021_p12 = pnand %p6020_p3, %p7672_p0  ;;  %p6027_p10 = scmp.lt.s32.totalorder %s6025_s17, %s6019_s26 }
 0x27d   : > { %p6022_p4 = pneg %p6021_p12  ;;  %p6028_p6 = por %p6027_p10, %p6026_p1 }
 0x27f   : > { %p6029_p5 = pnand %p6028_p6, %p6022_p4 }
 0x281   : > { %6032 = shalt.err (!%p6029_p5)
}
 0x282   : > { %5157 = dma.hbm_to_vmem [thread:$0]  (%p7672_p0), %s6974_s27, 16, %s1091_s7, %s6459_s0  }
 0x283 PF: > { %s7691_s29 = sld [smem:[#allocation44_spill]] }
 0x289   : > { %p7692_p7 = scmp.ne.s32.totalorder %s7691_s29, 0 }
 0x28a   : > { %s7693_s18 = sld [smem:[#allocation40_spill]] (!%p7692_p7) }
 0x28b   : > { %1099 = sbr.rel (%p7692_p7) target bundleno = 9414 (0x24c6), region = 116 }
 0x290   : > { %p7694_p11 = scmp.eq.s32.totalorder (!%p7692_p7), %s7693_s18, 0 }
 0x292   : > { %6076 = dma.done.wait (%p7694_p11), [#allocation4], 256   ;;  %p7695_p13 = pmov %p7694_p11 }
 0x293   : > { %p7696_p2 = pmov %p7694_p11 }
 0x294   : > { %6078 = vsyncadd (%p7695_p13), [#allocation4], 4294967040 }
 0x295   : > { %6080 = dma.done.wait (%p7696_p2), [#allocation7], 512   ;;  %p7697_p8 = pmov %p7696_p2 }
 0x296   : > { %s7698_s30 = sld [smem:[#allocation38_spill]]  ;;  %s7699_s19 = sld [smem:[#allocation43_spill]] }
 0x297   : > { %6082 = vsyncadd (%p7697_p8), [#allocation7], 4294966784  ;;  %s1109_s0 = sand.u32 1, %s7693_s18  }
 0x298   : > { %s1110_s9 = scalar_lea.sflag [#allocation4], %s1109_s0 }
 0x29c   : > { %s7025_s27 = sand.u32 1, %s7698_s30   ;;  %p7700_p0 = scmp.ne.s32.totalorder %s7699_s19, 0 }
 0x29d   : > { %s7028_s3 = sshll.u32 %s7025_s27, 4 }
 0x29e   : > { %6084 = dma.done.wait (%p7700_p0), %s1110_s9, 2256  }
 0x29f   : > { %6086 = vsyncadd (%p7700_p0), %s1110_s9, 4294965040  ;;  %s4659_s8 = sshll.u32 %s7025_s27, 5  ;;  %s7038_s28 = scalar_lea.vmem [#allocation10], %s7028_s3 }
 0x2a0   : > { %s1147_s1 = scalar_lea.vmem [#allocation12], %s7028_s3  ;;  %s1155_s6 = scalar_lea.vmem [#allocation13], %s7025_s27 }
 0x2a1   : > { %s1164_s26 = scalar_lea.vmem [#allocation14], %s7028_s3  ;;  %s1172_s21 = scalar_lea.vmem [#allocation15], %s7025_s27 }
 0x2a2   : > { %s7046_s15 = scalar_lea.vmem [#allocation16], %s7028_s3  ;;  %s1189_s17 = scalar_lea.vmem [#allocation17], %s7025_s27 }
 0x2a3   : > { %s1198_s29 = scalar_lea.vmem [#allocation18], %s7028_s3  ;;  %s7051_s19 = scalar_lea.vmem [#allocation20], %s4659_s8 }
 0x2a4   : > { %s1231_s9 = scalar_lea.vmem [#allocation22], %s7025_s27  ;;  %s1239_s4 = scalar_lea.vmem [#allocation23], %s7025_s27 }
 0x2a5   : > { %p7701_p9 = pmov %p7696_p2 }
 0x2a6   : > { %p7702_p3 = pmov %p7696_p2 }
 0x2a7   : > { %6088 = dma.done.wait (%p7701_p9), [#allocation7], 16  }
 0x2a8   : > { %6090 = vsyncadd (%p7702_p3), [#allocation7], 4294967280  ;;  %p7703_p12 = pmov %p7696_p2 }
 0x2a9   : > { %p7704_p4 = pmov %p7696_p2 }
 0x2aa   : > { %6092 = dma.done.wait (%p7703_p12), [#allocation30], 16  }
 0x2ab   : > { %6094 = vsyncadd (%p7704_p4), [#allocation30], 4294967280  ;;  %p7705_p1 = scmp.ne.s32.totalorder %s7693_s18, 0 }
 0x2ac   : > { %v1426_v0 = vld [vmem:[#allocation3] sm:$0xff] (!%p7705_p1)  ;;  %vm1428_vm0 = vcmask (!%p7705_p1), 261120   ;;  %v1427_v1 = vld [vmem:[#allocation3 + $0x8] sm:$0xff] (!%p7705_p1) }
 0x2ad   : > { %1425 = sbr.rel (%p7705_p1) target bundleno = 692 (0x2b4), region = 216  ;;  %1429 = vst.msk [vmem:[#allocation2] sm:$0xff] (!%p7705_p1), %vm1428_vm0, %v1426_v0  ;;  %1430 = vst.msk [vmem:[#allocation2 + $0x8] sm:$0xff] (!%p7705_p1), %vm1428_vm0, %v1427_v1 }
 0x2b4 PF: > { %s7706_s8 = scalar_lea.vmem [#allocation8], %s7028_s3  ;;  %v6143_v3 = vmov 0.0   ;;  %vm6144_vm1 = vmmov 0   ;;  %v7078_v5 = vld [vmem:[#allocation2] sm:$0xff]  ;;  %v7080_v6 = vld [vmem:[#allocation2 + $0x8] sm:$0xff]  ;;  %vm1463_vm2 = vcmask 261120  }
 0x2b5   : > { %v5269_v2 = vld [vmem:[%s7706_s8] sm:$0xff]   ;;  %4846 = vmatprep.subr.bf16.mxu1 %v6143_v3  ;;  %4860 = vmatprep.subr.bf16.mxu0 %v6143_v3  ;;  %s7707_s5 = smov %s7706_s8  ;;  %v1439_v7 = vpack.c.bf16 %v7080_v6, %v7078_v5  ;;  %s7708_s18 = scalar_lea.vmem [#allocation9], %s7025_s27  ;;  %vm1518_vm3 = vcmask 64512   ;;  %vm1643_vm4 = vcmask 1043456   ;;  %vm2895_vm5 = vcmask 130048  }
 0x2b6   : > { %4847 = vmatpush3.bf16.msra.mxu1 %v5269_v2  ;;  %v5270_v4 = vld [vmem:[%s7707_s5 + $0x8] sm:$0xff]   ;;  %4850 = vmatprep.mubr.msk.bf16.mxu1 %vm6144_vm1, %v6143_v3  ;;  %v4663_v8 = vld [vmem:[%s7708_s18] ss:$0 sm:$0xff]  ;;  %s6145_s5 = smov 96   ;;  %s6146_s8 = smov 64   ;;  %vm4026_vm6 = vcmask 523264  }
 0x2b7   : > { %4848 = vmatprep.subr.bf16.mxu1 %v6143_v3  ;;  %4862 = vmatprep.mubr.msk.bf16.mxu0 %vm6144_vm1, %v6143_v3  ;;  %s6147_s18 = smov 120   ;;  %s6148_s10 = smov 88   ;;  %v1510_v48 = vld [vmem:[%s7038_s28] sm:$0xf] }
 0x2b8   : > { %v1740_v51 = vsel %vm1643_vm4, %v1510_v48, 0  ;;  %s6150_s0 = smov 112   ;;  %s6151_s30 = smov 80  }
 0x2b9   : > { %s6153_s2 = smov 72   ;;  %s6154_s7 = smov 104  }
 0x2ba   : > { %4849 = vmatpush3.bf16.msra.mxu1 %v5270_v4  ;;  %s7712_s3 = scalar_lea.vmem [#allocation19], %s7025_s27 }
 0x2bb   : > { %4854 = vmatprep.subr.bf16.mxu1 %v6143_v3 }
 0x2bd   : > { %4851 = vmatmul.mubr.msk.bf16.vlgmr.msra.gmra.mrb[0].mxu1 %vm1463_vm2, %v1439_v7 }
 0x2be   : > { %4856 = vmatprep.mubr.msk.bf16.mxu1 %vm6144_vm1, %v6143_v3 }
 0x390   : > { %v1501_v9 = vpop.f32.mrb[0].mxu1 }
 0x391   : > { %v1502_v10 = vadd.f32 %v4663_v8, %v1501_v9  ;;  %v4852_v11 = vpop.f32.mrb[1].mxu1 }
 0x392   : > { %v1504_v12 = vpop.f32.mrb[2].mxu1 }
 0x393   : > { %v7093_v13 = vpack.c.bf16 %v1502_v10, %v1502_v10  ;;  %v1505_v14 = vadd.f32 %v4663_v8, %v1504_v12  ;;  %v4853_v15 = vpop.f32.mrb[3].mxu1 }
 0x395   : > { %1516 = vrot.lane.b32.xlu0 %v7093_v13, %s6145_s5  ;;  %v7097_v16 = vpack.c.bf16 %v1505_v14, %v1505_v14 }
 0x399   : > { %1566 = vrot.lane.b32.xlu0 %v7097_v16, %s6145_s5 }
 0x407   : > { %v1517_v17 = vpop.permute.xlu0 %1516 }
 0x408   : > { %v1523_v18 = vsel %vm1518_vm3, %v1517_v17, 0 }
 0x409   : > { %4855 = vmatpush3.bf16.xpose.msra.mxu1 %v1523_v18 }
 0x40a   : > { %4866 = vmatprep.subr.bf16.mxu1 %v6143_v3 }
 0x40b   : > { %v1567_v19 = vpop.permute.xlu0 %1566 }
 0x40c   : > { %v1572_v20 = vsel %vm1518_vm3, %v1567_v19, 0 }
 0x40d   : > { %4861 = vmatpush3.bf16.xpose.msra.mxu0 %v1572_v20 }
 0x40e   : > { %4872 = vmatprep.subr.bf16.mxu0 %v6143_v3 }
 0x410   : > { %4857 = vmatmul.mubr.msk.bf16.vlgmr.msra.gmra.mrb[4].mxu1 %vm1518_vm3, %v7093_v13 }
 0x411   : > { %4868 = vmatprep.mubr.msk.bf16.mxu1 %vm6144_vm1, %v6143_v3 }
 0x414   : > { %4863 = vmatmul.mubr.msk.bf16.vlgmr.msra.gmra.mrb[0].mxu0 %vm1518_vm3, %v7097_v16 }
 0x415   : > { %4874 = vmatprep.mubr.msk.bf16.mxu0 %vm6144_vm1, %v6143_v3 }
 0x4e3   : > { %v1559_v21 = vpop.f32.mrb[4].mxu1 }
 0x4e4   : > { %v4858_v22 = vpop.f32.mrb[5].mxu1  ;;  %v1614_v23 = vsel %vm1518_vm3, %v1559_v21, -inf }
 0x4e5   : > { %1615 = vmax.xlane.f32.xlu1 %v1614_v23  ;;  %v1562_v24 = vpop.f32.mrb[6].mxu1 }
 0x4e6   : > { %v4859_v25 = vpop.f32.mrb[7].mxu1 }
 0x4e7   : > { %v1608_v26 = vpop.f32.mrb[0].mxu0 }
 0x4e8   : > { %v4864_v27 = vpop.f32.mrb[1].mxu0  ;;  %v1617_v28 = vsel %vm1518_vm3, %v1608_v26, -inf }
 0x4e9   : > { %v1611_v29 = vpop.f32.mrb[2].mxu0  ;;  %1618 = vmax.xlane.f32.xlu1 %v1617_v28 }
 0x4ea   : > { %v4865_v30 = vpop.f32.mrb[3].mxu0 }
 0x4fa   : > { %1638 = vrot.lane.b32.xlu1 %v7093_v13, %s6146_s8 }
 0x572   : > { %v1616_v31 = vpop.xlane.xlu1 %1615 }
 0x573   : > { %v1620_v32 = vsub.f32 %v1559_v21, %v1616_v31 }
 0x575   : > { %v1622_v33 = vmul.f32 1.442695, %v1620_v32 }
 0x576   : > { %v1619_v34 = vpop.xlane.xlu1 %1618 }
 0x577   : > { %5281 = vpow2.f32 %v1622_v33  ;;  %v1621_v35 = vsub.f32 %v1608_v26, %v1619_v34 }
 0x579   : > { %v1624_v36 = vmul.f32 1.442695, %v1621_v35 }
 0x57a   : > { %v1639_v37 = vpop.permute.xlu1 %1638 }
 0x57b   : > { %5283 = vpow2.f32 %v1624_v36  ;;  %v1645_v38 = vsel %vm1643_vm4, %v1639_v37, 0 }
 0x57c   : > { %4867 = vmatpush3.bf16.msra.mxu1 %v1645_v38 }
 0x57d   : > { %4878 = vmatprep.subr.bf16.mxu1 %v6143_v3 }
 0x581   : > { %v5282_v39 = vpop.eup %5281 }
 0x582   : > { %v1626_v40 = vsel %vm1518_vm3, %v5282_v39, 0.0 }
 0x583   : > { %1627 = vadd.xlane.f32.xlu0 %v1626_v40 }
 0x585   : > { %v5284_v41 = vpop.eup %5283 }
 0x586   : > { %v1629_v42 = vsel %vm1518_vm3, %v5284_v41, 0.0 }
 0x587   : > { %1630 = vadd.xlane.f32.xlu1 %v1629_v42 }
 0x598   : > { %1687 = vrot.lane.b32.xlu1 %v7097_v16, %s6146_s8  ;;  %s6149_s8 = smov 56  }
 0x599   : > { %1791 = vrot.lane.b32.xlu0 %v7093_v13, %s6147_s18 }
 0x59c   : > { %1793 = vrot.lane.b32.xlu1 %v7093_v13, %s6148_s10 }
 0x5a0   : > { %1843 = vrot.lane.b32.xlu1 %v7097_v16, %s6148_s10 }
 0x5a4   : > { %1841 = vrot.lane.b32.xlu1 %v7097_v16, %s6147_s18 }
 0x610   : > { %v1628_v43 = vpop.xlane.xlu0 %1627 }
 0x611   : > { %5285 = vrcp.f32 %v1628_v43 }
 0x614   : > { %v1631_v44 = vpop.xlane.xlu1 %1630  ;;  %v1792_v57 = vpop.permute.xlu0 %1791 }
 0x615   : > { %5287 = vrcp.f32 %v1631_v44 }
 0x618   : > { %v1688_v45 = vpop.permute.xlu1 %1687 }
 0x619   : > { %v1693_v46 = vsel %vm1643_vm4, %v1688_v45, 0 }
 0x61a   : > { %4873 = vmatpush3.bf16.msra.mxu0 %v1693_v46 }
 0x61b   : > { %v5286_v47 = vpop.eup %5285  ;;  %4884 = vmatprep.subr.bf16.mxu0 %v6143_v3 }
 0x61c   : > { %v1634_v49 = vmul.f32 %v5286_v47, %v5282_v39  ;;  %v1794_v54 = vpop.permute.xlu1 %1793 }
 0x61d   : > { %v1799_v56 = vsel %vm1518_vm3, %v1794_v54, 0 }
 0x61e   : > { %v1636_v50 = vpack.c.bf16 %v1634_v49, %v1634_v49 }
 0x61f   : > { %v5288_v52 = vpop.eup %5287 }
 0x620   : > { %v1635_v53 = vmul.f32 %v5288_v52, %v5284_v41  ;;  %4869 = vmatmul.mubr.msk.bf16.vlgmr.msra.gmra.mrb[8].mxu1 %vm1518_vm3, %v1636_v50  ;;  %v1844_v62 = vpop.permute.xlu1 %1843  ;;  %v1511_v50 = vld [vmem:[%s7038_s28 + $0x4] sm:$0xf] }
 0x621   : > { %4879 = vmatpush3.bf16.msra.mxu1 %v1740_v51  ;;  %4880 = vmatprep.mubr.msk.bf16.mxu1 %vm6144_vm1, %v6143_v3  ;;  %v1849_v4 = vsel %vm1518_vm3, %v1844_v62, 0  ;;  %v2016_v51 = vsel %vm1643_vm4, %v1511_v50, 0 }
 0x622   : > { %v1637_v55 = vpack.c.bf16 %v1635_v53, %v1635_v53  ;;  %4890 = vmatprep.subr.bf16.mxu1 %v6143_v3 }
 0x624   : > { %4875 = vmatmul.mubr.msk.bf16.vlgmr.msra.gmra.mrb[4].mxu0 %vm1518_vm3, %v1637_v55  ;;  %v1842_v11 = vpop.permute.xlu1 %1841 }
 0x625   : > { %4885 = vmatpush3.bf16.xpose.msra.mxu0 %v1799_v56  ;;  %4886 = vmatprep.mubr.msk.bf16.mxu0 %vm6144_vm1, %v6143_v3 }
 0x626   : > { %4896 = vmatprep.subr.bf16.mxu0 %v6143_v3 }
 0x62c   : > { %4887 = vmatmul.mubr.msk.bf16.vlgmr.msra.gmra.mrb[8].mxu0 %vm1518_vm3, %v1792_v57 }
 0x62d   : > { %4898 = vmatprep.mubr.msk.bf16.mxu0 %vm6144_vm1, %v6143_v3 }
 0x6f3   : > { %v1681_v58 = vpop.f32.mrb[8].mxu1 }
 0x6f4   : > { %v4870_v59 = vpop.f32.mrb[9].mxu1 }
 0x6f5   : > { %v1684_v60 = vpop.f32.mrb[10].mxu1 }
 0x6f6   : > { %v4871_v61 = vpop.f32.mrb[11].mxu1 }
 0x6f7   : > { %v1729_v63 = vpop.f32.mrb[4].mxu0 }
 0x6f8   : > { %v1735_v0 = vpack.c.bf16 %v1729_v63, %v1681_v58  ;;  %v4876_v1 = vpop.f32.mrb[5].mxu0 }
 0x6f9   : > { %v1732_v2 = vpop.f32.mrb[6].mxu0 }
 0x6fa   : > { %v4877_v7 = vpop.f32.mrb[7].mxu0  ;;  %4881 = vmatmul.mubr.msk.bf16.vlgmr.msra.gmra.mrb[12].mxu1 %vm1518_vm3, %v1735_v0 }
 0x6fb   : > { %4891 = vmatpush3.bf16.xpose.msra.mxu1 %v1849_v4  ;;  %4892 = vmatprep.mubr.msk.bf16.mxu1 %vm6144_vm1, %v6143_v3 }
 0x6fc   : > { %4902 = vmatprep.subr.bf16.mxu1 %v6143_v3 }
 0x6ff   : > { %v1835_v8 = vpop.f32.mrb[8].mxu0 }
 0x700   : > { %v4888_v9 = vpop.f32.mrb[9].mxu0  ;;  %v1891_v10 = vsel %vm1518_vm3, %v1835_v8, -inf }
 0x701   : > { %1892 = vmax.xlane.f32.xlu1 %v1891_v10  ;;  %v1838_v12 = vpop.f32.mrb[10].mxu0 }
 0x702   : > { %v4889_v14 = vpop.f32.mrb[11].mxu0  ;;  %4893 = vmatmul.mubr.msk.bf16.vlgmr.msra.gmra.mrb[16].mxu1 %vm1518_vm3, %v1842_v11 }
 0x703   : > { %4904 = vmatprep.mubr.msk.bf16.mxu1 %vm6144_vm1, %v6143_v3 }
 0x78e   : > { %v1893_v15 = vpop.xlane.xlu1 %1892 }
 0x78f   : > { %v1897_v17 = vsub.f32 %v1835_v8, %v1893_v15 }
 0x791   : > { %v1899_v18 = vmul.f32 1.442695, %v1897_v17 }
 0x793   : > { %5289 = vpow2.f32 %v1899_v18 }
 0x79d   : > { %v5290_v19 = vpop.eup %5289 }
 0x79e   : > { %v1903_v20 = vsel %vm1518_vm3, %v5290_v19, 0.0 }
 0x79f   : > { %1904 = vadd.xlane.f32.xlu1 %v1903_v20 }
 0x7cd   : > { %v7155_v21 = vpop.f32.mrb[12].mxu1 }
 0x7ce   : > { %v4882_v22 = vpop.f32.mrb[13].mxu1 }
 0x7cf   : > { %v7157_v23 = vpop.f32.mrb[14].mxu1 }
 0x7d0   : > { %v4883_v24 = vpop.f32.mrb[15].mxu1 }
 0x7d5   : > { %v1885_v25 = vpop.f32.mrb[16].mxu1 }
 0x7d6   : > { %v4894_v26 = vpop.f32.mrb[17].mxu1  ;;  %v1894_v27 = vsel %vm1518_vm3, %v1885_v25, -inf }
 0x7d7   : > { %1895 = vmax.xlane.f32.xlu0 %v1894_v27  ;;  %v1888_v28 = vpop.f32.mrb[18].mxu1 }
 0x7d8   : > { %v4895_v29 = vpop.f32.mrb[19].mxu1 }
 0x7ed   : > { %1963 = vrot.lane.b32.xlu0 %v7097_v16, %s6149_s8 }
 0x7f1   : > { %2061 = vrot.lane.b32.xlu0 %v7093_v13, %s6150_s0 }
 0x82c   : > { %v1905_v37 = vpop.xlane.xlu1 %1904 }
 0x864   : > { %v1896_v30 = vpop.xlane.xlu0 %1895 }
 0x865   : > { %v1898_v31 = vsub.f32 %v1885_v25, %v1896_v30 }
 0x867   : > { %v1901_v32 = vmul.f32 1.442695, %v1898_v31 }
 0x868   : > { %v1964_v33 = vpop.permute.xlu0 %1963 }
 0x869   : > { %5291 = vpow2.f32 %v1901_v32  ;;  %v1969_v34 = vsel %vm1643_vm4, %v1964_v33, 0 }
 0x86a   : > { %4903 = vmatpush3.bf16.msra.mxu1 %v1969_v34  ;;  %5293 = vrcp.f32 %v1905_v37 }
 0x86b   : > { %4914 = vmatprep.subr.bf16.mxu1 %v6143_v3 }
 0x86c   : > { %v2062_v49 = vpop.permute.xlu0 %2061 }
 0x873   : > { %v5292_v35 = vpop.eup %5291 }
 0x874   : > { %v1906_v36 = vsel %vm1518_vm3, %v5292_v35, 0.0  ;;  %v5294_v38 = vpop.eup %5293 }
 0x875   : > { %1907 = vadd.xlane.f32.xlu1 %v1906_v36  ;;  %v1911_v40 = vmul.f32 %v5294_v38, %v5290_v19 }
 0x877   : > { %v1913_v43 = vpack.c.bf16 %v1911_v40, %v1911_v40  ;;  %v1512_v40 = vld [vmem:[%s7038_s28 + $0x8] sm:$0xf] }
 0x886   : > { %1915 = vrot.lane.b32.xlu1 %v7093_v13, %s6149_s8  ;;  %s7709_s8 = scalar_lea.vmem [#allocation11], %s7025_s27 }
 0x887   : > { %v4672_v14 = vld [vmem:[%s7709_s8] ss:$0 sm:$0xff]  ;;  %s6152_s8 = smov 48  }
 0x888   : > { %v1789_v15 = vadd.f32 %v4672_v14, %v7155_v21  ;;  %v1790_v18 = vadd.f32 %v4672_v14, %v7157_v23 }
 0x88a   : > { %2063 = vrot.lane.b32.xlu1 %v7093_v13, %s6151_s30 }
 0x88e   : > { %2113 = vrot.lane.b32.xlu1 %v7097_v16, %s6151_s30 }
 0x892   : > { %2111 = vrot.lane.b32.xlu1 %v7097_v16, %s6150_s0 }
 0x902   : > { %v1908_v39 = vpop.xlane.xlu1 %1907 }
 0x903   : > { %5295 = vrcp.f32 %v1908_v39 }
 0x906   : > { %v1916_v41 = vpop.permute.xlu1 %1915 }
 0x907   : > { %v1921_v42 = vsel %vm1643_vm4, %v1916_v41, 0  ;;  %v2286_v41 = vsel %vm1643_vm4, %v1512_v40, 0 }
 0x908   : > { %4897 = vmatpush3.bf16.msra.mxu0 %v1921_v42 }
 0x909   : > { %4908 = vmatprep.subr.bf16.mxu0 %v6143_v3 }
 0x90a   : > { %v2064_v46 = vpop.permute.xlu1 %2063 }
 0x90b   : > { %4899 = vmatmul.mubr.msk.bf16.vlgmr.msra.gmra.mrb[12].mxu0 %vm1518_vm3, %v1913_v43  ;;  %v2069_v48 = vsel %vm1518_vm3, %v2064_v46, 0 }
 0x90c   : > { %4910 = vmatprep.mubr.msk.bf16.mxu0 %vm6144_vm1, %v6143_v3  ;;  %4909 = vmatpush3.bf16.msra.mxu0 %v2016_v51 }
 0x90d   : > { %v5296_v44 = vpop.eup %5295  ;;  %4920 = vmatprep.subr.bf16.mxu0 %v6143_v3 }
 0x90e   : > { %v1912_v45 = vmul.f32 %v5296_v44, %v5292_v35  ;;  %v2114_v56 = vpop.permute.xlu1 %2113 }
 0x90f   : > { %v2119_v61 = vsel %vm1518_vm3, %v2114_v56, 0 }
 0x910   : > { %v1914_v47 = vpack.c.bf16 %v1912_v45, %v1912_v45 }
 0x912   : > { %4905 = vmatmul.mubr.msk.bf16.vlgmr.msra.gmra.mrb[20].mxu1 %vm1518_vm3, %v1914_v47  ;;  %v2112_v2 = vpop.permute.xlu1 %2111 }
 0x913   : > { %4915 = vmatpush3.bf16.xpose.msra.mxu1 %v2069_v48  ;;  %4916 = vmatprep.mubr.msk.bf16.mxu1 %vm6144_vm1, %v6143_v3 }
 0x914   : > { %4926 = vmatprep.subr.bf16.mxu1 %v6143_v3 }
 0x91a   : > { %4917 = vmatmul.mubr.msk.bf16.vlgmr.msra.gmra.mrb[24].mxu1 %vm1518_vm3, %v2062_v49 }
 0x91b   : > { %4928 = vmatprep.mubr.msk.bf16.mxu1 %vm6144_vm1, %v6143_v3 }
 0x9de   : > { %v1957_v52 = vpop.f32.mrb[12].mxu0 }
 0x9df   : > { %v4900_v53 = vpop.f32.mrb[13].mxu0 }
 0x9e0   : > { %v1960_v54 = vpop.f32.mrb[14].mxu0 }
 0x9e1   : > { %v4901_v55 = vpop.f32.mrb[15].mxu0 }
 0x9e5   : > { %v2005_v57 = vpop.f32.mrb[20].mxu1 }
 0x9e6   : > { %v2011_v58 = vpack.c.bf16 %v2005_v57, %v1957_v52  ;;  %v4906_v59 = vpop.f32.mrb[21].mxu1 }
 0x9e7   : > { %v2008_v60 = vpop.f32.mrb[22].mxu1 }
 0x9e8   : > { %v4907_v62 = vpop.f32.mrb[23].mxu1  ;;  %4911 = vmatmul.mubr.msk.bf16.vlgmr.msra.gmra.mrb[16].mxu0 %vm1518_vm3, %v2011_v58 }
 0x9e9   : > { %4921 = vmatpush3.bf16.xpose.msra.mxu0 %v2119_v61  ;;  %4922 = vmatprep.mubr.msk.bf16.mxu0 %vm6144_vm1, %v6143_v3 }
 0x9ea   : > { %4932 = vmatprep.subr.bf16.mxu0 %v6143_v3 }
 0x9ed   : > { %v2105_v63 = vpop.f32.mrb[24].mxu1 }
 0x9ee   : > { %v4918_v0 = vpop.f32.mrb[25].mxu1  ;;  %v2161_v1 = vsel %vm1518_vm3, %v2105_v63, -inf }
 0x9ef   : > { %2162 = vmax.xlane.f32.xlu0 %v2161_v1  ;;  %v2108_v4 = vpop.f32.mrb[26].mxu1 }
 0x9f0   : > { %v4919_v7 = vpop.f32.mrb[27].mxu1  ;;  %4923 = vmatmul.mubr.msk.bf16.vlgmr.msra.gmra.mrb[20].mxu0 %vm1518_vm3, %v2112_v2 }
 0x9f1   : > { %4934 = vmatprep.mubr.msk.bf16.mxu0 %vm6144_vm1, %v6143_v3 }
 0xa7c   : > { %v2163_v8 = vpop.xlane.xlu0 %2162 }
 0xa7d   : > { %v2167_v9 = vsub.f32 %v2105_v63, %v2163_v8 }
 0xa7f   : > { %v2169_v10 = vmul.f32 1.442695, %v2167_v9 }
 0xa81   : > { %5297 = vpow2.f32 %v2169_v10 }
 0xa8b   : > { %v5298_v11 = vpop.eup %5297 }
 0xa8c   : > { %v2173_v12 = vsel %vm1518_vm3, %v5298_v11, 0.0 }
 0xa8d   : > { %2174 = vadd.xlane.f32.xlu0 %v2173_v12 }
 0xabb   : > { %v2052_v17 = vpop.f32.mrb[16].mxu0 }
 0xabc   : > { %v7203_v19 = vadd.f32 %v2052_v17, %v1789_v15  ;;  %v4912_v20 = vpop.f32.mrb[17].mxu0 }
 0xabd   : > { %v2055_v22 = vpop.f32.mrb[18].mxu0 }
 0xabe   : > { %v7205_v24 = vadd.f32 %v2055_v22, %v1790_v18  ;;  %v4913_v25 = vpop.f32.mrb[19].mxu0 }
 0xac3   : > { %v2155_v26 = vpop.f32.mrb[20].mxu0 }
 0xac4   : > { %v4924_v27 = vpop.f32.mrb[21].mxu0  ;;  %v2164_v28 = vsel %vm1518_vm3, %v2155_v26, -inf }
 0xac5   : > { %2165 = vmax.xlane.f32.xlu1 %v2164_v28  ;;  %v2158_v29 = vpop.f32.mrb[22].mxu0 }
 0xac6   : > { %v4925_v30 = vpop.f32.mrb[23].mxu0 }
 0xad6   : > { %2185 = vrot.lane.b32.xlu1 %v7093_v13, %s6152_s8 }
 0xada   : > { %2333 = vrot.lane.b32.xlu1 %v7093_v13, %s6153_s2 }
 0xade   : > { %2383 = vrot.lane.b32.xlu1 %v7097_v16, %s6153_s2 }
 0xae2   : > { %2381 = vrot.lane.b32.xlu1 %v7097_v16, %s6154_s7 }
 0xb1a   : > { %v2175_v21 = vpop.xlane.xlu0 %2174 }
 0xb1b   : > { %5299 = vrcp.f32 %v2175_v21 }
 0xb25   : > { %v5300_v23 = vpop.eup %5299 }
 0xb26   : > { %v2181_v33 = vmul.f32 %v5300_v23, %v5298_v11 }
 0xb28   : > { %v2183_v37 = vpack.c.bf16 %v2181_v33, %v2181_v33 }
 0xb52   : > { %v2166_v31 = vpop.xlane.xlu1 %2165 }
 0xb53   : > { %v2168_v32 = vsub.f32 %v2155_v26, %v2166_v31 }
 0xb55   : > { %v2171_v34 = vmul.f32 1.442695, %v2168_v32 }
 0xb56   : > { %v2186_v35 = vpop.permute.xlu1 %2185 }
 0xb57   : > { %5301 = vpow2.f32 %v2171_v34  ;;  %v2191_v36 = vsel %vm1643_vm4, %v2186_v35, 0  ;;  %v1513_v35 = vld [vmem:[%s7038_s28 + $0xc] sm:$0xf]  ;;  %s7715_s28 = scalar_lea.vmem [#allocation27], %s7025_s27 }
 0xb58   : > { %4927 = vmatpush3.bf16.msra.mxu1 %v2191_v36  ;;  %v2556_v36 = vsel %vm1643_vm4, %v1513_v35, 0 }
 0xb59   : > { %4938 = vmatprep.subr.bf16.mxu1 %v6143_v3 }
 0xb5a   : > { %v2334_v47 = vpop.permute.xlu1 %2333 }
 0xb5b   : > { %4929 = vmatmul.mubr.msk.bf16.vlgmr.msra.gmra.mrb[28].mxu1 %vm1518_vm3, %v2183_v37  ;;  %v2339_v49 = vsel %vm1518_vm3, %v2334_v47, 0 }
 0xb5c   : > { %4940 = vmatprep.mubr.msk.bf16.mxu1 %vm6144_vm1, %v6143_v3  ;;  %4939 = vmatpush3.bf16.msra.mxu1 %v2286_v41 }
 0xb5d   : > { %4950 = vmatprep.subr.bf16.mxu1 %v6143_v3 }
 0xb5e   : > { %v2384_v55 = vpop.permute.xlu1 %2383 }
 0xb5f   : > { %v2389_v60 = vsel %vm1518_vm3, %v2384_v55, 0 }
 0xb61   : > { %v5302_v38 = vpop.eup %5301 }
 0xb62   : > { %v2176_v39 = vsel %vm1518_vm3, %v5302_v38, 0.0  ;;  %v2382_v1 = vpop.permute.xlu1 %2381 }
 0xb63   : > { %2177 = vadd.xlane.f32.xlu0 %v2176_v39 }
 0xb79   : > { %2233 = vrot.lane.b32.xlu0 %v7097_v16, %s6152_s8  ;;  %s6155_s8 = smov 40  }
 0xb7d   : > { %2331 = vrot.lane.b32.xlu0 %v7093_v13, %s6154_s7 }
 0xbf0   : > { %v2178_v42 = vpop.xlane.xlu0 %2177 }
 0xbf1   : > { %5303 = vrcp.f32 %v2178_v42 }
 0xbf4   : > { %v2234_v43 = vpop.permute.xlu0 %2233 }
 0xbf5   : > { %v2239_v44 = vsel %vm1643_vm4, %v2234_v43, 0 }
 0xbf6   : > { %4933 = vmatpush3.bf16.msra.mxu0 %v2239_v44 }
 0xbf7   : > { %4944 = vmatprep.subr.bf16.mxu0 %v6143_v3 }
 0xbf8   : > { %v2332_v50 = vpop.permute.xlu0 %2331 }
 0xbfb   : > { %v5304_v45 = vpop.eup %5303 }
 0xbfc   : > { %v2182_v46 = vmul.f32 %v5304_v45, %v5302_v38 }
 0xbfe   : > { %v2184_v48 = vpack.c.bf16 %v2182_v46, %v2182_v46 }
 0xc00   : > { %4935 = vmatmul.mubr.msk.bf16.vlgmr.msra.gmra.mrb[24].mxu0 %vm1518_vm3, %v2184_v48 }
 0xc01   : > { %4945 = vmatpush3.bf16.xpose.msra.mxu0 %v2339_v49  ;;  %4946 = vmatprep.mubr.msk.bf16.mxu0 %vm6144_vm1, %v6143_v3 }
 0xc02   : > { %4956 = vmatprep.subr.bf16.mxu0 %v6143_v3 }
 0xc08   : > { %4947 = vmatmul.mubr.msk.bf16.vlgmr.msra.gmra.mrb[28].mxu0 %vm1518_vm3, %v2332_v50 }
 0xc09   : > { %4958 = vmatprep.mubr.msk.bf16.mxu0 %vm6144_vm1, %v6143_v3 }
 0xc2e   : > { %v2227_v51 = vpop.f32.mrb[28].mxu1 }
 0xc2f   : > { %v4930_v52 = vpop.f32.mrb[29].mxu1 }
 0xc30   : > { %v2230_v53 = vpop.f32.mrb[30].mxu1 }
 0xc31   : > { %v4931_v54 = vpop.f32.mrb[31].mxu1 }
 0xcd3   : > { %v2275_v56 = vpop.f32.mrb[24].mxu0 }
 0xcd4   : > { %v2281_v57 = vpack.c.bf16 %v2275_v56, %v2227_v51  ;;  %v4936_v58 = vpop.f32.mrb[25].mxu0 }
 0xcd5   : > { %v2278_v59 = vpop.f32.mrb[26].mxu0 }
 0xcd6   : > { %v4937_v61 = vpop.f32.mrb[27].mxu0  ;;  %4941 = vmatmul.mubr.msk.bf16.vlgmr.msra.gmra.mrb[32].mxu1 %vm1518_vm3, %v2281_v57 }
 0xcd7   : > { %4951 = vmatpush3.bf16.xpose.msra.mxu1 %v2389_v60  ;;  %4952 = vmatprep.mubr.msk.bf16.mxu1 %vm6144_vm1, %v6143_v3 }
 0xcd8   : > { %4962 = vmatprep.subr.bf16.mxu1 %v6143_v3 }
 0xcdb   : > { %v2375_v62 = vpop.f32.mrb[28].mxu0 }
 0xcdc   : > { %v4948_v63 = vpop.f32.mrb[29].mxu0  ;;  %v2431_v0 = vsel %vm1518_vm3, %v2375_v62, -inf }
 0xcdd   : > { %2432 = vmax.xlane.f32.xlu0 %v2431_v0  ;;  %v2378_v2 = vpop.f32.mrb[30].mxu0 }
 0xcde   : > { %v4949_v4 = vpop.f32.mrb[31].mxu0  ;;  %4953 = vmatmul.mubr.msk.bf16.vlgmr.msra.gmra.mrb[36].mxu1 %vm1518_vm3, %v2382_v1 }
 0xcdf   : > { %4964 = vmatprep.mubr.msk.bf16.mxu1 %vm6144_vm1, %v6143_v3 }
 0xd6a   : > { %v2433_v7 = vpop.xlane.xlu0 %2432 }
 0xd6b   : > { %v2437_v8 = vsub.f32 %v2375_v62, %v2433_v7 }
 0xd6d   : > { %v2439_v9 = vmul.f32 1.442695, %v2437_v8 }
 0xd6f   : > { %5305 = vpow2.f32 %v2439_v9  ;;  %v5272_v9 = vld [vmem:[%s1164_s26 + $0x8] sm:$0xff]  }
 0xd79   : > { %v5306_v10 = vpop.eup %5305 }
 0xd7a   : > { %v2443_v11 = vsel %vm1518_vm3, %v5306_v10, 0.0 }
 0xd7b   : > { %2444 = vadd.xlane.f32.xlu0 %v2443_v11  ;;  %v1434_v11 = vld [vmem:[#allocation6 + $0x8] sm:$0xff] }
 0xda9   : > { %v2322_v12 = vpop.f32.mrb[32].mxu1 }
 0xdaa   : > { %v2329_v14 = vadd.f32 %v2322_v12, %v7203_v19  ;;  %v4942_v15 = vpop.f32.mrb[33].mxu1 }
 0xdab   : > { %v2325_v17 = vpop.f32.mrb[34].mxu1  ;;  %v1436_v15 = vld [vmem:[#allocation6 + $0x18] sm:$0xff] }
 0xdac   : > { %v2330_v18 = vadd.f32 %v2325_v17, %v7205_v24  ;;  %v4943_v20 = vpop.f32.mrb[35].mxu1 }
 0xdad   : > { %v5274_v20 = vld [vmem:[%s1147_s1 + $0x8] sm:$0xff]  }
 0xdb1   : > { %v2425_v22 = vpop.f32.mrb[36].mxu1 }
 0xdb2   : > { %v4954_v25 = vpop.f32.mrb[37].mxu1  ;;  %v2434_v26 = vsel %vm1518_vm3, %v2425_v22, -inf }
 0xdb3   : > { %2435 = vmax.xlane.f32.xlu1 %v2434_v26  ;;  %v2428_v27 = vpop.f32.mrb[38].mxu1 }
 0xdb4   : > { %v4955_v28 = vpop.f32.mrb[39].mxu1 }
 0xdc4   : > { %2455 = vrot.lane.b32.xlu1 %v7093_v13, %s6155_s8 }
 0xe08   : > { %v2445_v29 = vpop.xlane.xlu0 %2444 }
 0xe09   : > { %5307 = vrcp.f32 %v2445_v29 }
 0xe13   : > { %v5308_v30 = vpop.eup %5307 }
 0xe14   : > { %v2451_v23 = vmul.f32 %v5308_v30, %v5306_v10  ;;  %v1433_v10 = vld [vmem:[#allocation6] sm:$0xff] }
 0xe15   : > { %v1437_v12 = vpack.c.bf16 %v1434_v11, %v1433_v10 }
 0xe16   : > { %v2453_v33 = vpack.c.bf16 %v2451_v23, %v2451_v23 }
 0xe40   : > { %v2436_v21 = vpop.xlane.xlu1 %2435 }
 0xe41   : > { %v2438_v19 = vsub.f32 %v2425_v22, %v2436_v21  ;;  %v4688_v21 = vld [vmem:[%s1231_s9] ss:$0 sm:$0xff] }
 0xe43   : > { %v2441_v31 = vmul.f32 1.442695, %v2438_v19 }
 0xe44   : > { %v2456_v24 = vpop.permute.xlu1 %2455 }
 0xe45   : > { %5309 = vpow2.f32 %v2441_v31  ;;  %v2461_v32 = vsel %vm1643_vm4, %v2456_v24, 0 }
 0xe46   : > { %4957 = vmatpush3.bf16.msra.mxu0 %v2461_v32  ;;  %v4689_v32 = vld [vmem:[%s1239_s4] ss:$0 sm:$0xff]  ;;  %s7714_s4 = scalar_lea.vmem [#allocation26], %s7025_s27 }
 0xe47   : > { %4968 = vmatprep.subr.bf16.mxu0 %v6143_v3 }
 0xe49   : > { %4959 = vmatmul.mubr.msk.bf16.vlgmr.msra.gmra.mrb[32].mxu0 %vm1518_vm3, %v2453_v33 }
 0xe4a   : > { %4970 = vmatprep.mubr.msk.bf16.mxu0 %vm6144_vm1, %v6143_v3  ;;  %4969 = vmatpush3.bf16.msra.mxu0 %v2556_v36  ;;  %v4694_v36 = vld [vmem:[%s1172_s21] ss:$0 sm:$0xff] }
 0xe4f   : > { %v5310_v13 = vpop.eup %5309 }
 0xe50   : > { %v2446_v34 = vsel %vm1518_vm3, %v5310_v13, 0.0 }
 0xe51   : > { %2447 = vadd.xlane.f32.xlu0 %v2446_v34 }
 0xe67   : > { %2503 = vrot.lane.b32.xlu0 %v7097_v16, %s6155_s8 }
 0xede   : > { %v2448_v37 = vpop.xlane.xlu0 %2447 }
 0xedf   : > { %5311 = vrcp.f32 %v2448_v37 }
 0xee2   : > { %v2504_v38 = vpop.permute.xlu0 %2503 }
 0xee3   : > { %v2509_v39 = vsel %vm1643_vm4, %v2504_v38, 0 }
 0xee4   : > { %4963 = vmatpush3.bf16.msra.mxu1 %v2509_v39 }
 0xee5   : > { %4974 = vmatprep.subr.bf16.mxu1 %v6143_v3 }
 0xee9   : > { %v5312_v40 = vpop.eup %5311 }
 0xeea   : > { %v2452_v41 = vmul.f32 %v5312_v40, %v5310_v13 }
 0xeec   : > { %v2454_v42 = vpack.c.bf16 %v2452_v41, %v2452_v41 }
 0xeee   : > { %4965 = vmatmul.mubr.msk.bf16.vlgmr.msra.gmra.mrb[40].mxu1 %vm1518_vm3, %v2454_v42 }
 0xeef   : > { %4978 = vmatprep.mubr.msk.bf16.mxu1 %vm6144_vm1, %v6143_v3 }
 0xf1c   : > { %v2497_v16 = vpop.f32.mrb[32].mxu0 }
 0xf1d   : > { %v4960_v43 = vpop.f32.mrb[33].mxu0 }
 0xf1e   : > { %v2500_v44 = vpop.f32.mrb[34].mxu0 }
 0xf1f   : > { %v4961_v45 = vpop.f32.mrb[35].mxu0 }
 0xfc1   : > { %v2545_v46 = vpop.f32.mrb[40].mxu1 }
 0xfc2   : > { %v2551_v47 = vpack.c.bf16 %v2545_v46, %v2497_v16  ;;  %v4966_v48 = vpop.f32.mrb[41].mxu1 }
 0xfc3   : > { %v2548_v49 = vpop.f32.mrb[42].mxu1  ;;  %v4690_v48 = vld [vmem:[%s1155_s6] ss:$0 sm:$0xff] }
 0xfc4   : > { %v4967_v50 = vpop.f32.mrb[43].mxu1  ;;  %4971 = vmatmul.mubr.msk.bf16.vlgmr.msra.gmra.mrb[36].mxu0 %vm1518_vm3, %v2551_v47 }
 0xfc5   : > { %4986 = vmatprep.mubr.msk.bf16.mxu0 %vm1463_vm2, %v1437_v12 }
0x1097   : > { %v2592_v51 = vpop.f32.mrb[36].mxu0 }
0x1098   : > { %v2599_v52 = vadd.f32 %v2592_v51, %v2329_v14  ;;  %v4972_v53 = vpop.f32.mrb[37].mxu0  ;;  %v1435_v14 = vld [vmem:[#allocation6 + $0x10] sm:$0xff] }
0x1099   : > { %v2595_v54 = vpop.f32.mrb[38].mxu0  ;;  %v1438_v17 = vpack.c.bf16 %v1436_v15, %v1435_v14 }
0x109a   : > { %v2600_v55 = vadd.f32 %v2595_v54, %v2330_v18  ;;  %v4973_v56 = vpop.f32.mrb[39].mxu0  ;;  %v2601_v57 = vadd.f32 %v2599_v52, %v7078_v5  ;;  %v5273_v18 = vld [vmem:[%s1147_s1] sm:$0xff]   ;;  %s7716_s1 = sld [smem:[#allocation40_spill]] }
0x109b   : > { %4975 = vmatpush3.bf16.msra.mxu1 %v5273_v18 }
0x109c   : > { %v2605_v58 = vsel %vm1463_vm2, %v2601_v57, 0.0  ;;  %v2602_v59 = vadd.f32 %v2600_v55, %v7080_v6  ;;  %v5271_v6 = vld [vmem:[%s1164_s26] sm:$0xff]   ;;  %4976 = vmatprep.subr.bf16.mxu1 %v6143_v3 }
0x109d   : > { %2606 = vadd.xlane.f32.xlu1 %v2605_v58  ;;  %4982 = vmatprep.subr.bf16.mxu0 %v5271_v6 }
0x109e   : > { %v2608_v60 = vsel %vm1463_vm2, %v2602_v59, 0.0  ;;  %4983 = vmatpush3.bf16.msra.mxu0 %v5271_v6 }
0x109f   : > { %2609 = vadd.xlane.f32.xlu0 %v2608_v60  ;;  %4984 = vmatprep.subr.bf16.mxu0 %v5272_v9 }
0x10a0   : > { %4977 = vmatpush3.bf16.msra.mxu1 %v5274_v20  ;;  %p4734_p10 = scmp.ne.s32.totalorder %s7716_s1, 1 }
0x10a1   : > { %4990 = vmatprep.subr.bf16.mxu1 %v6143_v3 }
0x10a2   : > { %4985 = vmatpush3.bf16.msra.mxu0 %v5272_v9 }
0x10a3   : > { %4996 = vmatprep.subr.bf16.mxu0 %v6143_v3 }
0x10a5   : > { %4987 = vmatmul.mubr.msk.bf16.vlgmr.msra.gmra.mrb[40].mxu0 %vm1463_vm2, %v1438_v17 }
0x10a6   : > { %4998 = vmatprep.mubr.msk.bf16.mxu0 %vm6144_vm1, %v6143_v3 }
0x112a   : > { %v2607_v61 = vpop.xlane.xlu1 %2606 }
0x112b   : > { %v2612_v62 = vmul.f32 0.03125, %v2607_v61 }
0x112c   : > { %v2610_v63 = vpop.xlane.xlu0 %2609 }
0x112d   : > { %v2614_v0 = vsub.f32 %v2601_v57, %v2612_v62  ;;  %v2613_v1 = vmul.f32 0.03125, %v2610_v63 }
0x112f   : > { %v2615_v2 = vsub.f32 %v2602_v59, %v2613_v1  ;;  %v2616_v4 = vmul.f32 %v2614_v0, %v2614_v0 }
0x1131   : > { %v2618_v7 = vsel %vm1463_vm2, %v2616_v4, 0.0  ;;  %v2617_v5 = vmul.f32 %v2615_v2, %v2615_v2 }
0x1132   : > { %2619 = vadd.xlane.f32.xlu1 %v2618_v7 }
0x1133   : > { %v2621_v8 = vsel %vm1463_vm2, %v2617_v5, 0.0 }
0x1134   : > { %2622 = vadd.xlane.f32.xlu0 %v2621_v8 }
0x1178   : > { %v4988_v37 = vpop.f32.mrb[40].mxu0 }
0x1179   : > { %v2788_v38 = vadd.f32 %v4988_v37, %v4694_v36  ;;  %v2779_v39 = vpop.f32.mrb[41].mxu0 }
0x117a   : > { %v2780_v40 = vadd.f32 %v4694_v36, %v2779_v39  ;;  %v4989_v41 = vpop.f32.mrb[42].mxu0 }
0x117b   : > { %v2791_v42 = vadd.f32 %v4989_v41, %v4694_v36  ;;  %v2782_v16 = vpop.f32.mrb[43].mxu0 }
0x117c   : > { %v2783_v43 = vadd.f32 %v4694_v36, %v2782_v16 }
0x117d   : > { %v7302_v44 = vpack.c.bf16 %v2791_v42, %v2788_v38 }
0x117e   : > { %v7304_v45 = vpack.c.bf16 %v2783_v43, %v2780_v40 }
0x117f   : > { %v2853_v46 = vsel %vm1518_vm3, %v7302_v44, 0 }
0x1180   : > { %v2807_v47 = vsel %vm1518_vm3, %v7304_v45, 0  ;;  %4997 = vmatpush3.bf16.xpose.msra.mxu0 %v2853_v46 }
0x1181   : > { %5008 = vmatprep.subr.bf16.mxu0 %v6143_v3 }
0x11bf   : > { %v2620_v22 = vpop.xlane.xlu1 %2619 }
0x11c0   : > { %v2624_v25 = vmul.f32 0.03125, %v2620_v22 }
0x11c1   : > { %v2623_v26 = vpop.xlane.xlu0 %2622 }
0x11c2   : > { %v2626_v27 = vadd.f32 1e-05, %v2624_v25  ;;  %v2625_v28 = vmul.f32 0.03125, %v2623_v26  ;;  %v2798_v25 = vld [vmem:[%s7046_s15] sm:$0xf] }
0x11c4   : > { %5313 = vrsqrt.f32 %v2626_v27  ;;  %v2627_v29 = vadd.f32 1e-05, %v2625_v28 }
0x11c6   : > { %5315 = vrsqrt.f32 %v2627_v29 }
0x11ce   : > { %v5314_v30 = vpop.eup %5313 }
0x11cf   : > { %v2630_v19 = vmul.f32 %v5314_v30, %v2614_v0  ;;  %v3019_v30 = vsel %vm1643_vm4, %v2798_v25, 0 }
0x11d0   : > { %v5316_v23 = vpop.eup %5315 }
0x11d1   : > { %v2638_v31 = vmul.f32 %v4688_v21, %v2630_v19  ;;  %v2631_v24 = vmul.f32 %v5316_v23, %v2615_v2 }
0x11d3   : > { %v2639_v33 = vmul.f32 %v4688_v21, %v2631_v24  ;;  %v7291_v13 = vadd.f32 %v4689_v32, %v2638_v31 }
0x11d5   : > { %v7293_v34 = vadd.f32 %v4689_v32, %v2639_v33 }
0x11d7   : > { %v2648_v35 = vpack.c.bf16 %v7293_v34, %v7291_v13 }
0x11d9   : > { %4979 = vmatmul.mubr.msk.bf16.vlgmr.msra.gmra.mrb[44].mxu1 %vm1463_vm2, %v2648_v35 }
0x11da   : > { %4992 = vmatprep.mubr.msk.bf16.mxu1 %vm6144_vm1, %v6143_v3  ;;  %4991 = vmatpush3.bf16.xpose.msra.mxu1 %v2807_v47 }
0x11db   : > { %5002 = vmatprep.subr.bf16.mxu1 %v6143_v3 }
0x12ac   : > { %v2709_v49 = vpop.f32.mrb[44].mxu1 }
0x12ad   : > { %v2710_v50 = vadd.f32 %v4690_v48, %v2709_v49  ;;  %v4980_v51 = vpop.f32.mrb[45].mxu1 }
0x12ae   : > { %v2712_v52 = vpop.f32.mrb[46].mxu1 }
0x12af   : > { %v7314_v53 = vpack.c.bf16 %v2710_v50, %v2710_v50  ;;  %v2713_v54 = vadd.f32 %v4690_v48, %v2712_v52  ;;  %v4981_v55 = vpop.f32.mrb[47].mxu1 }
0x12b1   : > { %v7316_v56 = vpack.c.bf16 %v2713_v54, %v2713_v54  ;;  %4993 = vmatmul.mubr.msk.bf16.vlgmr.msra.gmra.mrb[48].mxu1 %vm1518_vm3, %v7314_v53 }
0x12b2   : > { %5004 = vmatprep.mubr.msk.bf16.mxu1 %vm6144_vm1, %v6143_v3 }
0x12b3   : > { %4999 = vmatmul.mubr.msk.bf16.vlgmr.msra.gmra.mrb[44].mxu0 %vm1518_vm3, %v7316_v56 }
0x12b4   : > { %5010 = vmatprep.mubr.msk.bf16.mxu0 %vm6144_vm1, %v6143_v3 }
0x1384   : > { %v2843_v57 = vpop.f32.mrb[48].mxu1 }
0x1385   : > { %v4994_v58 = vpop.f32.mrb[49].mxu1  ;;  %v2896_v59 = vsel %vm2895_vm5, %v2843_v57, -inf }
0x1386   : > { %v2889_v60 = vpop.f32.mrb[44].mxu0  ;;  %2897 = vmax.xlane.f32.xlu1 %v2896_v59  ;;  %v2846_v61 = vpop.f32.mrb[50].mxu1 }
0x1387   : > { %v4995_v62 = vpop.f32.mrb[51].mxu1  ;;  %v5000_v63 = vpop.f32.mrb[45].mxu0  ;;  %v2899_v0 = vsel %vm2895_vm5, %v2889_v60, -inf }
0x1388   : > { %2900 = vmax.xlane.f32.xlu0 %v2899_v0  ;;  %v2892_v1 = vpop.f32.mrb[46].mxu0 }
0x1389   : > { %v5001_v2 = vpop.f32.mrb[47].mxu0 }
0x1413   : > { %v2898_v4 = vpop.xlane.xlu1 %2897 }
0x1414   : > { %v2902_v7 = vsub.f32 %v2843_v57, %v2898_v4 }
0x1415   : > { %v2901_v5 = vpop.xlane.xlu0 %2900 }
0x1416   : > { %v2904_v8 = vmul.f32 1.442695, %v2902_v7  ;;  %v2903_v6 = vsub.f32 %v2889_v60, %v2901_v5 }
0x1418   : > { %5317 = vpow2.f32 %v2904_v8  ;;  %v2906_v9 = vmul.f32 1.442695, %v2903_v6 }
0x141a   : > { %5319 = vpow2.f32 %v2906_v9 }
0x1422   : > { %v5318_v10 = vpop.eup %5317 }
0x1423   : > { %v2908_v11 = vsel %vm2895_vm5, %v5318_v10, 0.0 }
0x1424   : > { %v5320_v12 = vpop.eup %5319  ;;  %2909 = vadd.xlane.f32.xlu1 %v2908_v11 }
0x1425   : > { %v2911_v14 = vsel %vm2895_vm5, %v5320_v12, 0.0 }
0x1426   : > { %2912 = vadd.xlane.f32.xlu0 %v2911_v14  ;;  %v2799_v14 = vld [vmem:[%s7046_s15 + $0x4] sm:$0xf] }
0x1435   : > { %2921 = vrot.lane.b32.xlu1 %v7304_v45, %s6145_s5 }
0x1439   : > { %3073 = vrot.lane.b32.xlu1 %v7304_v45, %s6147_s18 }
0x143c   : > { %2968 = vrot.lane.b32.xlu0 %v7302_v44, %s6145_s5 }
0x143d   : > { %3124 = vrot.lane.b32.xlu1 %v7302_v44, %s6147_s18 }
0x1440   : > { %3071 = vrot.lane.b32.xlu0 %v7314_v53, %s6147_s18 }
0x1441   : > { %3122 = vrot.lane.b32.xlu1 %v7316_v56, %s6147_s18 }
0x14b1   : > { %v2910_v15 = vpop.xlane.xlu1 %2909 }
0x14b2   : > { %5321 = vrcp.f32 %v2910_v15  ;;  %v3293_v15 = vsel %vm1643_vm4, %v2799_v14, 0 }
0x14b3   : > { %v2913_v17 = vpop.xlane.xlu0 %2912 }
0x14b4   : > { %5323 = vrcp.f32 %v2913_v17 }
0x14b5   : > { %v2922_v18 = vpop.permute.xlu1 %2921 }
0x14b6   : > { %5003 = vmatpush3.bf16.msra.mxu1 %v2922_v18 }
0x14b7   : > { %v2969_v20 = vpop.permute.xlu0 %2968  ;;  %5014 = vmatprep.subr.bf16.mxu1 %v6143_v3 }
0x14b8   : > { %5009 = vmatpush3.bf16.msra.mxu0 %v2969_v20 }
0x14b9   : > { %5020 = vmatprep.subr.bf16.mxu0 %v6143_v3  ;;  %v3074_v21 = vpop.permute.xlu1 %3073 }
0x14ba   : > { %v3079_v23 = vsel %vm1518_vm3, %v3074_v21, 0 }
0x14bb   : > { %v3072_v31 = vpop.permute.xlu0 %3071 }
0x14bc   : > { %v5322_v22 = vpop.eup %5321 }
0x14bd   : > { %v2916_v26 = vmul.f32 %v5322_v22, %v5318_v10  ;;  %v3125_v32 = vpop.permute.xlu1 %3124 }
0x14be   : > { %v5324_v27 = vpop.eup %5323  ;;  %v3130_v41 = vsel %vm1518_vm3, %v3125_v32, 0 }
0x14bf   : > { %v2917_v28 = vmul.f32 %v5324_v27, %v5320_v12  ;;  %v2918_v29 = vpack.c.bf16 %v2916_v26, %v2916_v26 }
0x14c1   : > { %5005 = vmatmul.mubr.msk.bf16.vlgmr.msra.gmra.mrb[52].mxu1 %vm2895_vm5, %v2918_v29  ;;  %v2919_v19 = vpack.c.bf16 %v2917_v28, %v2917_v28  ;;  %v3123_v47 = vpop.permute.xlu1 %3122 }
0x14c2   : > { %5015 = vmatpush3.bf16.msra.mxu1 %v3019_v30  ;;  %5016 = vmatprep.mubr.msk.bf16.mxu1 %vm6144_vm1, %v6143_v3 }
0x14c3   : > { %5011 = vmatmul.mubr.msk.bf16.vlgmr.msra.gmra.mrb[48].mxu0 %vm2895_vm5, %v2919_v19  ;;  %5026 = vmatprep.subr.bf16.mxu1 %v6143_v3 }
0x14c4   : > { %5021 = vmatpush3.bf16.xpose.msra.mxu0 %v3079_v23  ;;  %5022 = vmatprep.mubr.msk.bf16.mxu0 %vm6144_vm1, %v6143_v3 }
0x14c5   : > { %5032 = vmatprep.subr.bf16.mxu0 %v6143_v3 }
0x14cb   : > { %5023 = vmatmul.mubr.msk.bf16.vlgmr.msra.gmra.mrb[52].mxu0 %vm1518_vm3, %v3072_v31 }
0x14cc   : > { %5034 = vmatprep.mubr.msk.bf16.mxu0 %vm6144_vm1, %v6143_v3 }
0x1594   : > { %v2961_v24 = vpop.f32.mrb[52].mxu1 }
0x1595   : > { %v5006_v33 = vpop.f32.mrb[53].mxu1 }
0x1596   : > { %v2964_v35 = vpop.f32.mrb[54].mxu1  ;;  %v3008_v36 = vpop.f32.mrb[48].mxu0 }
0x1597   : > { %v3014_v37 = vpack.c.bf16 %v3008_v36, %v2961_v24  ;;  %v5007_v38 = vpop.f32.mrb[55].mxu1  ;;  %v5012_v39 = vpop.f32.mrb[49].mxu0 }
0x1598   : > { %v3011_v40 = vpop.f32.mrb[50].mxu0 }
0x1599   : > { %v5013_v42 = vpop.f32.mrb[51].mxu0  ;;  %5017 = vmatmul.mubr.msk.bf16.vlgmr.msra.gmra.mrb[56].mxu1 %vm1518_vm3, %v3014_v37 }
0x159a   : > { %5027 = vmatpush3.bf16.xpose.msra.mxu1 %v3130_v41  ;;  %5028 = vmatprep.mubr.msk.bf16.mxu1 %vm6144_vm1, %v6143_v3 }
0x159b   : > { %5038 = vmatprep.subr.bf16.mxu1 %v6143_v3 }
0x159e   : > { %v3115_v16 = vpop.f32.mrb[52].mxu0 }
0x159f   : > { %v5024_v43 = vpop.f32.mrb[53].mxu0  ;;  %v3172_v46 = vsel %vm2895_vm5, %v3115_v16, -inf }
0x15a0   : > { %3173 = vmax.xlane.f32.xlu0 %v3172_v46  ;;  %v3118_v48 = vpop.f32.mrb[54].mxu0 }
0x15a1   : > { %v5025_v49 = vpop.f32.mrb[55].mxu0  ;;  %5029 = vmatmul.mubr.msk.bf16.vlgmr.msra.gmra.mrb[60].mxu1 %vm1518_vm3, %v3123_v47 }
0x15a2   : > { %5040 = vmatprep.mubr.msk.bf16.mxu1 %vm6144_vm1, %v6143_v3  ;;  %v4704_v49 = vld [vmem:[%s1189_s17] ss:$0 sm:$0xff] }
0x162d   : > { %v3174_v50 = vpop.xlane.xlu0 %3173 }
0x162e   : > { %v3178_v51 = vsub.f32 %v3115_v16, %v3174_v50 }
0x1630   : > { %v3180_v52 = vmul.f32 1.442695, %v3178_v51 }
0x1632   : > { %5325 = vpow2.f32 %v3180_v52 }
0x163c   : > { %v5326_v54 = vpop.eup %5325 }
0x163d   : > { %v3184_v55 = vsel %vm2895_vm5, %v5326_v54, 0.0 }
0x163e   : > { %3185 = vadd.xlane.f32.xlu0 %v3184_v55 }
0x166c   : > { %v7368_v57 = vpop.f32.mrb[56].mxu1 }
0x166d   : > { %v5018_v58 = vpop.f32.mrb[57].mxu1  ;;  %v3068_v50 = vadd.f32 %v4704_v49, %v7368_v57 }
0x166e   : > { %v7370_v59 = vpop.f32.mrb[58].mxu1 }
0x166f   : > { %v5019_v60 = vpop.f32.mrb[59].mxu1  ;;  %v3069_v52 = vadd.f32 %v4704_v49, %v7370_v59 }
0x1674   : > { %v3166_v61 = vpop.f32.mrb[60].mxu1 }
0x1675   : > { %v5030_v62 = vpop.f32.mrb[61].mxu1  ;;  %v3175_v63 = vsel %vm2895_vm5, %v3166_v61, -inf }
0x1676   : > { %3176 = vmax.xlane.f32.xlu1 %v3175_v63  ;;  %v3169_v0 = vpop.f32.mrb[62].mxu1 }
0x1677   : > { %v5031_v1 = vpop.f32.mrb[63].mxu1 }
0x1687   : > { %3196 = vrot.lane.b32.xlu1 %v7304_v45, %s6148_s10 }
0x168b   : > { %3340 = vrot.lane.b32.xlu1 %v7304_v45, %s6150_s0 }
0x168f   : > { %3390 = vrot.lane.b32.xlu1 %v7302_v44, %s6150_s0 }
0x1693   : > { %3388 = vrot.lane.b32.xlu1 %v7316_v56, %s6150_s0 }
0x16cb   : > { %v3186_v2 = vpop.xlane.xlu0 %3185 }
0x16cc   : > { %5327 = vrcp.f32 %v3186_v2 }
0x16d6   : > { %v5328_v4 = vpop.eup %5327 }
0x16d7   : > { %v3192_v8 = vmul.f32 %v5328_v4, %v5326_v54 }
0x16d9   : > { %v3194_v10 = vpack.c.bf16 %v3192_v8, %v3192_v8 }
0x1703   : > { %v3177_v7 = vpop.xlane.xlu1 %3176 }
0x1704   : > { %v3179_v5 = vsub.f32 %v3166_v61, %v3177_v7 }
0x1706   : > { %v3182_v6 = vmul.f32 1.442695, %v3179_v5 }
0x1707   : > { %v3197_v9 = vpop.permute.xlu1 %3196 }
0x1708   : > { %5329 = vpow2.f32 %v3182_v6  ;;  %5033 = vmatpush3.bf16.msra.mxu0 %v3197_v9 }
0x1709   : > { %5044 = vmatprep.subr.bf16.mxu0 %v6143_v3 }
0x170b   : > { %5035 = vmatmul.mubr.msk.bf16.vlgmr.msra.gmra.mrb[56].mxu0 %vm2895_vm5, %v3194_v10  ;;  %v3341_v25 = vpop.permute.xlu1 %3340 }
0x170c   : > { %5046 = vmatprep.mubr.msk.bf16.mxu0 %vm6144_vm1, %v6143_v3  ;;  %5045 = vmatpush3.bf16.msra.mxu0 %v3293_v15  ;;  %v3346_v27 = vsel %vm1518_vm3, %v3341_v25, 0 }
0x170d   : > { %5056 = vmatprep.subr.bf16.mxu0 %v6143_v3 }
0x170f   : > { %v3391_v23 = vpop.permute.xlu1 %3390 }
0x1710   : > { %v3396_v35 = vsel %vm1518_vm3, %v3391_v23, 0 }
0x1712   : > { %v5330_v11 = vpop.eup %5329 }
0x1713   : > { %v3187_v12 = vsel %vm2895_vm5, %v5330_v11, 0.0  ;;  %v3389_v40 = vpop.permute.xlu1 %3388 }
0x1714   : > { %3188 = vadd.xlane.f32.xlu0 %v3187_v12 }
0x172a   : > { %3242 = vrot.lane.b32.xlu0 %v7302_v44, %s6148_s10  ;;  %s7710_s10 = scalar_lea.vmem [#allocation24], %s7025_s27 }
0x172e   : > { %3338 = vrot.lane.b32.xlu0 %v7314_v53, %s6150_s0 }
0x17a1   : > { %v3189_v17 = vpop.xlane.xlu0 %3188 }
0x17a2   : > { %5331 = vrcp.f32 %v3189_v17 }
0x17a5   : > { %v3243_v18 = vpop.permute.xlu0 %3242 }
0x17a6   : > { %5039 = vmatpush3.bf16.msra.mxu1 %v3243_v18 }
0x17a7   : > { %5050 = vmatprep.subr.bf16.mxu1 %v6143_v3 }
0x17a9   : > { %v3339_v28 = vpop.permute.xlu0 %3338 }
0x17ac   : > { %v5332_v20 = vpop.eup %5331 }
0x17ad   : > { %v3193_v22 = vmul.f32 %v5332_v20, %v5330_v11  ;;  %v2800_v11 = vld [vmem:[%s7046_s15 + $0x8] sm:$0xf] }
0x17ae   : > { %v3559_v12 = vsel %vm1643_vm4, %v2800_v11, 0 }
0x17af   : > { %v3195_v26 = vpack.c.bf16 %v3193_v22, %v3193_v22 }
0x17b1   : > { %5041 = vmatmul.mubr.msk.bf16.vlgmr.msra.gmra.mrb[64].mxu1 %vm2895_vm5, %v3195_v26 }
0x17b2   : > { %5051 = vmatpush3.bf16.xpose.msra.mxu1 %v3346_v27  ;;  %5052 = vmatprep.mubr.msk.bf16.mxu1 %vm6144_vm1, %v6143_v3 }
0x17b3   : > { %5062 = vmatprep.subr.bf16.mxu1 %v6143_v3 }
0x17b9   : > { %5053 = vmatmul.mubr.msk.bf16.vlgmr.msra.gmra.mrb[68].mxu1 %vm1518_vm3, %v3339_v28 }
0x17ba   : > { %5064 = vmatprep.mubr.msk.bf16.mxu1 %vm6144_vm1, %v6143_v3 }
0x17de   : > { %v3236_v29 = vpop.f32.mrb[56].mxu0 }
0x17df   : > { %v5036_v30 = vpop.f32.mrb[57].mxu0 }
0x17e0   : > { %v3239_v21 = vpop.f32.mrb[58].mxu0 }
0x17e1   : > { %v5037_v19 = vpop.f32.mrb[59].mxu0 }
0x1884   : > { %v3282_v31 = vpop.f32.mrb[64].mxu1 }
0x1885   : > { %v3288_v24 = vpack.c.bf16 %v3282_v31, %v3236_v29  ;;  %v5042_v32 = vpop.f32.mrb[65].mxu1 }
0x1886   : > { %v3285_v33 = vpop.f32.mrb[66].mxu1 }
0x1887   : > { %v5043_v36 = vpop.f32.mrb[67].mxu1  ;;  %5047 = vmatmul.mubr.msk.bf16.vlgmr.msra.gmra.mrb[60].mxu0 %vm1518_vm3, %v3288_v24 }
0x1888   : > { %5057 = vmatpush3.bf16.xpose.msra.mxu0 %v3396_v35  ;;  %5058 = vmatprep.mubr.msk.bf16.mxu0 %vm6144_vm1, %v6143_v3 }
0x1889   : > { %5068 = vmatprep.subr.bf16.mxu0 %v6143_v3 }
0x188c   : > { %v3382_v37 = vpop.f32.mrb[68].mxu1 }
0x188d   : > { %v5054_v38 = vpop.f32.mrb[69].mxu1  ;;  %v3438_v39 = vsel %vm2895_vm5, %v3382_v37, -inf }
0x188e   : > { %3439 = vmax.xlane.f32.xlu0 %v3438_v39  ;;  %v3385_v41 = vpop.f32.mrb[70].mxu1 }
0x188f   : > { %v5055_v42 = vpop.f32.mrb[71].mxu1  ;;  %5059 = vmatmul.mubr.msk.bf16.vlgmr.msra.gmra.mrb[64].mxu0 %vm1518_vm3, %v3389_v40 }
0x1890   : > { %5070 = vmatprep.mubr.msk.bf16.mxu0 %vm6144_vm1, %v6143_v3 }
0x191b   : > { %v3440_v16 = vpop.xlane.xlu0 %3439 }
0x191c   : > { %v3444_v43 = vsub.f32 %v3382_v37, %v3440_v16 }
0x191e   : > { %v3446_v46 = vmul.f32 1.442695, %v3444_v43 }
0x1920   : > { %5333 = vpow2.f32 %v3446_v46 }
0x192a   : > { %v5334_v47 = vpop.eup %5333 }
0x192b   : > { %v3450_v48 = vsel %vm2895_vm5, %v5334_v47, 0.0 }
0x192c   : > { %3451 = vadd.xlane.f32.xlu0 %v3450_v48 }
0x195a   : > { %v3329_v51 = vpop.f32.mrb[60].mxu0 }
0x195b   : > { %v7416_v54 = vadd.f32 %v3329_v51, %v3068_v50  ;;  %v5048_v55 = vpop.f32.mrb[61].mxu0 }
0x195c   : > { %v3332_v58 = vpop.f32.mrb[62].mxu0 }
0x195d   : > { %v7418_v60 = vadd.f32 %v3332_v58, %v3069_v52  ;;  %v5049_v61 = vpop.f32.mrb[63].mxu0 }
0x1962   : > { %v3432_v62 = vpop.f32.mrb[64].mxu0 }
0x1963   : > { %v5060_v63 = vpop.f32.mrb[65].mxu0  ;;  %v3441_v0 = vsel %vm2895_vm5, %v3432_v62, -inf }
0x1964   : > { %3442 = vmax.xlane.f32.xlu1 %v3441_v0  ;;  %v3435_v1 = vpop.f32.mrb[66].mxu0 }
0x1965   : > { %v5061_v2 = vpop.f32.mrb[67].mxu0 }
0x1975   : > { %3462 = vrot.lane.b32.xlu1 %v7304_v45, %s6151_s30 }
0x1979   : > { %3606 = vrot.lane.b32.xlu1 %v7304_v45, %s6154_s7 }
0x197d   : > { %3656 = vrot.lane.b32.xlu1 %v7302_v44, %s6154_s7 }
0x1981   : > { %3654 = vrot.lane.b32.xlu1 %v7316_v56, %s6154_s7 }
0x19b9   : > { %v3452_v57 = vpop.xlane.xlu0 %3451 }
0x19ba   : > { %5335 = vrcp.f32 %v3452_v57 }
0x19c4   : > { %v5336_v59 = vpop.eup %5335 }
0x19c5   : > { %v3458_v5 = vmul.f32 %v5336_v59, %v5334_v47 }
0x19c7   : > { %v3460_v9 = vpack.c.bf16 %v3458_v5, %v3458_v5 }
0x19f1   : > { %v3443_v4 = vpop.xlane.xlu1 %3442 }
0x19f2   : > { %v3445_v7 = vsub.f32 %v3432_v62, %v3443_v4 }
0x19f4   : > { %v3448_v8 = vmul.f32 1.442695, %v3445_v7  ;;  %v2801_v7 = vld [vmem:[%s7046_s15 + $0xc] sm:$0xf] }
0x19f5   : > { %v3463_v6 = vpop.permute.xlu1 %3462  ;;  %v3825_v5 = vsel %vm1643_vm4, %v2801_v7, 0 }
0x19f6   : > { %5337 = vpow2.f32 %v3448_v8  ;;  %5063 = vmatpush3.bf16.msra.mxu1 %v3463_v6 }
0x19f7   : > { %5074 = vmatprep.subr.bf16.mxu1 %v6143_v3 }
0x19f9   : > { %5065 = vmatmul.mubr.msk.bf16.vlgmr.msra.gmra.mrb[72].mxu1 %vm2895_vm5, %v3460_v9  ;;  %v3607_v20 = vpop.permute.xlu1 %3606 }
0x19fa   : > { %5076 = vmatprep.mubr.msk.bf16.mxu1 %vm6144_vm1, %v6143_v3  ;;  %5075 = vmatpush3.bf16.msra.mxu1 %v3559_v12  ;;  %v3612_v25 = vsel %vm1518_vm3, %v3607_v20, 0 }
0x19fb   : > { %5086 = vmatprep.subr.bf16.mxu1 %v6143_v3 }
0x19fd   : > { %v3657_v30 = vpop.permute.xlu1 %3656 }
0x19fe   : > { %v3662_v24 = vsel %vm1518_vm3, %v3657_v30, 0 }
0x1a00   : > { %v5338_v56 = vpop.eup %5337 }
0x1a01   : > { %v3453_v10 = vsel %vm2895_vm5, %v5338_v56, 0.0  ;;  %v3655_v37 = vpop.permute.xlu1 %3654 }
0x1a02   : > { %3454 = vadd.xlane.f32.xlu0 %v3453_v10 }
0x1a18   : > { %3508 = vrot.lane.b32.xlu0 %v7302_v44, %s6151_s30 }
0x1a1c   : > { %3604 = vrot.lane.b32.xlu0 %v7314_v53, %s6154_s7  ;;  %s7713_s7 = scalar_lea.vmem [#allocation21], %s7025_s27 }
0x1a8f   : > { %v3455_v14 = vpop.xlane.xlu0 %3454 }
0x1a90   : > { %5339 = vrcp.f32 %v3455_v14 }
0x1a93   : > { %v3509_v15 = vpop.permute.xlu0 %3508 }
0x1a94   : > { %5069 = vmatpush3.bf16.msra.mxu0 %v3509_v15 }
0x1a95   : > { %5080 = vmatprep.subr.bf16.mxu0 %v6143_v3 }
0x1a97   : > { %v3605_v53 = vpop.permute.xlu0 %3604 }
0x1a9a   : > { %v5340_v17 = vpop.eup %5339 }
0x1a9b   : > { %v3459_v18 = vmul.f32 %v5340_v17, %v5338_v56 }
0x1a9d   : > { %v3461_v22 = vpack.c.bf16 %v3459_v18, %v3459_v18 }
0x1a9f   : > { %5071 = vmatmul.mubr.msk.bf16.vlgmr.msra.gmra.mrb[68].mxu0 %vm2895_vm5, %v3461_v22 }
0x1aa0   : > { %5081 = vmatpush3.bf16.xpose.msra.mxu0 %v3612_v25  ;;  %5082 = vmatprep.mubr.msk.bf16.mxu0 %vm6144_vm1, %v6143_v3 }
0x1aa1   : > { %5092 = vmatprep.subr.bf16.mxu0 %v6143_v3 }
0x1aa7   : > { %5083 = vmatmul.mubr.msk.bf16.vlgmr.msra.gmra.mrb[72].mxu0 %vm1518_vm3, %v3605_v53 }
0x1aa8   : > { %5094 = vmatprep.mubr.msk.bf16.mxu0 %vm6144_vm1, %v6143_v3 }
0x1acc   : > { %v3502_v26 = vpop.f32.mrb[72].mxu1 }
0x1acd   : > { %v5066_v27 = vpop.f32.mrb[73].mxu1 }
0x1ace   : > { %v3505_v28 = vpop.f32.mrb[74].mxu1 }
0x1acf   : > { %v5067_v29 = vpop.f32.mrb[75].mxu1 }
0x1b72   : > { %v3548_v21 = vpop.f32.mrb[68].mxu0 }
0x1b73   : > { %v3554_v19 = vpack.c.bf16 %v3548_v21, %v3502_v26  ;;  %v5072_v23 = vpop.f32.mrb[69].mxu0 }
0x1b74   : > { %v3551_v31 = vpop.f32.mrb[70].mxu0 }
0x1b75   : > { %v5073_v32 = vpop.f32.mrb[71].mxu0  ;;  %5077 = vmatmul.mubr.msk.bf16.vlgmr.msra.gmra.mrb[76].mxu1 %vm1518_vm3, %v3554_v19 }
0x1b76   : > { %5087 = vmatpush3.bf16.xpose.msra.mxu1 %v3662_v24  ;;  %5088 = vmatprep.mubr.msk.bf16.mxu1 %vm6144_vm1, %v6143_v3 }
0x1b77   : > { %5098 = vmatprep.subr.bf16.mxu1 %v6143_v3 }
0x1b7a   : > { %v3648_v33 = vpop.f32.mrb[72].mxu0 }
0x1b7b   : > { %v5084_v35 = vpop.f32.mrb[73].mxu0  ;;  %v3704_v36 = vsel %vm2895_vm5, %v3648_v33, -inf }
0x1b7c   : > { %3705 = vmax.xlane.f32.xlu0 %v3704_v36  ;;  %v3651_v38 = vpop.f32.mrb[74].mxu0 }
0x1b7d   : > { %v5085_v39 = vpop.f32.mrb[75].mxu0  ;;  %5089 = vmatmul.mubr.msk.bf16.vlgmr.msra.gmra.mrb[80].mxu1 %vm1518_vm3, %v3655_v37 }
0x1b7e   : > { %5100 = vmatprep.mubr.msk.bf16.mxu1 %vm6144_vm1, %v6143_v3  ;;  %v5275_v39 = vld [vmem:[%s1198_s29] sm:$0xff]  }
0x1c09   : > { %v3706_v40 = vpop.xlane.xlu0 %3705 }
0x1c0a   : > { %v3710_v41 = vsub.f32 %v3648_v33, %v3706_v40  ;;  %v5276_v40 = vld [vmem:[%s1198_s29 + $0x8] sm:$0xff]  }
0x1c0c   : > { %v3712_v42 = vmul.f32 1.442695, %v3710_v41  ;;  %v5277_v41 = vld [vmem:[%s7051_s19] sm:$0xff]  }
0x1c0e   : > { %5341 = vpow2.f32 %v3712_v42  ;;  %v5278_v42 = vld [vmem:[%s7051_s19 + $0x8] sm:$0xff]  }
0x1c18   : > { %v5342_v16 = vpop.eup %5341 }
0x1c19   : > { %v3716_v43 = vsel %vm2895_vm5, %v5342_v16, 0.0 }
0x1c1a   : > { %3717 = vadd.xlane.f32.xlu0 %v3716_v43 }
0x1c48   : > { %v3595_v46 = vpop.f32.mrb[76].mxu1 }
0x1c49   : > { %v3602_v47 = vadd.f32 %v3595_v46, %v7416_v54  ;;  %v5078_v48 = vpop.f32.mrb[77].mxu1 }
0x1c4a   : > { %v3598_v49 = vpop.f32.mrb[78].mxu1 }
0x1c4b   : > { %v3603_v50 = vadd.f32 %v3598_v49, %v7418_v60  ;;  %v5079_v51 = vpop.f32.mrb[79].mxu1 }
0x1c4c   : > { %v4720_v51 = vld [vmem:[%s7710_s10] ss:$0 sm:$0xff] }
0x1c50   : > { %v3698_v52 = vpop.f32.mrb[80].mxu1 }
0x1c51   : > { %v5090_v55 = vpop.f32.mrb[81].mxu1  ;;  %v3707_v58 = vsel %vm2895_vm5, %v3698_v52, -inf }
0x1c52   : > { %3708 = vmax.xlane.f32.xlu1 %v3707_v58  ;;  %v3701_v61 = vpop.f32.mrb[82].mxu1 }
0x1c53   : > { %v5091_v62 = vpop.f32.mrb[83].mxu1 }
0x1c63   : > { %3728 = vrot.lane.b32.xlu1 %v7304_v45, %s6153_s2 }
0x1ca7   : > { %v3718_v63 = vpop.xlane.xlu0 %3717 }
0x1ca8   : > { %5343 = vrcp.f32 %v3718_v63 }
0x1cb2   : > { %v5344_v0 = vpop.eup %5343 }
0x1cb3   : > { %v3724_v2 = vmul.f32 %v5344_v0, %v5342_v16 }
0x1cb5   : > { %v3726_v59 = vpack.c.bf16 %v3724_v2, %v3724_v2  ;;  %v5279_v2 = vld [vmem:[%s7051_s19 + $0x10] sm:$0xff]  }
0x1cdf   : > { %v3709_v54 = vpop.xlane.xlu1 %3708 }
0x1ce0   : > { %v3711_v1 = vsub.f32 %v3698_v52, %v3709_v54 }
0x1ce2   : > { %v3714_v57 = vmul.f32 1.442695, %v3711_v1 }
0x1ce3   : > { %v3729_v60 = vpop.permute.xlu1 %3728 }
0x1ce4   : > { %5345 = vpow2.f32 %v3714_v57  ;;  %5093 = vmatpush3.bf16.msra.mxu0 %v3729_v60  ;;  %v5280_v57 = vld [vmem:[%s7051_s19 + $0x18] sm:$0xff]   ;;  %v4722_v60 = vld [vmem:[%s7712_s3] ss:$0 sm:$0xff] }
0x1ce5   : > { %5104 = vmatprep.subr.bf16.mxu0 %v6143_v3 }
0x1ce7   : > { %5095 = vmatmul.mubr.msk.bf16.vlgmr.msra.gmra.mrb[76].mxu0 %vm2895_vm5, %v3726_v59 }
0x1ce8   : > { %5106 = vmatprep.mubr.msk.bf16.mxu0 %vm6144_vm1, %v6143_v3  ;;  %5105 = vmatpush3.bf16.msra.mxu0 %v3825_v5 }
0x1ce9   : > { %5118 = vmatprep.subr.bf16.mxu0 %v6143_v3 }
0x1cee   : > { %v5346_v45 = vpop.eup %5345 }
0x1cef   : > { %v3719_v4 = vsel %vm2895_vm5, %v5346_v45, 0.0 }
0x1cf0   : > { %3720 = vadd.xlane.f32.xlu0 %v3719_v4 }
0x1d06   : > { %3774 = vrot.lane.b32.xlu0 %v7302_v44, %s6153_s2  ;;  %s7711_s2 = scalar_lea.vmem [#allocation25], %s7025_s27 }
0x1d07   : > { %v4721_v62 = vld [vmem:[%s7711_s2] ss:$0 sm:$0xff] }
0x1d7d   : > { %v3721_v8 = vpop.xlane.xlu0 %3720 }
0x1d7e   : > { %5347 = vrcp.f32 %v3721_v8 }
0x1d81   : > { %v3775_v6 = vpop.permute.xlu0 %3774 }
0x1d82   : > { %5099 = vmatpush3.bf16.msra.mxu1 %v3775_v6 }
0x1d83   : > { %5110 = vmatprep.subr.bf16.mxu1 %v6143_v3 }
0x1d88   : > { %v5348_v9 = vpop.eup %5347 }
0x1d89   : > { %v3725_v56 = vmul.f32 %v5348_v9, %v5346_v45 }
0x1d8b   : > { %v3727_v10 = vpack.c.bf16 %v3725_v56, %v3725_v56 }
0x1d8d   : > { %5101 = vmatmul.mubr.msk.bf16.vlgmr.msra.gmra.mrb[84].mxu1 %vm2895_vm5, %v3727_v10  ;;  %v4726_v10 = vld [vmem:[%s7713_s7] ss:$0 sm:$0xff] }
0x1d8e   : > { %5114 = vmatprep.mubr.msk.bf16.mxu1 %vm6144_vm1, %v6143_v3  ;;  %5111 = vmatpush3.bf16.msra.mxu1 %v5275_v39  ;;  %v4733_v39 = vld [vmem:[%s7715_s28] ss:$0 sm:$0xff] }
0x1d8f   : > { %5112 = vmatprep.subr.bf16.mxu1 %v6143_v3 }
0x1d92   : > { %5113 = vmatpush3.bf16.msra.mxu1 %v5276_v40 }
0x1dba   : > { %v3768_v44 = vpop.f32.mrb[76].mxu0 }
0x1dbb   : > { %v5096_v11 = vpop.f32.mrb[77].mxu0 }
0x1dbc   : > { %v3771_v12 = vpop.f32.mrb[78].mxu0 }
0x1dbd   : > { %v5097_v14 = vpop.f32.mrb[79].mxu0 }
0x1e60   : > { %v3814_v15 = vpop.f32.mrb[84].mxu1 }
0x1e61   : > { %v3820_v17 = vpack.c.bf16 %v3814_v15, %v3768_v44  ;;  %v5102_v18 = vpop.f32.mrb[85].mxu1 }
0x1e62   : > { %v3817_v20 = vpop.f32.mrb[86].mxu1 }
0x1e63   : > { %v5103_v22 = vpop.f32.mrb[87].mxu1  ;;  %5107 = vmatmul.mubr.msk.bf16.vlgmr.msra.gmra.mrb[80].mxu0 %vm1518_vm3, %v3820_v17 }
0x1e64   : > { %5126 = vmatprep.mubr.msk.bf16.mxu0 %vm6144_vm1, %v6143_v3  ;;  %5119 = vmatpush3.bf16.msra.mxu0 %v5277_v41 }
0x1e65   : > { %5120 = vmatprep.subr.bf16.mxu0 %v6143_v3 }
0x1e68   : > { %5121 = vmatpush3.bf16.msra.mxu0 %v5278_v42 }
0x1e69   : > { %5122 = vmatprep.subr.bf16.mxu0 %v6143_v3 }
0x1e6c   : > { %5123 = vmatpush3.bf16.msra.mxu0 %v5279_v2 }
0x1e6d   : > { %5124 = vmatprep.subr.bf16.mxu0 %v6143_v3 }
0x1e70   : > { %5125 = vmatpush3.bf16.msra.mxu0 %v5280_v57 }
0x1f36   : > { %v3861_v25 = vpop.f32.mrb[80].mxu0 }
0x1f37   : > { %v3868_v53 = vadd.f32 %v3861_v25, %v3602_v47  ;;  %v5108_v26 = vpop.f32.mrb[81].mxu0 }
0x1f38   : > { %v3864_v27 = vpop.f32.mrb[82].mxu0 }
0x1f39   : > { %v3869_v28 = vadd.f32 %v3864_v27, %v3603_v50  ;;  %v5109_v29 = vpop.f32.mrb[83].mxu0  ;;  %v3870_v30 = vadd.f32 %v3868_v53, %v7291_v13 }
0x1f3b   : > { %v3874_v21 = vsel %vm1463_vm2, %v3870_v30, 0.0  ;;  %v3871_v19 = vadd.f32 %v3869_v28, %v7293_v34 }
0x1f3c   : > { %3875 = vadd.xlane.f32.xlu1 %v3874_v21 }
0x1f3d   : > { %v3877_v23 = vsel %vm1463_vm2, %v3871_v19, 0.0 }
0x1f3e   : > { %3878 = vadd.xlane.f32.xlu0 %v3877_v23 }
0x1fc9   : > { %v3876_v31 = vpop.xlane.xlu1 %3875 }
0x1fca   : > { %v3880_v24 = vmul.f32 0.03125, %v3876_v31 }
0x1fcb   : > { %v3879_v32 = vpop.xlane.xlu0 %3878 }
0x1fcc   : > { %v3882_v33 = vsub.f32 %v3870_v30, %v3880_v24  ;;  %v3881_v35 = vmul.f32 0.03125, %v3879_v32 }
0x1fce   : > { %v3883_v36 = vsub.f32 %v3871_v19, %v3881_v35  ;;  %v3884_v37 = vmul.f32 %v3882_v33, %v3882_v33 }
0x1fd0   : > { %v3886_v13 = vsel %vm1463_vm2, %v3884_v37, 0.0  ;;  %v3885_v38 = vmul.f32 %v3883_v36, %v3883_v36 }
0x1fd1   : > { %3887 = vadd.xlane.f32.xlu1 %v3886_v13  ;;  %v4732_v13 = vld [vmem:[%s7714_s4] ss:$0 sm:$0xff] }
0x1fd2   : > { %v3889_v34 = vsel %vm1463_vm2, %v3885_v38, 0.0 }
0x1fd3   : > { %3890 = vadd.xlane.f32.xlu0 %v3889_v34 }
0x205e   : > { %v3888_v16 = vpop.xlane.xlu1 %3887 }
0x205f   : > { %v3892_v43 = vmul.f32 0.03125, %v3888_v16 }
0x2060   : > { %v3891_v46 = vpop.xlane.xlu0 %3890 }
0x2061   : > { %v3894_v47 = vadd.f32 1e-05, %v3892_v43  ;;  %v3893_v48 = vmul.f32 0.03125, %v3891_v46 }
0x2063   : > { %5349 = vrsqrt.f32 %v3894_v47  ;;  %v3895_v49 = vadd.f32 1e-05, %v3893_v48 }
0x2065   : > { %5351 = vrsqrt.f32 %v3895_v49 }
0x206d   : > { %v5350_v50 = vpop.eup %5349 }
0x206e   : > { %v3898_v52 = vmul.f32 %v5350_v50, %v3882_v33 }
0x206f   : > { %v5352_v55 = vpop.eup %5351 }
0x2070   : > { %v3906_v58 = vmul.f32 %v4720_v51, %v3898_v52  ;;  %v3899_v61 = vmul.f32 %v5352_v55, %v3883_v36 }
0x2072   : > { %v3907_v63 = vmul.f32 %v4720_v51, %v3899_v61  ;;  %v3914_v0 = vadd.f32 %v4721_v62, %v3906_v58 }
0x2074   : > { %v3915_v54 = vadd.f32 %v4721_v62, %v3907_v63 }
0x2076   : > { %v3916_v1 = vpack.c.bf16 %v3915_v54, %v3914_v0 }
0x2078   : > { %5115 = vmatmul.mubr.msk.bf16.vlgmr.msra.gmra.mrb[88].mxu1 %vm1463_vm2, %v3916_v1 }
0x214b   : > { %v3977_v59 = vpop.f32.mrb[88].mxu1 }
0x214c   : > { %v3978_v45 = vadd.f32 %v4722_v60, %v3977_v59  ;;  %v5116_v4 = vpop.f32.mrb[89].mxu1 }
0x214d   : > { %v3980_v7 = vpop.f32.mrb[90].mxu1 }
0x214e   : > { %v3981_v5 = vadd.f32 %v4722_v60, %v3980_v7  ;;  %v5117_v8 = vpop.f32.mrb[91].mxu1  ;;  %v3984_v6 = vmax.f32 %v3978_v45, 0.0  ;;  %v4735_v45 = vld [vmem:[#allocation28] ss:$0 sm:$0xff] (!%p4734_p10)  ;;  %v4736_v7 = vld [vmem:[#allocation29] ss:$0 sm:$0xff] (!%p4734_p10) }
0x2150   : > { %v3985_v9 = vmax.f32 %v3981_v5, 0.0 }
0x2152   : > { %v3986_v56 = vpack.c.bf16 %v3985_v9, %v3984_v6 }
0x2154   : > { %5127 = vmatmul.mubr.msk.bf16.vlgmr.msra.gmra.mrb[84].mxu0 %vm4026_vm6, %v3986_v56 }
0x2227   : > { %v4064_v44 = vpop.f32.mrb[84].mxu0 }
0x2228   : > { %v4065_v11 = vadd.f32 %v4726_v10, %v4064_v44  ;;  %v5128_v3 = vpop.f32.mrb[85].mxu0 }
0x2229   : > { %v4067_v12 = vpop.f32.mrb[86].mxu0 }
0x222a   : > { %v4068_v14 = vadd.f32 %v4726_v10, %v4067_v12  ;;  %v5129_v15 = vpop.f32.mrb[87].mxu0  ;;  %v4071_v17 = vadd.f32 %v4065_v11, %v3914_v0 }
0x222c   : > { %v4075_v18 = vsel %vm1463_vm2, %v4071_v17, 0.0  ;;  %v4072_v20 = vadd.f32 %v4068_v14, %v3915_v54 }
0x222d   : > { %4076 = vadd.xlane.f32.xlu1 %v4075_v18 }
0x222e   : > { %v4078_v22 = vsel %vm1463_vm2, %v4072_v20, 0.0 }
0x222f   : > { %4079 = vadd.xlane.f32.xlu0 %v4078_v22 }
0x22ba   : > { %v4077_v25 = vpop.xlane.xlu1 %4076 }
0x22bb   : > { %v4081_v53 = vmul.f32 0.03125, %v4077_v25 }
0x22bc   : > { %v4080_v26 = vpop.xlane.xlu0 %4079 }
0x22bd   : > { %v4083_v27 = vsub.f32 %v4071_v17, %v4081_v53  ;;  %v4082_v28 = vmul.f32 0.03125, %v4080_v26 }
0x22bf   : > { %v4084_v29 = vsub.f32 %v4072_v20, %v4082_v28  ;;  %v4085_v30 = vmul.f32 %v4083_v27, %v4083_v27 }
0x22c1   : > { %v4087_v21 = vsel %vm1463_vm2, %v4085_v30, 0.0  ;;  %v4086_v19 = vmul.f32 %v4084_v29, %v4084_v29 }
0x22c2   : > { %4088 = vadd.xlane.f32.xlu1 %v4087_v21 }
0x22c3   : > { %v4090_v23 = vsel %vm1463_vm2, %v4086_v19, 0.0 }
0x22c4   : > { %4091 = vadd.xlane.f32.xlu0 %v4090_v23 }
0x234f   : > { %v4089_v31 = vpop.xlane.xlu1 %4088 }
0x2350   : > { %v4093_v24 = vmul.f32 0.03125, %v4089_v31 }
0x2351   : > { %v4092_v32 = vpop.xlane.xlu0 %4091 }
0x2352   : > { %v4095_v33 = vadd.f32 1e-05, %v4093_v24  ;;  %v4094_v35 = vmul.f32 0.03125, %v4092_v32 }
0x2354   : > { %5353 = vrsqrt.f32 %v4095_v33  ;;  %v4096_v36 = vadd.f32 1e-05, %v4094_v35 }
0x2356   : > { %5355 = vrsqrt.f32 %v4096_v36 }
0x235e   : > { %v5354_v37 = vpop.eup %5353 }
0x235f   : > { %v4099_v38 = vmul.f32 %v5354_v37, %v4083_v27 }
0x2360   : > { %v5356_v34 = vpop.eup %5355 }
0x2361   : > { %v4107_v40 = vmul.f32 %v4732_v13, %v4099_v38  ;;  %v4100_v41 = vmul.f32 %v5356_v34, %v4084_v29  ;;  %4124 = sbr.rel (%p4734_p10) target bundleno = 9379 (0x24a3), region = 220 }
0x2363   : > { %v4115_v42 = vadd.f32 %v4733_v39, %v4107_v40  ;;  %v4108_v16 = vmul.f32 %v4732_v13, %v4100_v41 }
0x2365   : > { %4117 = vst.msk [vmem:[#allocation2] sm:$0xff] %vm1463_vm2, %v4115_v42  ;;  %4119 = vst.msk [vmem:[#allocation31] sm:$0xff] %vm1463_vm2, %v4115_v42  ;;  %v4116_v43 = vadd.f32 %v4733_v39, %v4108_v16  ;;  %v4127_v46 = vsel (!%p4734_p10), %vm1463_vm2, %v4115_v42, 0.0 }
0x2366   : > { %4128 = vadd.xlane.f32.xlu0 (!%p4734_p10), %v4127_v46 }
0x2367   : > { %4118 = vst.msk [vmem:[#allocation2 + $0x8] sm:$0xff] %vm1463_vm2, %v4116_v43  ;;  %4120 = vst.msk [vmem:[#allocation31 + $0x8] sm:$0xff] %vm1463_vm2, %v4116_v43  ;;  %v4130_v47 = vsel (!%p4734_p10), %vm1463_vm2, %v4116_v43, 0.0 }
0x236a   : > { %4131 = vadd.xlane.f32.xlu0 %v4130_v47 }
0x23f3   : > { %v4129_v48 = vpop.xlane.xlu0 %4128 }
0x23f4   : > { %v4133_v49 = vmul.f32 0.03125, %v4129_v48 }
0x23f6   : > { %v4135_v50 = vsub.f32 %v4115_v42, %v4133_v49 }
0x23f7   : > { %v4132_v51 = vpop.xlane.xlu0 %4131 }
0x23f8   : > { %v4134_v52 = vmul.f32 0.03125, %v4132_v51  ;;  %v4137_v55 = vmul.f32 %v4135_v50, %v4135_v50 }
0x23fa   : > { %v4136_v58 = vsub.f32 %v4116_v43, %v4134_v52  ;;  %v4139_v61 = vsel %vm1463_vm2, %v4137_v55, 0.0 }
0x23fb   : > { %4140 = vadd.xlane.f32.xlu1 %v4139_v61 }
0x23fc   : > { %v4138_v62 = vmul.f32 %v4136_v58, %v4136_v58 }
0x23fe   : > { %v4142_v63 = vsel %vm1463_vm2, %v4138_v62, 0.0 }
0x23ff   : > { %4143 = vadd.xlane.f32.xlu1 %v4142_v63 }
0x2488   : > { %v4141_v0 = vpop.xlane.xlu1 %4140 }
0x2489   : > { %v4145_v54 = vmul.f32 0.03125, %v4141_v0 }
0x248b   : > { %v4147_v1 = vadd.f32 1e-05, %v4145_v54 }
0x248c   : > { %v4144_v2 = vpop.xlane.xlu1 %4143 }
0x248d   : > { %5357 = vrsqrt.f32 %v4147_v1  ;;  %v4146_v57 = vmul.f32 0.03125, %v4144_v2 }
0x248f   : > { %v4148_v60 = vadd.f32 1e-05, %v4146_v57 }
0x2491   : > { %5359 = vrsqrt.f32 %v4148_v60 }
0x2497   : > { %v5358_v59 = vpop.eup %5357 }
0x2498   : > { %v4151_v4 = vmul.f32 %v5358_v59, %v4135_v50 }
0x249a   : > { %v4159_v5 = vmul.f32 %v4735_v45, %v4151_v4 }
0x249b   : > { %v5360_v8 = vpop.eup %5359 }
0x249c   : > { %v4167_v6 = vadd.f32 %v4736_v7, %v4159_v5  ;;  %v4152_v9 = vmul.f32 %v5360_v8, %v4136_v58 }
0x249e   : > { %4169 = vst.msk [vmem:[#allocation31] sm:$0xff] %vm1463_vm2, %v4167_v6  ;;  %v4160_v56 = vmul.f32 %v4735_v45, %v4152_v9 }
0x24a0   : > { %v4168_v10 = vadd.f32 %v4736_v7, %v4160_v56 }
0x24a2   : > { %4170 = vst.msk [vmem:[#allocation31 + $0x8] sm:$0xff] %vm1463_vm2, %v4168_v10 }
0x24a3 PF: > { %s7717_s27 = sld [smem:[#allocation40_spill]]  ;;  %s6156_s6 = smov [#allocation31]  }
0x24a4   : > { %s4177_s26 = sshll.u32 %s6156_s6, 4  ;;  %s4178_s26 = int_to_ptr.vmem [resolvable:$true] %s4177_s26 }
0x24a5   : > { %s6033_s21 = scalar_lea.vmem %s4178_s26, 256  ;;  %p6040_p13 = scmp.lt.s32.totalorder %s4178_s26, %s4178_s26 }
0x24a6   : > { %p6034_p5 = scmp.ne.s32.totalorder %s4178_s26, %s6033_s21  ;;  %p6041_p2 = scmp.lt.s32.totalorder %s6033_s21, %s6033_s21 }
0x24a8   : > { %p6042_p8 = por %p6041_p2, %p6040_p13 }
0x24a9   : > { %p5211_p6 = scmp.eq.s32.totalorder %s7717_s27, 1 }
0x24ab   : > { %p6035_p7 = pnand %p6034_p5, %p5211_p6 }
0x24ad   : > { %p6036_p11 = pneg %p6035_p7 }
0x24af   : > { %p6043_p0 = pnand %p6042_p8, %p6036_p11 }
0x24b1   : > { %6046 = shalt.err (!%p6043_p0)
}
0x24b2   : > { %s7718_s29 = sld [smem:[#allocation65_spill]] }
0x24b8   : > { %s6047_s30 = scalar_lea.hbm %s7718_s29, 256 }
0x24b9   : > { %p6048_p9 = scmp.ne.s32.totalorder %s7718_s29, %s6047_s30  ;;  %p6053_p4 = scmp.lt.u32.totalorder %s6047_s30, %s7718_s29 }
0x24bb   : > { %p6049_p3 = pnand %p6048_p9, %p5211_p6 }
0x24bd   : > { %p6050_p12 = pneg %p6049_p3 }
0x24bf   : > { %p6055_p1 = pnand %p6053_p4, %p6050_p12 }
0x24c1   : > { %6058 = shalt.err (!%p6055_p1)
}
0x24c2   : > { %s6157_s18 = smov 128   ;;  %s6158_s8 = smov 8  }
0x24c3   : > { %5187 = dma.vmem_to_hbm [thread:$0]  (%p5211_p6), %s4178_s26, 256, %s7718_s29, [#allocation5], %s6157_s18, %s6157_s18, %s6158_s8  }
0x24c4   : > { %6096 = dma.done.wait (%p5211_p6), [#allocation5], 256  }
0x24c5   : > { %6098 = vsyncadd (%p5211_p6), [#allocation5], 4294967040 }
0x24c6 PF: > { %s7719_s28 = sld [smem:[#allocation41_spill]]  ;;  %s7720_s5 = sld [smem:[#allocation38_spill]] }
0x24c7   : > { %s7721_s26 = sld [smem:[#allocation39_spill]]  ;;  %s7722_s27 = sld [smem:[#allocation42_spill]] }
0x24cc   : > { %p35_p10 = scmp.ge.s32.totalorder %s7719_s28, 4  }
0x24ce   :  { %37 = sbr.rel (!%p35_p10) target bundleno = 27 (0x1b), region = 385 }
0x24d5   :  { %4193 = vsyncpa [#allocation4], 1 }
0x24d6   :  { %4195 = vsyncpa [#allocation4 + $0x1], 1 }
0x24d7   :  { %4196 = vsyncpa [#allocation7], 1 }
0x24d8   :  { %4197 = vsyncpa [#allocation30], 1 }
0x24d9   :  { %4198 = vsyncpa [#allocation5], 1 }
0x24da   :  { %4200 = vsyncpa [#allocation5 + $0x1], 1 }

</bundles_post_ra>
